<compile_context>
chip_gen: v7x
topology: tpu7x:2x2x1
jax: 0.10.0
libtpu: 0.0.40
codegen_flags: <defaults>
</compile_context>

<pallas_src>
import jax
import jax.numpy as jnp
from jax import lax
from jax.experimental import pallas as pl
from jax.experimental.pallas import tpu as pltpu

N_EMB = 384
N_HEAD = 6
HEAD_SIZ = N_EMB // N_HEAD      # 64
BLOCK_SIZ = 256                 # max sequence length supported by the causal mask
TQ = 128                        # query rows processed per grid step


def _mha_kernel(x_ref, wq_ref, wkv_ref, wp_ref, bias_ref, o_ref):
    # x_ref:    (T_pad, C)  bf16  full (padded) sequence of this batch element
    # wq_ref:   (C, C)      bf16  fused per-head query weights, softmax scale folded in
    # wkv_ref:  (C, 2C)     bf16  fused per-head key/value weights
    # wp_ref:   (C, C)      bf16  pre-transposed output projection weight
    # bias_ref: (1, C)      f32   output projection bias
    # o_ref:    (TQ, C)     f32   output rows for this query block
    T = x_ref.shape[0]
    TQb = o_ref.shape[0]
    q_start = pl.multiple_of(pl.program_id(1) * TQb, TQb)

    x_full = x_ref[...]                                   # (T, C)  bf16
    x_q = x_ref[pl.ds(q_start, TQb), :]                   # (TQ, C) bf16

    # Fused projections (lane-dense MXU GEMMs); cast straight back to bf16 so the
    # materialized temporaries are half-size and no per-slice casts are needed.
    q_all = jnp.dot(x_q, wq_ref[...],
                    preferred_element_type=jnp.float32).astype(jnp.bfloat16)   # (TQ, C)
    kv_all = jnp.dot(x_full, wkv_ref[...],
                     preferred_element_type=jnp.float32).astype(jnp.bfloat16)  # (T, 2C)

    # Additive causal bias (0 / -1e30): built once, reused by every head.
    row = lax.broadcasted_iota(jnp.int32, (TQb, T), 0) + q_start
    col = lax.broadcasted_iota(jnp.int32, (TQb, T), 1)
    causal_bias = jnp.where(col <= row, jnp.float32(0.0), jnp.float32(-1e30))

    out_acc = jnp.zeros((TQb, N_EMB), jnp.float32)
    for h in range(N_HEAD):                               # static unroll over 6 heads
        lo = h * HEAD_SIZ
        hi = lo + HEAD_SIZ
        q = q_all[:, lo:hi]                               # (TQ, hs) bf16
        k = kv_all[:, lo:hi]                              # (T, hs)  bf16
        v = kv_all[:, N_EMB + lo:N_EMB + hi]              # (T, hs)  bf16

        # q @ k.T on the MXU (softmax scale already folded into wq on the host).
        s = lax.dot_general(q, k, (((1,), (1,)), ((), ())),
                            preferred_element_type=jnp.float32)                # (TQ, T)
        s = s + causal_bias

        # numerically-stable softmax in fp32
        m = jnp.max(s, axis=-1, keepdims=True)
        e = jnp.exp(s - m)
        denom = jnp.sum(e, axis=-1, keepdims=True)
        w = (e * pl.reciprocal(denom, approx=True)).astype(jnp.bfloat16)

        # TODO(synk): attention dropout / output dropout are identity in eval mode.
        ho = jnp.dot(w, v, preferred_element_type=jnp.float32)                 # (TQ, hs)

        # Per-head accumulated output projection (sublane-aligned wp slice);
        # avoids the unaligned 64-lane head-output concat entirely.
        out_acc = out_acc + jnp.dot(ho.astype(jnp.bfloat16), wp_ref[lo:hi, :],
                                    preferred_element_type=jnp.float32)

    o_ref[...] = (out_acc + bias_ref[...]).astype(o_ref.dtype)


def prepare_params(wq, wk, wv, w_proj, b_proj):
    """Host-side weight prep (run ONCE, hoisted out of the per-call path).

    wq, wk, wv: (N_HEAD, HEAD_SIZ, N_EMB)  -- per-head Linear weights (out, in).
    w_proj:     (N_EMB, N_HEAD * HEAD_SIZ) -- projection.weight (out, in).
    b_proj:     (N_EMB,)                   -- projection.bias.
    """
    scale = jnp.float32(HEAD_SIZ) ** -0.5

    def fold_heads(w):                                    # (H, hs, C) -> (C, H*hs)
        return jnp.transpose(w, (2, 0, 1)).reshape(N_EMB, N_HEAD * HEAD_SIZ)

    wq_f = (fold_heads(wq) * scale).astype(jnp.bfloat16)                 # (C, C)
    wkv_f = jnp.concatenate([fold_heads(wk), fold_heads(wv)],
                            axis=1).astype(jnp.bfloat16)                 # (C, 2C)
    wp = jnp.transpose(w_proj, (1, 0)).astype(jnp.bfloat16)              # (C, C)
    bias = b_proj.reshape(1, N_EMB).astype(jnp.float32)
    return wq_f, wkv_f, wp, bias


def multi_head_attention(x, params):
    """x: (B, T, N_EMB) float32; params from prepare_params(). Returns (B, T, N_EMB) f32."""
    wq_f, wkv_f, wp, bias = params
    B, T, C = x.shape
    assert C == N_EMB and T <= BLOCK_SIZ

    # Pad T to a lane-dense multiple of 128; padded key columns sit above the causal
    # diagonal for every real query row, so results are exact after slicing.
    T_pad = ((T + TQ - 1) // TQ) * TQ
    nQ = T_pad // TQ
    if T_pad != T:
        x = jnp.pad(x, ((0, 0), (0, T_pad - T), (0, 0)))
    x_bf = x.astype(jnp.bfloat16)

    out = pl.pallas_call(
        _mha_kernel,
        # NOTE: output kept f32 to match the PyTorch module; switch to bf16 if the
        # consumer (residual add / LayerNorm) tolerates it to halve HBM writeback.
        out_shape=jax.ShapeDtypeStruct((B, T_pad, N_EMB), jnp.float32),
        grid_spec=pltpu.PrefetchScalarGridSpec(
            num_scalar_prefetch=0,
            grid=(B, nQ),
            in_specs=[
                pl.BlockSpec((None, T_pad, N_EMB), lambda b, qi: (b, 0, 0)),  # x (full seq)
                pl.BlockSpec((N_EMB, N_EMB), lambda b, qi: (0, 0)),           # wq  (resident)
                pl.BlockSpec((N_EMB, 2 * N_EMB), lambda b, qi: (0, 0)),       # wkv (resident)
                pl.BlockSpec((N_EMB, N_EMB), lambda b, qi: (0, 0)),           # wp  (resident)
                pl.BlockSpec((1, N_EMB), lambda b, qi: (0, 0)),               # bias(resident)
            ],
            out_specs=pl.BlockSpec((None, TQ, N_EMB), lambda b, qi: (b, qi, 0)),
        ),
        compiler_params=pltpu.CompilerParams(
            dimension_semantics=("parallel", "parallel")),
    )(x_bf, wq_f, wkv_f, wp, bias)
    return out[:, :T, :]


def _reference(x, wq, wk, wv, w_proj, b_proj):
    """Pure-JAX fp32 reference mirroring the PyTorch forward (dropout = identity)."""
    B, T, C = x.shape
    outs = []
    for h in range(N_HEAD):
        q = x @ wq[h].T
        k = x @ wk[h].T
        v = x @ wv[h].T
        s = (q @ jnp.swapaxes(k, -2, -1)) * (HEAD_SIZ ** -0.5)
        mask = jnp.tril(jnp.ones((T, T), dtype=bool))
        s = jnp.where(mask, s, -jnp.inf)
        w = jax.nn.softmax(s, axis=-1)
        outs.append(w @ v)
    cat = jnp.concatenate(outs, axis=-1)
    return cat @ w_proj.T + b_proj


if __name__ == "__main__":
    key = jax.random.PRNGKey(0)
    kx, kq, kk, kv, kp, kb = jax.random.split(key, 6)

    B, T = 2, 128
    x = jax.random.normal(kx, (B, T, N_EMB), dtype=jnp.float32)

    # Deterministic synthetic parameters (PyTorch Linear weight shape = (out, in)).
    scale_in = 1.0 / (N_EMB ** 0.5)
    wq = jax.random.normal(kq, (N_HEAD, HEAD_SIZ, N_EMB), jnp.float32) * scale_in
    wk = jax.random.normal(kk, (N_HEAD, HEAD_SIZ, N_EMB), jnp.float32) * scale_in
    wv = jax.random.normal(kv, (N_HEAD, HEAD_SIZ, N_EMB), jnp.float32) * scale_in
    w_proj = jax.random.normal(kp, (N_EMB, N_HEAD * HEAD_SIZ), jnp.float32) * scale_in
    b_proj = jax.random.normal(kb, (N_EMB,), jnp.float32) * 0.01

    params = prepare_params(wq, wk, wv, w_proj, b_proj)   # hoisted, done once

    out = multi_head_attention(x, params)
    out = jax.block_until_ready(out)

    ref = _reference(x, wq, wk, wv, w_proj, b_proj)
    assert out.shape == (B, T, N_EMB)
    # bf16 MXU operands with fp32 accumulation -> looser tolerance vs fp32 reference.
    assert jnp.allclose(out, ref, atol=5e-2, rtol=5e-2), "mismatch vs reference"

    print("KERNEL_OK")
</pallas_src>

<mosaic_0001>
module attributes {stable_mosaic.version = 11 : i64} {
  func.func @_mha_kernel(%arg0: i32, %arg1: i32, %arg2: memref<1x128x384xbf16, #tpu.memory_space<vmem>>, %arg3: memref<384x384xbf16, #tpu.memory_space<vmem>>, %arg4: memref<384x768xbf16, #tpu.memory_space<vmem>>, %arg5: memref<384x384xbf16, #tpu.memory_space<vmem>>, %arg6: memref<1x384xf32, #tpu.memory_space<vmem>>, %arg7: memref<1x128x384xf32, #tpu.memory_space<vmem>>) attributes {dimension_semantics = [#tpu.dimension_semantics<parallel>, #tpu.dimension_semantics<parallel>], iteration_bounds = array<i64: 2, 1>, scalar_prefetch = 0 : i64, scratch_operands = 0 : i64, tpu.core_type = #tpu.core_type<tc>, window_params = [{transform_indices = @transform_0, window_bounds = array<i64: 1, 128, 384>}, {pipeline_mode = #tpu.pipeline_mode<synchronous>, transform_indices = @transform_1, window_bounds = array<i64: 384, 384>}, {pipeline_mode = #tpu.pipeline_mode<synchronous>, transform_indices = @transform_2, window_bounds = array<i64: 384, 768>}, {pipeline_mode = #tpu.pipeline_mode<synchronous>, transform_indices = @transform_3, window_bounds = array<i64: 384, 384>}, {pipeline_mode = #tpu.pipeline_mode<synchronous>, transform_indices = @transform_4, window_bounds = array<i64: 1, 384>}, {transform_indices = @transform_5, window_bounds = array<i64: 1, 128, 384>}]} {
    %c128_i32 = arith.constant 128 : i32
    %0 = arith.muli %arg1, %c128_i32 : i32
    %1 = tpu.assume_multiple %0, 128 : i32
    %c0 = arith.constant 0 : index
    %c0_0 = arith.constant 0 : index
    %c0_1 = arith.constant 0 : index
    %2 = vector.load %arg2[%c0, %c0_0, %c0_1] : memref<1x128x384xbf16, #tpu.memory_space<vmem>>, vector<1x128x384xbf16>
    %3 = vector.shape_cast %2 : vector<1x128x384xbf16> to vector<128x384xbf16>
    %c0_2 = arith.constant 0 : index
    %4 = arith.index_cast %1 : i32 to index
    %c0_3 = arith.constant 0 : index
    %5 = vector.load %arg2[%c0_2, %4, %c0_3] : memref<1x128x384xbf16, #tpu.memory_space<vmem>>, vector<1x128x384xbf16>
    %6 = vector.shape_cast %5 : vector<1x128x384xbf16> to vector<128x384xbf16>
    %c0_4 = arith.constant 0 : index
    %c0_5 = arith.constant 0 : index
    %7 = vector.load %arg3[%c0_4, %c0_5] : memref<384x384xbf16, #tpu.memory_space<vmem>>, vector<384x384xbf16>
    %cst = arith.constant dense<0.000000e+00> : vector<128x384xf32>
    %8 = tpu.matmul %6, %7, %cst {dimension_numbers = #tpu.dot_dimension_numbers<[1], [0], [0], [1], [0, 0, 1, 1], [], []>} : vector<128x384xbf16>, vector<384x384xbf16>, vector<128x384xf32> -> vector<128x384xf32>
    %9 = arith.truncf %8 : vector<128x384xf32> to vector<128x384xbf16>
    %c0_6 = arith.constant 0 : index
    %c0_7 = arith.constant 0 : index
    %10 = vector.load %arg4[%c0_6, %c0_7] : memref<384x768xbf16, #tpu.memory_space<vmem>>, vector<384x768xbf16>
    %cst_8 = arith.constant dense<0.000000e+00> : vector<128x768xf32>
    %11 = tpu.matmul %3, %10, %cst_8 {dimension_numbers = #tpu.dot_dimension_numbers<[1], [0], [0], [1], [0, 0, 1, 1], [], []>} : vector<128x384xbf16>, vector<384x768xbf16>, vector<128x768xf32> -> vector<128x768xf32>
    %12 = arith.truncf %11 : vector<128x768xf32> to vector<128x768xbf16>
    %13 = tpu.iota {dimensions = array<i32: 0>} : vector<128x128xi32>
    %14 = vector.broadcast %1 : i32 to vector<128x128xi32>
    %15 = arith.addi %13, %14 : vector<128x128xi32>
    %16 = tpu.iota {dimensions = array<i32: 1>} : vector<128x128xi32>
    %17 = arith.cmpi sle, %16, %15 : vector<128x128xi32>
    %cst_9 = arith.constant 0.000000e+00 : f32
    %cst_10 = arith.constant -1.000000e+30 : f32
    %18 = vector.broadcast %cst_9 : f32 to vector<128x128xf32>
    %19 = vector.broadcast %cst_10 : f32 to vector<128x128xf32>
    %20 = arith.select %17, %18, %19 : vector<128x128xi1>, vector<128x128xf32>
    %cst_11 = arith.constant 0.000000e+00 : f32
    %21 = vector.broadcast %cst_11 : f32 to vector<128x384xf32>
    %22 = vector.extract_strided_slice %9 {offsets = [0, 0], sizes = [128, 64], strides = [1, 1]} : vector<128x384xbf16> to vector<128x64xbf16>
    %23 = vector.extract_strided_slice %12 {offsets = [0, 0], sizes = [128, 64], strides = [1, 1]} : vector<128x768xbf16> to vector<128x64xbf16>
    %24 = vector.extract_strided_slice %12 {offsets = [0, 384], sizes = [128, 64], strides = [1, 1]} : vector<128x768xbf16> to vector<128x64xbf16>
    %cst_12 = arith.constant dense<0.000000e+00> : vector<128x128xf32>
    %25 = tpu.matmul %22, %23, %cst_12 {dimension_numbers = #tpu.dot_dimension_numbers<[1], [1], [0], [0], [0, 0, 1, 0], [], []>} : vector<128x64xbf16>, vector<128x64xbf16>, vector<128x128xf32> -> vector<128x128xf32>
    %26 = arith.addf %25, %20 : vector<128x128xf32>
    %cst_13 = arith.constant dense<0xFF800000> : vector<128xf32>
    %27 = vector.multi_reduction <maximumf>, %26, %cst_13 [1] : vector<128x128xf32> to vector<128xf32>
    %28 = vector.shape_cast %27 : vector<128xf32> to vector<128x1xf32>
    %29 = vector.broadcast %28 : vector<128x1xf32> to vector<128x128xf32>
    %30 = arith.subf %26, %29 : vector<128x128xf32>
    %31 = math.exp %30 : vector<128x128xf32>
    %cst_14 = arith.constant dense<0.000000e+00> : vector<128xf32>
    %32 = vector.multi_reduction <add>, %31, %cst_14 [1] : vector<128x128xf32> to vector<128xf32>
    %33 = vector.shape_cast %32 : vector<128xf32> to vector<128x1xf32>
    %34 = tpu.reciprocal %33 {approx = true} : vector<128x1xf32> -> vector<128x1xf32>
    %35 = vector.broadcast %34 : vector<128x1xf32> to vector<128x128xf32>
    %36 = arith.mulf %31, %35 : vector<128x128xf32>
    %37 = arith.truncf %36 : vector<128x128xf32> to vector<128x128xbf16>
    %cst_15 = arith.constant dense<0.000000e+00> : vector<128x64xf32>
    %38 = tpu.matmul %37, %24, %cst_15 {dimension_numbers = #tpu.dot_dimension_numbers<[1], [0], [0], [1], [0, 0, 1, 1], [], []>} : vector<128x128xbf16>, vector<128x64xbf16>, vector<128x64xf32> -> vector<128x64xf32>
    %39 = arith.truncf %38 : vector<128x64xf32> to vector<128x64xbf16>
    %c0_16 = arith.constant 0 : index
    %c0_17 = arith.constant 0 : index
    %40 = vector.load %arg5[%c0_16, %c0_17] : memref<384x384xbf16, #tpu.memory_space<vmem>>, vector<64x384xbf16>
    %cst_18 = arith.constant dense<0.000000e+00> : vector<128x384xf32>
    %41 = tpu.matmul %39, %40, %cst_18 {dimension_numbers = #tpu.dot_dimension_numbers<[1], [0], [0], [1], [0, 0, 1, 1], [], []>} : vector<128x64xbf16>, vector<64x384xbf16>, vector<128x384xf32> -> vector<128x384xf32>
    %42 = arith.addf %21, %41 : vector<128x384xf32>
    %43 = vector.extract_strided_slice %9 {offsets = [0, 64], sizes = [128, 64], strides = [1, 1]} : vector<128x384xbf16> to vector<128x64xbf16>
    %44 = vector.extract_strided_slice %12 {offsets = [0, 64], sizes = [128, 64], strides = [1, 1]} : vector<128x768xbf16> to vector<128x64xbf16>
    %45 = vector.extract_strided_slice %12 {offsets = [0, 448], sizes = [128, 64], strides = [1, 1]} : vector<128x768xbf16> to vector<128x64xbf16>
    %cst_19 = arith.constant dense<0.000000e+00> : vector<128x128xf32>
    %46 = tpu.matmul %43, %44, %cst_19 {dimension_numbers = #tpu.dot_dimension_numbers<[1], [1], [0], [0], [0, 0, 1, 0], [], []>} : vector<128x64xbf16>, vector<128x64xbf16>, vector<128x128xf32> -> vector<128x128xf32>
    %47 = arith.addf %46, %20 : vector<128x128xf32>
    %cst_20 = arith.constant dense<0xFF800000> : vector<128xf32>
    %48 = vector.multi_reduction <maximumf>, %47, %cst_20 [1] : vector<128x128xf32> to vector<128xf32>
    %49 = vector.shape_cast %48 : vector<128xf32> to vector<128x1xf32>
    %50 = vector.broadcast %49 : vector<128x1xf32> to vector<128x128xf32>
    %51 = arith.subf %47, %50 : vector<128x128xf32>
    %52 = math.exp %51 : vector<128x128xf32>
    %cst_21 = arith.constant dense<0.000000e+00> : vector<128xf32>
    %53 = vector.multi_reduction <add>, %52, %cst_21 [1] : vector<128x128xf32> to vector<128xf32>
    %54 = vector.shape_cast %53 : vector<128xf32> to vector<128x1xf32>
    %55 = tpu.reciprocal %54 {approx = true} : vector<128x1xf32> -> vector<128x1xf32>
    %56 = vector.broadcast %55 : vector<128x1xf32> to vector<128x128xf32>
    %57 = arith.mulf %52, %56 : vector<128x128xf32>
    %58 = arith.truncf %57 : vector<128x128xf32> to vector<128x128xbf16>
    %cst_22 = arith.constant dense<0.000000e+00> : vector<128x64xf32>
    %59 = tpu.matmul %58, %45, %cst_22 {dimension_numbers = #tpu.dot_dimension_numbers<[1], [0], [0], [1], [0, 0, 1, 1], [], []>} : vector<128x128xbf16>, vector<128x64xbf16>, vector<128x64xf32> -> vector<128x64xf32>
    %60 = arith.truncf %59 : vector<128x64xf32> to vector<128x64xbf16>
    %c64 = arith.constant 64 : index
    %c0_23 = arith.constant 0 : index
    %61 = vector.load %arg5[%c64, %c0_23] : memref<384x384xbf16, #tpu.memory_space<vmem>>, vector<64x384xbf16>
    %cst_24 = arith.constant dense<0.000000e+00> : vector<128x384xf32>
    %62 = tpu.matmul %60, %61, %cst_24 {dimension_numbers = #tpu.dot_dimension_numbers<[1], [0], [0], [1], [0, 0, 1, 1], [], []>} : vector<128x64xbf16>, vector<64x384xbf16>, vector<128x384xf32> -> vector<128x384xf32>
    %63 = arith.addf %42, %62 : vector<128x384xf32>
    %64 = vector.extract_strided_slice %9 {offsets = [0, 128], sizes = [128, 64], strides = [1, 1]} : vector<128x384xbf16> to vector<128x64xbf16>
    %65 = vector.extract_strided_slice %12 {offsets = [0, 128], sizes = [128, 64], strides = [1, 1]} : vector<128x768xbf16> to vector<128x64xbf16>
    %66 = vector.extract_strided_slice %12 {offsets = [0, 512], sizes = [128, 64], strides = [1, 1]} : vector<128x768xbf16> to vector<128x64xbf16>
    %cst_25 = arith.constant dense<0.000000e+00> : vector<128x128xf32>
    %67 = tpu.matmul %64, %65, %cst_25 {dimension_numbers = #tpu.dot_dimension_numbers<[1], [1], [0], [0], [0, 0, 1, 0], [], []>} : vector<128x64xbf16>, vector<128x64xbf16>, vector<128x128xf32> -> vector<128x128xf32>
    %68 = arith.addf %67, %20 : vector<128x128xf32>
    %cst_26 = arith.constant dense<0xFF800000> : vector<128xf32>
    %69 = vector.multi_reduction <maximumf>, %68, %cst_26 [1] : vector<128x128xf32> to vector<128xf32>
    %70 = vector.shape_cast %69 : vector<128xf32> to vector<128x1xf32>
    %71 = vector.broadcast %70 : vector<128x1xf32> to vector<128x128xf32>
    %72 = arith.subf %68, %71 : vector<128x128xf32>
    %73 = math.exp %72 : vector<128x128xf32>
    %cst_27 = arith.constant dense<0.000000e+00> : vector<128xf32>
    %74 = vector.multi_reduction <add>, %73, %cst_27 [1] : vector<128x128xf32> to vector<128xf32>
    %75 = vector.shape_cast %74 : vector<128xf32> to vector<128x1xf32>
    %76 = tpu.reciprocal %75 {approx = true} : vector<128x1xf32> -> vector<128x1xf32>
    %77 = vector.broadcast %76 : vector<128x1xf32> to vector<128x128xf32>
    %78 = arith.mulf %73, %77 : vector<128x128xf32>
    %79 = arith.truncf %78 : vector<128x128xf32> to vector<128x128xbf16>
    %cst_28 = arith.constant dense<0.000000e+00> : vector<128x64xf32>
    %80 = tpu.matmul %79, %66, %cst_28 {dimension_numbers = #tpu.dot_dimension_numbers<[1], [0], [0], [1], [0, 0, 1, 1], [], []>} : vector<128x128xbf16>, vector<128x64xbf16>, vector<128x64xf32> -> vector<128x64xf32>
    %81 = arith.truncf %80 : vector<128x64xf32> to vector<128x64xbf16>
    %c128 = arith.constant 128 : index
    %c0_29 = arith.constant 0 : index
    %82 = vector.load %arg5[%c128, %c0_29] : memref<384x384xbf16, #tpu.memory_space<vmem>>, vector<64x384xbf16>
    %cst_30 = arith.constant dense<0.000000e+00> : vector<128x384xf32>
    %83 = tpu.matmul %81, %82, %cst_30 {dimension_numbers = #tpu.dot_dimension_numbers<[1], [0], [0], [1], [0, 0, 1, 1], [], []>} : vector<128x64xbf16>, vector<64x384xbf16>, vector<128x384xf32> -> vector<128x384xf32>
    %84 = arith.addf %63, %83 : vector<128x384xf32>
    %85 = vector.extract_strided_slice %9 {offsets = [0, 192], sizes = [128, 64], strides = [1, 1]} : vector<128x384xbf16> to vector<128x64xbf16>
    %86 = vector.extract_strided_slice %12 {offsets = [0, 192], sizes = [128, 64], strides = [1, 1]} : vector<128x768xbf16> to vector<128x64xbf16>
    %87 = vector.extract_strided_slice %12 {offsets = [0, 576], sizes = [128, 64], strides = [1, 1]} : vector<128x768xbf16> to vector<128x64xbf16>
    %cst_31 = arith.constant dense<0.000000e+00> : vector<128x128xf32>
    %88 = tpu.matmul %85, %86, %cst_31 {dimension_numbers = #tpu.dot_dimension_numbers<[1], [1], [0], [0], [0, 0, 1, 0], [], []>} : vector<128x64xbf16>, vector<128x64xbf16>, vector<128x128xf32> -> vector<128x128xf32>
    %89 = arith.addf %88, %20 : vector<128x128xf32>
    %cst_32 = arith.constant dense<0xFF800000> : vector<128xf32>
    %90 = vector.multi_reduction <maximumf>, %89, %cst_32 [1] : vector<128x128xf32> to vector<128xf32>
    %91 = vector.shape_cast %90 : vector<128xf32> to vector<128x1xf32>
    %92 = vector.broadcast %91 : vector<128x1xf32> to vector<128x128xf32>
    %93 = arith.subf %89, %92 : vector<128x128xf32>
    %94 = math.exp %93 : vector<128x128xf32>
    %cst_33 = arith.constant dense<0.000000e+00> : vector<128xf32>
    %95 = vector.multi_reduction <add>, %94, %cst_33 [1] : vector<128x128xf32> to vector<128xf32>
    %96 = vector.shape_cast %95 : vector<128xf32> to vector<128x1xf32>
    %97 = tpu.reciprocal %96 {approx = true} : vector<128x1xf32> -> vector<128x1xf32>
    %98 = vector.broadcast %97 : vector<128x1xf32> to vector<128x128xf32>
    %99 = arith.mulf %94, %98 : vector<128x128xf32>
    %100 = arith.truncf %99 : vector<128x128xf32> to vector<128x128xbf16>
    %cst_34 = arith.constant dense<0.000000e+00> : vector<128x64xf32>
    %101 = tpu.matmul %100, %87, %cst_34 {dimension_numbers = #tpu.dot_dimension_numbers<[1], [0], [0], [1], [0, 0, 1, 1], [], []>} : vector<128x128xbf16>, vector<128x64xbf16>, vector<128x64xf32> -> vector<128x64xf32>
    %102 = arith.truncf %101 : vector<128x64xf32> to vector<128x64xbf16>
    %c192 = arith.constant 192 : index
    %c0_35 = arith.constant 0 : index
    %103 = vector.load %arg5[%c192, %c0_35] : memref<384x384xbf16, #tpu.memory_space<vmem>>, vector<64x384xbf16>
    %cst_36 = arith.constant dense<0.000000e+00> : vector<128x384xf32>
    %104 = tpu.matmul %102, %103, %cst_36 {dimension_numbers = #tpu.dot_dimension_numbers<[1], [0], [0], [1], [0, 0, 1, 1], [], []>} : vector<128x64xbf16>, vector<64x384xbf16>, vector<128x384xf32> -> vector<128x384xf32>
    %105 = arith.addf %84, %104 : vector<128x384xf32>
    %106 = vector.extract_strided_slice %9 {offsets = [0, 256], sizes = [128, 64], strides = [1, 1]} : vector<128x384xbf16> to vector<128x64xbf16>
    %107 = vector.extract_strided_slice %12 {offsets = [0, 256], sizes = [128, 64], strides = [1, 1]} : vector<128x768xbf16> to vector<128x64xbf16>
    %108 = vector.extract_strided_slice %12 {offsets = [0, 640], sizes = [128, 64], strides = [1, 1]} : vector<128x768xbf16> to vector<128x64xbf16>
    %cst_37 = arith.constant dense<0.000000e+00> : vector<128x128xf32>
    %109 = tpu.matmul %106, %107, %cst_37 {dimension_numbers = #tpu.dot_dimension_numbers<[1], [1], [0], [0], [0, 0, 1, 0], [], []>} : vector<128x64xbf16>, vector<128x64xbf16>, vector<128x128xf32> -> vector<128x128xf32>
    %110 = arith.addf %109, %20 : vector<128x128xf32>
    %cst_38 = arith.constant dense<0xFF800000> : vector<128xf32>
    %111 = vector.multi_reduction <maximumf>, %110, %cst_38 [1] : vector<128x128xf32> to vector<128xf32>
    %112 = vector.shape_cast %111 : vector<128xf32> to vector<128x1xf32>
    %113 = vector.broadcast %112 : vector<128x1xf32> to vector<128x128xf32>
    %114 = arith.subf %110, %113 : vector<128x128xf32>
    %115 = math.exp %114 : vector<128x128xf32>
    %cst_39 = arith.constant dense<0.000000e+00> : vector<128xf32>
    %116 = vector.multi_reduction <add>, %115, %cst_39 [1] : vector<128x128xf32> to vector<128xf32>
    %117 = vector.shape_cast %116 : vector<128xf32> to vector<128x1xf32>
    %118 = tpu.reciprocal %117 {approx = true} : vector<128x1xf32> -> vector<128x1xf32>
    %119 = vector.broadcast %118 : vector<128x1xf32> to vector<128x128xf32>
    %120 = arith.mulf %115, %119 : vector<128x128xf32>
    %121 = arith.truncf %120 : vector<128x128xf32> to vector<128x128xbf16>
    %cst_40 = arith.constant dense<0.000000e+00> : vector<128x64xf32>
    %122 = tpu.matmul %121, %108, %cst_40 {dimension_numbers = #tpu.dot_dimension_numbers<[1], [0], [0], [1], [0, 0, 1, 1], [], []>} : vector<128x128xbf16>, vector<128x64xbf16>, vector<128x64xf32> -> vector<128x64xf32>
    %123 = arith.truncf %122 : vector<128x64xf32> to vector<128x64xbf16>
    %c256 = arith.constant 256 : index
    %c0_41 = arith.constant 0 : index
    %124 = vector.load %arg5[%c256, %c0_41] : memref<384x384xbf16, #tpu.memory_space<vmem>>, vector<64x384xbf16>
    %cst_42 = arith.constant dense<0.000000e+00> : vector<128x384xf32>
    %125 = tpu.matmul %123, %124, %cst_42 {dimension_numbers = #tpu.dot_dimension_numbers<[1], [0], [0], [1], [0, 0, 1, 1], [], []>} : vector<128x64xbf16>, vector<64x384xbf16>, vector<128x384xf32> -> vector<128x384xf32>
    %126 = arith.addf %105, %125 : vector<128x384xf32>
    %127 = vector.extract_strided_slice %9 {offsets = [0, 320], sizes = [128, 64], strides = [1, 1]} : vector<128x384xbf16> to vector<128x64xbf16>
    %128 = vector.extract_strided_slice %12 {offsets = [0, 320], sizes = [128, 64], strides = [1, 1]} : vector<128x768xbf16> to vector<128x64xbf16>
    %129 = vector.extract_strided_slice %12 {offsets = [0, 704], sizes = [128, 64], strides = [1, 1]} : vector<128x768xbf16> to vector<128x64xbf16>
    %cst_43 = arith.constant dense<0.000000e+00> : vector<128x128xf32>
    %130 = tpu.matmul %127, %128, %cst_43 {dimension_numbers = #tpu.dot_dimension_numbers<[1], [1], [0], [0], [0, 0, 1, 0], [], []>} : vector<128x64xbf16>, vector<128x64xbf16>, vector<128x128xf32> -> vector<128x128xf32>
    %131 = arith.addf %130, %20 : vector<128x128xf32>
    %cst_44 = arith.constant dense<0xFF800000> : vector<128xf32>
    %132 = vector.multi_reduction <maximumf>, %131, %cst_44 [1] : vector<128x128xf32> to vector<128xf32>
    %133 = vector.shape_cast %132 : vector<128xf32> to vector<128x1xf32>
    %134 = vector.broadcast %133 : vector<128x1xf32> to vector<128x128xf32>
    %135 = arith.subf %131, %134 : vector<128x128xf32>
    %136 = math.exp %135 : vector<128x128xf32>
    %cst_45 = arith.constant dense<0.000000e+00> : vector<128xf32>
    %137 = vector.multi_reduction <add>, %136, %cst_45 [1] : vector<128x128xf32> to vector<128xf32>
    %138 = vector.shape_cast %137 : vector<128xf32> to vector<128x1xf32>
    %139 = tpu.reciprocal %138 {approx = true} : vector<128x1xf32> -> vector<128x1xf32>
    %140 = vector.broadcast %139 : vector<128x1xf32> to vector<128x128xf32>
    %141 = arith.mulf %136, %140 : vector<128x128xf32>
    %142 = arith.truncf %141 : vector<128x128xf32> to vector<128x128xbf16>
    %cst_46 = arith.constant dense<0.000000e+00> : vector<128x64xf32>
    %143 = tpu.matmul %142, %129, %cst_46 {dimension_numbers = #tpu.dot_dimension_numbers<[1], [0], [0], [1], [0, 0, 1, 1], [], []>} : vector<128x128xbf16>, vector<128x64xbf16>, vector<128x64xf32> -> vector<128x64xf32>
    %144 = arith.truncf %143 : vector<128x64xf32> to vector<128x64xbf16>
    %c320 = arith.constant 320 : index
    %c0_47 = arith.constant 0 : index
    %145 = vector.load %arg5[%c320, %c0_47] : memref<384x384xbf16, #tpu.memory_space<vmem>>, vector<64x384xbf16>
    %cst_48 = arith.constant dense<0.000000e+00> : vector<128x384xf32>
    %146 = tpu.matmul %144, %145, %cst_48 {dimension_numbers = #tpu.dot_dimension_numbers<[1], [0], [0], [1], [0, 0, 1, 1], [], []>} : vector<128x64xbf16>, vector<64x384xbf16>, vector<128x384xf32> -> vector<128x384xf32>
    %147 = arith.addf %126, %146 : vector<128x384xf32>
    %c0_49 = arith.constant 0 : index
    %c0_50 = arith.constant 0 : index
    %148 = vector.load %arg6[%c0_49, %c0_50] : memref<1x384xf32, #tpu.memory_space<vmem>>, vector<1x384xf32>
    %149 = vector.broadcast %148 : vector<1x384xf32> to vector<128x384xf32>
    %150 = arith.addf %147, %149 : vector<128x384xf32>
    %c0_51 = arith.constant 0 : index
    %c0_52 = arith.constant 0 : index
    %c0_53 = arith.constant 0 : index
    %151 = vector.load %arg7[%c0_51, %c0_52, %c0_53] : memref<1x128x384xf32, #tpu.memory_space<vmem>>, vector<1x128x384xf32>
    %152 = vector.shape_cast %151 : vector<1x128x384xf32> to vector<128x384xf32>
    %153 = vector.shape_cast %150 : vector<128x384xf32> to vector<1x128x384xf32>
    tpu.vector_store %arg7[%c0_51, %c0_52, %c0_53], %153 {strides = array<i32>} : memref<1x128x384xf32, #tpu.memory_space<vmem>>, vector<1x128x384xf32>,
    return
  }
  func.func @transform_0(%arg0: i32, %arg1: i32) -> (i32, i32, i32) {
    %c0_i32 = arith.constant 0 : i32
    %c0_i32_0 = arith.constant 0 : i32
    %c0_i32_1 = arith.constant 0 : i32
    return %arg0, %c0_i32, %c0_i32_0 : i32, i32, i32
  }
  func.func @transform_1(%arg0: i32, %arg1: i32) -> (i32, i32) {
    %c0_i32 = arith.constant 0 : i32
    %c0_i32_0 = arith.constant 0 : i32
    %c0_i32_1 = arith.constant 0 : i32
    return %c0_i32, %c0_i32_0 : i32, i32
  }
  func.func @transform_2(%arg0: i32, %arg1: i32) -> (i32, i32) {
    %c0_i32 = arith.constant 0 : i32
    %c0_i32_0 = arith.constant 0 : i32
    %c0_i32_1 = arith.constant 0 : i32
    return %c0_i32, %c0_i32_0 : i32, i32
  }
  func.func @transform_3(%arg0: i32, %arg1: i32) -> (i32, i32) {
    %c0_i32 = arith.constant 0 : i32
    %c0_i32_0 = arith.constant 0 : i32
    %c0_i32_1 = arith.constant 0 : i32
    return %c0_i32, %c0_i32_0 : i32, i32
  }
  func.func @transform_4(%arg0: i32, %arg1: i32) -> (i32, i32) {
    %c0_i32 = arith.constant 0 : i32
    %c0_i32_0 = arith.constant 0 : i32
    %c0_i32_1 = arith.constant 0 : i32
    return %c0_i32, %c0_i32_0 : i32, i32
  }
  func.func @transform_5(%arg0: i32, %arg1: i32) -> (i32, i32, i32) {
    %c0_i32 = arith.constant 0 : i32
    %c0_i32_0 = arith.constant 0 : i32
    return %arg0, %arg1, %c0_i32 : i32, i32, i32
  }
}

</mosaic_0001>

<bundles_post_ra>
// kernel: tpu_custom_call.1
= control target key start
LH: loop header
LB: loop body
LE: loop exit
PB: predicated region body
PF: predicated region fallthrough
CT: control target
= control target key end

     0   :  { %s13502_s0 = inlined_call_operand.hbm [shape: bf16[2,128,384], index: 0, kind: input, shape index: {}]   ;;  %s13503_s1 = inlined_call_operand.hbm [shape: bf16[384,384], index: 1, kind: input, shape index: {}]   ;;  %s13504_s2 = inlined_call_operand.hbm [shape: bf16[384,768], index: 2, kind: input, shape index: {}]   ;;  %s13505_s3 = inlined_call_operand.hbm [shape: bf16[384,384], index: 3, kind: input, shape index: {}]   ;;  %s13506_s4 = inlined_call_operand.vmem [shape: f32[1,384], index: 4, kind: input, shape index: {}]   ;;  %s13507_s5 = inlined_call_operand.hbm [shape: f32[2,128,384], index: 5, kind: output, shape index: {}]  }
   0x1   :  { %13599 = sst [smem:[#allocation76_spill]] %s13503_s1 }
   0x2   :  { %10 = vsyncpa [#allocation3], 0 }
   0x3   :  { %12 = vsyncpa [#allocation3 + $0x1], 0 }
   0x4   :  { %13 = vsyncpa [#allocation6], 0 }
   0x5   :  { %14 = vsyncpa [#allocation9], 0 }
   0x6   :  { %15 = vsyncpa [#allocation4], 0 }
   0x7   :  { %17 = vsyncpa [#allocation4 + $0x1], 0  ;;  %s11205_s18 = smov 0   ;;  %s11207_s19 = smov 0  }
   0x8   :  { %s11209_s20 = smov 0   ;;  %s11211_s21 = smov 0  }
   0x9   :  { %s11213_s22 = smov 0   ;;  %s11215_s23 = smov 0  }
   0xa LB: > { %s8185_s24 = sadd.s32 4294967295, %s11159_s23   ;;  %s8186_s25 = sadd.s32 4294967294, %s11159_s23   ;;  %s11159_s23 = sphi %s11215_s23, %s23_s23   ;;  %s11155_s22 = sphi %s11213_s22, %s13760_s22   ;;  %s11151_s21 = sphi %s11211_s21, %s13759_s21   ;;  %s11147_s20 = sphi %s11209_s20, %s13758_s20   ;;  %s11143_s19 = sphi %s11207_s19, %s13757_s19   ;;  %s11139_s18 = sphi %s11205_s18, %s13756_s18  }
   0xb   : > { %p55_p0 = scmp.ne.s32.totalorder %s11143_s19, %s11139_s18  ;;  %p11239_p1 = scmp.eq.s32.totalorder %s8185_s24, 0 }
   0xc   : > { %p11243_p2 = scmp.eq.s32.totalorder %s8185_s24, 1  ;;  %p171_p3 = scmp.eq.s32.totalorder %s8186_s25, 1 }
   0xd   : > { %s13600_s26 = scalar_select %p11239_p1, 1, 0 }
   0xe   : > { %s13601_s27 = scalar_select %p11243_p2, 1, 0 }
   0xf   : > { %p11249_p4 = por %p11239_p1, %p55_p0  ;;  %p8187_p5 = scmp.ge.s32.totalorder %s11159_s23, 1 }
  0x10   : > { %p11254_p6 = por %p171_p3, %p55_p0  ;;  %p178_p7 = scmp.lt.s32.totalorder %s11159_s23, 3 }
  0x11   : > { %s13602_s28 = scalar_select %p11249_p4, 1, 0 }
  0x12   : > { %s13603_s29 = scalar_select %p11254_p6, 1, 0 }
  0x13   : > { %p11259_p8 = pnand %p8187_p5, %p178_p7  ;;  %s11161_s6 = smov [#allocation5]  }
  0x14   : > { %13604 = sst [smem:[#allocation15_spill]] %s13603_s29  ;;  %s190_s7 = sshll.u32 %s11161_s6, 4  ;;  %s11263_s7 = int_to_ptr.vmem [resolvable:$true] %s190_s7 }
  0x15   : > { %s13605_s30 = scalar_select %p11259_p8, 1, 0 }
  0x16   : > { %p10021_p9 = pneg %p11259_p8  ;;  %s11162_s9 = smov [#allocation7]  }
  0x17   : > { %s203_s10 = sshll.u32 %s11162_s9, 4  ;;  %s13607_s1 = sld [smem:[#allocation76_spill]]  ;;  %s11274_s10 = int_to_ptr.vmem [resolvable:$true] %s203_s10 }
  0x18   : > { %p11270_p11 = pnand %p10021_p9, %p11239_p1 }
  0x1a   : > { %p11284_p13 = pneg %p11270_p11 }
  0x1d   : > { %s10955_s13 = scalar_lea.hbm %s13607_s1, 9216 }
  0x1e   : > { %p10956_p12 = scmp.ne.s32.totalorder %s13607_s1, %s10955_s13  ;;  %p10962_p5 = scmp.lt.u32.totalorder %s10955_s13, %s13607_s1 }
  0x20   : > { %p10958_p0 = pnand %p11284_p13, %p10956_p12 }
  0x22   : > { %p10959_p3 = pneg %p10958_p0 }
  0x24   : > { %p10964_p7 = pnand %p10962_p5, %p10959_p3 }
  0x26   : > { %10967 = shalt.err (!%p10964_p7)
}
  0x27   : > { %s10968_s25 = scalar_lea.vmem %s11263_s7, 9216  ;;  %p10976_p1 = scmp.lt.s32.totalorder %s11263_s7, %s11263_s7 }
  0x28   : > { %p10969_p9 = scmp.ne.s32.totalorder %s11263_s7, %s10968_s25  ;;  %p10977_p4 = scmp.lt.s32.totalorder %s10968_s25, %s10968_s25 }
  0x2a   : > { %p10971_p10 = pnand %p10969_p9, %p11284_p13  ;;  %p10978_p12 = por %p10977_p4, %p10976_p1 }
  0x2c   : > { %p10972_p6 = pneg %p10971_p10 }
  0x2e   : > { %p10979_p0 = pnand %p10978_p12, %p10972_p6 }
  0x30   : > { %10982 = shalt.err (!%p10979_p0)
}
  0x31   : > { %s13512_s6 = smov 192   ;;  %s13514_s9 = smov 12  }
  0x32   : > { %10024 = dma.hbm_to_vmem [thread:$0]  (!%p11270_p11), %s13607_s1, 9216, %s11263_s7, [#allocation6], %s13512_s6, %s13512_s6, %s13514_s9  }
  0x33   : > { %s10983_s15 = scalar_lea.hbm %s13504_s2, 18432 }
  0x34   : > { %p10984_p1 = scmp.ne.s32.totalorder %s13504_s2, %s10983_s15  ;;  %p10990_p10 = scmp.lt.u32.totalorder %s10983_s15, %s13504_s2 }
  0x36   : > { %p10986_p4 = pnand %p10984_p1, %p11284_p13 }
  0x38   : > { %p10987_p6 = pneg %p10986_p4 }
  0x3a   : > { %p10992_p3 = pnand %p10990_p10, %p10987_p6 }
  0x3c   : > { %10995 = shalt.err (!%p10992_p3)
}
  0x3d   : > { %s10996_s7 = scalar_lea.vmem %s11274_s10, 18432  ;;  %p11004_p12 = scmp.lt.s32.totalorder %s11274_s10, %s11274_s10 }
  0x3e   : > { %p10997_p5 = scmp.ne.s32.totalorder %s11274_s10, %s10996_s7  ;;  %p11005_p0 = scmp.lt.s32.totalorder %s10996_s7, %s10996_s7 }
  0x40   : > { %p10999_p7 = pnand %p10997_p5, %p11284_p13  ;;  %p11006_p1 = por %p11005_p0, %p11004_p12 }
  0x42   : > { %p11000_p9 = pneg %p10999_p7 }
  0x44   : > { %p11007_p4 = pnand %p11006_p1, %p11000_p9 }
  0x46   : > { %11010 = shalt.err (!%p11007_p4)
}
  0x47   : > { %s11165_s11 = smov 384   ;;  %s11166_s29 = smov 24  }
  0x48   : > { %10027 = dma.hbm_to_vmem [thread:$0]  (!%p11270_p11), %s13504_s2, 18432, %s11274_s10, [#allocation6], %s11165_s11, %s11165_s11, %s11166_s29  }
  0x49   : > { %s11167_s14 = smov [#allocation8]   ;;  %s11011_s25 = scalar_lea.hbm %s13505_s3, 9216 }
  0x4a   : > { %s216_s15 = sshll.u32 %s11167_s14, 4  ;;  %p11012_p6 = scmp.ne.s32.totalorder %s13505_s3, %s11011_s25  ;;  %s217_s15 = int_to_ptr.vmem [resolvable:$true] %s216_s15 }
  0x4b   : > { %p11018_p5 = scmp.lt.u32.totalorder %s11011_s25, %s13505_s3 }
  0x4c   : > { %p11014_p10 = pnand %p11012_p6, %p11284_p13 }
  0x4e   : > { %p11015_p3 = pneg %p11014_p10 }
  0x50   : > { %p11020_p7 = pnand %p11018_p5, %p11015_p3 }
  0x52   : > { %11023 = shalt.err (!%p11020_p7)
}
  0x53   : > { %s11024_s10 = scalar_lea.vmem %s217_s15, 9216  ;;  %p11032_p1 = scmp.lt.s32.totalorder %s217_s15, %s217_s15 }
  0x54   : > { %p11025_p9 = scmp.ne.s32.totalorder %s217_s15, %s11024_s10  ;;  %p11033_p4 = scmp.lt.s32.totalorder %s11024_s10, %s11024_s10 }
  0x56   : > { %p11027_p12 = pnand %p11025_p9, %p11284_p13  ;;  %p11034_p8 = por %p11033_p4, %p11032_p1 }
  0x58   : > { %p11028_p0 = pneg %p11027_p12 }
  0x5a   : > { %p11035_p2 = pnand %p11034_p8, %p11028_p0 }
  0x5c   : > { %11038 = shalt.err (!%p11035_p2)
}
  0x5d   : > { %s13609_s6 = smov 12   ;;  %s13610_s11 = smov 192  }
  0x5e   : > { %10030 = dma.hbm_to_vmem [thread:$0]  (!%p11270_p11), %s13505_s3, 9216, %s217_s15, [#allocation9], %s13610_s11, %s13610_s11, %s13609_s6  }
  0x5f   : > { %s35_s16 = sadd.s32 1, %s11155_s22  ;;  %s42_s8 = sadd.s32 1, %s11147_s20 }
  0x60   : > { %p37_p2 = scmp.ge.s32.totalorder %s35_s16, 2  ;;  %p49_p8 = scmp.ne.s32.totalorder %s11147_s20, %s11143_s19 }
  0x61   : > { %p50_p13 = scmp.eq.s32.totalorder %s11159_s23, 0  ;;  %p13611_p10 = scmp.ne.s32.totalorder %s13601_s27, 0 }
  0x62   : > { %s13762_s16 = smov (%p37_p2, %s35_s16), 0  ;;  %p10042_p5 = scmp.lt.s32.totalorder %s11159_s23, 2 }
  0x63   : > { %p51_p6 = por %p50_p13, %p49_p8  ;;  %p11361_p3 = por %p13611_p10, %p49_p8 }
  0x64   : > { %s39_s12 = ssub.s32 %s11155_s22, %s13762_s16  ;;  %s233_s13 = sand.u32 1, %s11147_s20  }
  0x65   : > { %p40_p7 = scmp.eq.s32.totalorder %s39_s12, 0  ;;  %s10000_s14 = smul.u32 192, %s233_s13 }
  0x66   : > { %s10001_s17 = smul.u32 3072, %s11155_s22  ;;  %p11373_p11 = pnand %p10042_p5, %p51_p6 }
  0x67   : > { %s11370_s15 = scalar_select %p40_p7, %s11147_s20, %s42_s8  }
  0x68   : > { %s237_s24 = scalar_lea.vmem [#allocation2], %s10000_s14  ;;  %s11380_s1 = scalar_lea.hbm %s13502_s0, %s10001_s17 }
  0x69   : > { %s244_s25 = sshll.u32 %s237_s24, 4  ;;  %s11384_s9 = scalar_lea.sflag [#allocation3], %s233_s13  ;;  %s11382_s25 = int_to_ptr.vmem [resolvable:$true] %s244_s25 }
  0x6a   : > { %s11039_s8 = scalar_lea.hbm %s11380_s1, 3072  ;;  %p11041_p12 = pneg %p11373_p11 }
  0x6b   : > { %p11040_p9 = scmp.ne.s32.totalorder %s11380_s1, %s11039_s8  ;;  %s11044_s17 = scalar_lea.hbm %s13502_s0, 6144 }
  0x6c   : > { %p11045_p4 = scmp.lt.u32.totalorder %s11380_s1, %s13502_s0  ;;  %p11046_p2 = scmp.lt.u32.totalorder %s11044_s17, %s11039_s8 }
  0x6d   : > { %p11042_p0 = pnand %p11041_p12, %p11040_p9  ;;  %p11048_p13 = scmp.lt.u32.totalorder %s11039_s8, %s11380_s1 }
  0x6e   : > { %p11047_p8 = por %p11046_p2, %p11045_p4 }
  0x6f   : > { %p11043_p1 = pneg %p11042_p0 }
  0x70   : > { %p11049_p6 = por %p11048_p13, %p11047_p8 }
  0x72   : > { %p11050_p10 = pnand %p11049_p6, %p11043_p1 }
  0x74   : > { %11053 = shalt.err (!%p11050_p10)
}
  0x75   : > { %s11054_s13 = scalar_lea.vmem %s11382_s25, 3072  ;;  %s11168_s27 = smov [#allocation2]  }
  0x76   : > { %p11055_p5 = scmp.ne.s32.totalorder %s11382_s25, %s11054_s13  ;;  %s11059_s12 = sshll.u32 %s11168_s27, 4  ;;  %s11060_s12 = int_to_ptr.vmem [resolvable:$false] %s11059_s12 }
  0x77   : > { %s11061_s14 = scalar_lea.vmem %s11060_s12, 6144  ;;  %p11062_p0 = scmp.lt.s32.totalorder %s11382_s25, %s11060_s12 }
  0x78   : > { %p11057_p7 = pnand %p11055_p5, %p11041_p12  ;;  %p11063_p4 = scmp.lt.s32.totalorder %s11061_s14, %s11054_s13 }
  0x7a   : > { %p11058_p9 = pneg %p11057_p7  ;;  %p11064_p2 = por %p11063_p4, %p11062_p0 }
  0x7c   : > { %p11065_p8 = pnand %p11064_p2, %p11058_p9 }
  0x7e   : > { %11068 = shalt.err (!%p11065_p8)
}
  0x7f   : > { %10034 = dma.hbm_to_vmem [thread:$0]  (!%p11373_p11), %s11380_s1, 3072, %s11382_s25, %s11384_s9, %s13610_s11, %s13610_s11, %s13609_s6  }
  0x80   : > { %p13614_p12 = scmp.ne.s32.totalorder %s13605_s30, 0 }
  0x82   : > { %256 = sbr.rel (%p13614_p12) target bundleno = 5746 (0x1672), region = 40 }
  0x89   : > { %s11418_s8 = sand.u32 1, %s11143_s19   ;;  %p13615_p1 = scmp.ne.s32.totalorder %s13602_s28, 0 }
  0x8a   : > { %s10002_s17 = smul.u32 192, %s11418_s8  ;;  %s259_s24 = scalar_lea.sflag [#allocation3], %s11418_s8 }
  0x8c   : > { %s11422_s10 = scalar_lea.vmem [#allocation2], %s10002_s17 }
  0x8d   : > { %11122 = dma.done.wait (%p13615_p1), %s259_s24, 3072  }
  0x8e   : > { %11124 = vsyncadd (%p13615_p1), %s259_s24, 4294964224  ;;  %p13616_p11 = scmp.ne.s32.totalorder %s13600_s26, 0 }
  0x90   : > { %11126 = dma.done.wait (%p13616_p11), [#allocation6], 27648  }
  0x91   : > { %11128 = vsyncadd (%p13616_p11), [#allocation6], 4294939648 }
  0x92   : > { %11130 = dma.done.wait (%p13616_p11), [#allocation9], 9216  }
  0x93   : > { %11132 = vsyncadd (%p13616_p11), [#allocation9], 4294958080  ;;  %v10107_v0 = vld [vmem:[#allocation5 + $0xc8] ss:$12 sps:$4 sm:$0xff]   ;;  %v10109_v2 = vld [vmem:[#allocation5 + $0xe0] ss:$12 sps:$4 sm:$0xff]  }
  0x94   : > { %v10108_v1 = vld [vmem:[#allocation5 + $0x8] ss:$12 sps:$4 sm:$0xff]   ;;  %8680 = vmatprep.subr.bf16.mxu1 %v10107_v0  ;;  %v10110_v3 = vld [vmem:[#allocation5 + $0x20] ss:$12 sps:$4 sm:$0xff]   ;;  %v10111_v4 = vld [vmem:[#allocation5 + $0xf8] ss:$12 sps:$4 sm:$0xff]  }
  0x95   : > { %8681 = vmatpush3.bf16.msra.mxu1 %v10108_v1  ;;  %v10112_v5 = vld [vmem:[#allocation5 + $0x38] ss:$12 sps:$4 sm:$0xff]   ;;  %v10113_v6 = vld [vmem:[#allocation5 + $0x110] ss:$12 sps:$4 sm:$0xff]   ;;  %v10115_v8 = vld [vmem:[#allocation5 + $0x128] ss:$12 sps:$4 sm:$0xff]  }
  0x96   : > { %8682 = vmatprep.subr.bf16.mxu1 %v10109_v2  ;;  %v10114_v7 = vld [vmem:[#allocation5 + $0x50] ss:$12 sps:$4 sm:$0xff]   ;;  %v10121_v10 = vld [vmem:[#allocation5] ss:$12 sps:$4 sm:$0xff]   ;;  %v10116_v11 = vld [vmem:[#allocation5 + $0x68] ss:$12 sps:$4 sm:$0xff]  }
  0x97   : > { %v10119_v9 = vld [vmem:[#allocation5 + $0x4] ss:$12 sps:$4 sm:$0xff]   ;;  %v10117_v12 = vld [vmem:[#allocation5 + $0x140] ss:$12 sps:$4 sm:$0xff]   ;;  %v10124_v13 = vld [vmem:[#allocation5 + $0x1c] ss:$12 sps:$4 sm:$0xff]  }
  0x98   : > { %981 = vmatprep.subr.bf16.mxu0 %v10119_v9  ;;  %v10126_v14 = vld [vmem:[#allocation5 + $0x18] ss:$12 sps:$4 sm:$0xff]   ;;  %v10118_v15 = vld [vmem:[#allocation5 + $0x80] ss:$12 sps:$4 sm:$0xff]   ;;  %v10134_v19 = vld [vmem:[#allocation5 + $0x30] ss:$12 sps:$4 sm:$0xff]  }
  0x99   : > { %8683 = vmatpush3.bf16.msra.mxu1 %v10110_v3  ;;  %982 = vmatpush1.bf16.msra.mxu0 %v10121_v10  ;;  %v10129_v16 = vld [vmem:[#allocation5 + $0x34] ss:$12 sps:$4 sm:$0xff]   ;;  %v10122_v17 = vld [vmem:[#allocation5 + $0x158] ss:$12 sps:$4 sm:$0xff]   ;;  %v10127_v23 = vld [vmem:[#allocation5 + $0x170] ss:$12 sps:$4 sm:$0xff]  }
  0x9a   : > { %8684 = vmatprep.subr.bf16.mxu1 %v10111_v4  ;;  %983 = vmatprep.subr.bf16.mxu0 %v10124_v13  ;;  %v11437_v18 = vld [vmem:[%s11422_s10 + $0x4] ss:$12 sps:$4 sm:$0xff]   ;;  %v10135_v21 = vld [vmem:[#allocation5 + $0x4c] ss:$12 sps:$4 sm:$0xff]   ;;  %v10137_v22 = vld [vmem:[#allocation5 + $0x48] ss:$12 sps:$4 sm:$0xff]  }
  0x9b   : > { %v10123_v20 = vld [vmem:[#allocation5 + $0x98] ss:$12 sps:$4 sm:$0xff]   ;;  %1239 = vmatprep.mubr.bf16.mxu1 %v11437_v18  ;;  %1013 = vmatprep.mubr.bf16.mxu0 %v11437_v18  ;;  %v10128_v25 = vld [vmem:[#allocation5 + $0xb0] ss:$12 sps:$4 sm:$0xff]   ;;  %v10142_v26 = vld [vmem:[#allocation5 + $0x60] ss:$12 sps:$4 sm:$0xff]  }
  0x9c   : > { %v10138_v24 = vld [vmem:[#allocation5 + $0x64] ss:$12 sps:$4 sm:$0xff]   ;;  %v10144_v27 = vld [vmem:[#allocation5 + $0x7c] ss:$12 sps:$4 sm:$0xff]   ;;  %v11442_v29 = vld [vmem:[%s11422_s10] ss:$12 sps:$4 sm:$0xff]  }
  0x9d   : > { %8685 = vmatpush3.bf16.msra.mxu1 %v10112_v5  ;;  %984 = vmatpush1.bf16.msra.mxu0 %v10126_v14  ;;  %v10151_v28 = vld [vmem:[#allocation5 + $0x188] ss:$12 sps:$4 sm:$0xff]   ;;  %v10146_v31 = vld [vmem:[#allocation5 + $0x78] ss:$12 sps:$4 sm:$0xff]   ;;  %v10161_v33 = vld [vmem:[#allocation5 + $0x1a0] ss:$12 sps:$4 sm:$0xff]  }
  0x9e   : > { %8686 = vmatprep.subr.bf16.mxu1 %v10113_v6  ;;  %985 = vmatprep.subr.bf16.mxu0 %v10129_v16  ;;  %v11445_v30 = vld [vmem:[%s11422_s10 + $0x1c] ss:$12 sps:$4 sm:$0xff]   ;;  %v10147_v32 = vld [vmem:[#allocation5 + $0x94] ss:$12 sps:$4 sm:$0xff]   ;;  %v10154_v35 = vld [vmem:[#allocation5 + $0xac] ss:$12 sps:$4 sm:$0xff]  }
  0x9f   : > { %v10152_v34 = vld [vmem:[#allocation5 + $0x90] ss:$12 sps:$4 sm:$0xff]   ;;  %v11450_v36 = vld [vmem:[%s11422_s10 + $0x18] ss:$12 sps:$4 sm:$0xff]   ;;  %v11453_v37 = vld [vmem:[%s11422_s10 + $0x34] ss:$12 sps:$4 sm:$0xff]  }
  0xa0   : > { %v10156_v38 = vld [vmem:[#allocation5 + $0xa8] ss:$12 sps:$4 sm:$0xff]   ;;  %v10171_v39 = vld [vmem:[#allocation5 + $0x1b8] ss:$12 sps:$4 sm:$0xff]   ;;  %v10162_v41 = vld [vmem:[#allocation5 + $0xc0] ss:$12 sps:$4 sm:$0xff]  }
  0xa1   : > { %8687 = vmatpush3.bf16.msra.mxu1 %v10114_v7  ;;  %986 = vmatpush1.bf16.msra.mxu0 %v10134_v19  ;;  %v10157_v40 = vld [vmem:[#allocation5 + $0xc4] ss:$12 sps:$4 sm:$0xff]   ;;  %v10164_v42 = vld [vmem:[#allocation5 + $0xdc] ss:$12 sps:$4 sm:$0xff]   ;;  %v11461_v45 = vld [vmem:[%s11422_s10 + $0x4c] ss:$12 sps:$4 sm:$0xff]  }
  0xa2   : > { %8688 = vmatprep.subr.bf16.mxu1 %v10115_v8  ;;  %987 = vmatprep.subr.bf16.mxu0 %v10135_v21  ;;  %v10181_v43 = vld [vmem:[#allocation5 + $0x1d0] ss:$12 sps:$4 sm:$0xff]   ;;  %v10166_v46 = vld [vmem:[#allocation5 + $0xd8] ss:$12 sps:$4 sm:$0xff]   ;;  %v10167_v47 = vld [vmem:[#allocation5 + $0xf4] ss:$12 sps:$4 sm:$0xff]  }
  0xa3   : > { %v11458_v44 = vld [vmem:[%s11422_s10 + $0x30] ss:$12 sps:$4 sm:$0xff]   ;;  %v10191_v48 = vld [vmem:[#allocation5 + $0x1e8] ss:$12 sps:$4 sm:$0xff]   ;;  %v10174_v50 = vld [vmem:[#allocation5 + $0x10c] ss:$12 sps:$4 sm:$0xff]  }
  0xa4   : > { %v10172_v49 = vld [vmem:[#allocation5 + $0xf0] ss:$12 sps:$4 sm:$0xff]   ;;  %v10196_v51 = vld [vmem:[#allocation5 + $0x200] ss:$12 sps:$4 sm:$0xff]   ;;  %v11466_v52 = vld [vmem:[%s11422_s10 + $0x48] ss:$12 sps:$4 sm:$0xff]  }
  0xa5   : > { %8689 = vmatpush3.bf16.msra.mxu1 %v10116_v11  ;;  %988 = vmatpush1.bf16.msra.mxu0 %v10137_v22  ;;  %v11469_v53 = vld [vmem:[%s11422_s10 + $0x64] ss:$12 sps:$4 sm:$0xff]   ;;  %v10176_v55 = vld [vmem:[#allocation5 + $0x108] ss:$12 sps:$4 sm:$0xff]   ;;  %v10182_v58 = vld [vmem:[#allocation5 + $0x120] ss:$12 sps:$4 sm:$0xff]  }
  0xa6   : > { %8690 = vmatprep.subr.bf16.mxu1 %v10117_v12  ;;  %989 = vmatprep.subr.bf16.mxu0 %v10138_v24  ;;  %v10200_v54 = vld [vmem:[#allocation5 + $0x218] ss:$12 sps:$4 sm:$0xff]   ;;  %v10202_v57 = vld [vmem:[#allocation5 + $0x230] ss:$12 sps:$4 sm:$0xff]   ;;  %v11474_v60 = vld [vmem:[%s11422_s10 + $0x60] ss:$12 sps:$4 sm:$0xff]  }
  0xa7   : > { %v10177_v56 = vld [vmem:[#allocation5 + $0x124] ss:$12 sps:$4 sm:$0xff]   ;;  %v10184_v59 = vld [vmem:[#allocation5 + $0x13c] ss:$12 sps:$4 sm:$0xff]   ;;  %v10187_v0 = vld [vmem:[#allocation5 + $0x154] ss:$12 sps:$4 sm:$0xff]  }
  0xa8   : > { %v11477_v61 = vld [vmem:[%s11422_s10 + $0x7c] ss:$12 sps:$4 sm:$0xff]   ;;  %v10186_v63 = vld [vmem:[#allocation5 + $0x138] ss:$12 sps:$4 sm:$0xff]   ;;  %v11485_v4 = vld [vmem:[%s11422_s10 + $0x94] ss:$12 sps:$4 sm:$0xff]  }
  0xa9   : > { %8691 = vmatpush3.bf16.msra.mxu1 %v10118_v15  ;;  %990 = vmatpush1.bf16.msra.mxu0 %v10142_v26  ;;  %v10206_v62 = vld [vmem:[#allocation7 + $0x4] ss:$24 sps:$4 sm:$0xff]   ;;  %v10194_v2 = vld [vmem:[#allocation5 + $0x16c] ss:$12 sps:$4 sm:$0xff]   ;;  %v10197_v5 = vld [vmem:[#allocation5 + $0x168] ss:$12 sps:$4 sm:$0xff]  }
  0xaa   : > { %8692 = vmatprep.subr.bf16.mxu1 %v10122_v17  ;;  %991 = vmatprep.subr.bf16.mxu0 %v10144_v27  ;;  %v10192_v1 = vld [vmem:[#allocation5 + $0x150] ss:$12 sps:$4 sm:$0xff]   ;;  %v11482_v3 = vld [vmem:[%s11422_s10 + $0x78] ss:$12 sps:$4 sm:$0xff]   ;;  %v10227_v7 = vld [vmem:[#allocation5 + $0x180] ss:$12 sps:$4 sm:$0xff]  }
  0xab   : > { %v10229_v6 = vld [vmem:[#allocation5 + $0x184] ss:$12 sps:$4 sm:$0xff]   ;;  %v10237_v8 = vld [vmem:[#allocation5 + $0x19c] ss:$12 sps:$4 sm:$0xff]   ;;  %v11494_v10 = vld [vmem:[%s11422_s10 + $0xac] ss:$12 sps:$4 sm:$0xff]  }
  0xac   : > { %v11490_v9 = vld [vmem:[%s11422_s10 + $0x90] ss:$12 sps:$4 sm:$0xff]   ;;  %v10235_v11 = vld [vmem:[#allocation5 + $0x198] ss:$12 sps:$4 sm:$0xff]   ;;  %v10243_v12 = vld [vmem:[#allocation5 + $0x1b4] ss:$12 sps:$4 sm:$0xff]  }
  0xad   : > { %8693 = vmatpush3.bf16.msra.mxu1 %v10123_v20  ;;  %992 = vmatpush1.bf16.msra.mxu0 %v10146_v31  ;;  %v10241_v13 = vld [vmem:[#allocation5 + $0x1b0] ss:$12 sps:$4 sm:$0xff]   ;;  %v10249_v14 = vld [vmem:[#allocation5 + $0x1cc] ss:$12 sps:$4 sm:$0xff]   ;;  %v11500_v15 = vld [vmem:[%s11422_s10 + $0xa8] ss:$12 sps:$4 sm:$0xff]  }
  0xae   : > { %8694 = vmatprep.subr.bf16.mxu1 %v10127_v23  ;;  %993 = vmatprep.subr.bf16.mxu0 %v10147_v32  ;;  %v11504_v16 = vld [vmem:[%s11422_s10 + $0x8] ss:$12 sps:$4 sm:$0xff]   ;;  %v10255_v19 = vld [vmem:[#allocation5 + $0x1e4] ss:$12 sps:$4 sm:$0xff]   ;;  %v10253_v20 = vld [vmem:[#allocation5 + $0x1e0] ss:$12 sps:$4 sm:$0xff]  }
  0xaf   : > { %v10247_v17 = vld [vmem:[#allocation5 + $0x1c8] ss:$12 sps:$4 sm:$0xff]   ;;  %v10204_v22 = vld [vmem:[#allocation7] ss:$24 sps:$4 sm:$0xff]   ;;  %v10214_v31 = vld [vmem:[#allocation7 + $0x64] ss:$24 sps:$4 sm:$0xff]  }
  0xb0   : > { %v10261_v21 = vld [vmem:[#allocation5 + $0x1fc] ss:$12 sps:$4 sm:$0xff]   ;;  %v11510_v23 = vld [vmem:[%s11422_s10 + $0x20] ss:$12 sps:$4 sm:$0xff]   ;;  %v10259_v26 = vld [vmem:[#allocation5 + $0x1f8] ss:$12 sps:$4 sm:$0xff]  }
  0xb1   : > { %8695 = vmatpush3.bf16.msra.mxu1 %v10128_v25  ;;  %994 = vmatpush1.bf16.msra.mxu0 %v10152_v34  ;;  %v10210_v24 = vld [vmem:[#allocation7 + $0x34] ss:$24 sps:$4 sm:$0xff]   ;;  %v11514_v25 = vld [vmem:[%s11422_s10 + $0x38] ss:$12 sps:$4 sm:$0xff]   ;;  %v10265_v32 = vld [vmem:[#allocation5 + $0x210] ss:$12 sps:$4 sm:$0xff]  }
  0xb2   : > { %9024 = vmatprep.subr.bf16.mxu1 %v10151_v28  ;;  %995 = vmatprep.subr.bf16.mxu0 %v10154_v35  ;;  %v10267_v27 = vld [vmem:[#allocation5 + $0x214] ss:$12 sps:$4 sm:$0xff]   ;;  %v11520_v35 = vld [vmem:[%s11422_s10 + $0x50] ss:$12 sps:$4 sm:$0xff]   ;;  %vm3211_vm0 = vcmask 523264   ;;  %s11170_s26 = smov 64  }
  0xb3   : > { %v10212_v34 = vld [vmem:[#allocation7 + $0x60] ss:$24 sps:$4 sm:$0xff]   ;;  %s10003_s6 = smul.u32 384, %s11418_s8  ;;  %s11172_s12 = smov [#allocation10]  }
  0xb4   : > { %1240 = vmatmul.mubr.bf16.vlgmr.msra.gmra.mrb[0].mxu1 %v11442_v29  ;;  %s10004_s25 = smul.u32 6144, %s11151_s21  ;;  %s8054_s21 = scalar_lea.sflag [#allocation4], %s11418_s8 }
  0xb5   : > { %1247 = vmatprep.mubr.bf16.mxu1 %v11445_v30  ;;  %9025 = vmatpush3.bf16.msra.mxu1 %v10151_v28  ;;  %v10208_v28 = vld [vmem:[#allocation7 + $0x30] ss:$24 sps:$4 sm:$0xff]   ;;  %s13351_s11 = scalar_lea.vmem [#allocation10], %s10003_s6  ;;  %s11073_s14 = sshll.u32 %s11172_s12, 4  ;;  %s11074_s14 = int_to_ptr.vmem [resolvable:$false] %s11073_s14 }
  0xb6   : > { %9026 = vmatprep.subr.bf16.mxu1 %v10161_v33  ;;  %996 = vmatpush1.bf16.msra.mxu0 %v10156_v38  ;;  %v10218_v38 = vld [vmem:[#allocation7 + $0x94] ss:$24 sps:$4 sm:$0xff]   ;;  %s8070_s7 = sshll.u32 %s13351_s11, 4  ;;  %s13447_s13 = scalar_lea.hbm %s13507_s5, %s10004_s25  ;;  %s13449_s7 = int_to_ptr.vmem [resolvable:$true] %s8070_s7 }
  0xb7   : > { %997 = vmatprep.subr.bf16.mxu0 %v10157_v40  ;;  %v10271_v40 = vld [vmem:[#allocation5 + $0x228] ss:$12 sps:$4 sm:$0xff]   ;;  %s11069_s27 = scalar_lea.vmem %s13449_s7, 6144  ;;  %s11075_s17 = scalar_lea.vmem %s11074_s14, 12288 }
  0xb8   : > { %p11070_p13 = scmp.ne.s32.totalorder %s13449_s7, %s11069_s27  ;;  %p11076_p5 = scmp.lt.s32.totalorder %s13449_s7, %s11074_s14 }
  0xb9   : > { %9027 = vmatpush3.bf16.msra.mxu1 %v10161_v33  ;;  %v10273_v33 = vld [vmem:[#allocation5 + $0x22c] ss:$12 sps:$4 sm:$0xff]   ;;  %p11077_p7 = scmp.lt.s32.totalorder %s11075_s17, %s11069_s27 }
  0xba   : > { %9028 = vmatprep.subr.bf16.mxu1 %v10171_v39  ;;  %998 = vmatpush1.bf16.msra.mxu0 %v10162_v41  ;;  %v10282_v41 = vld [vmem:[#allocation7 + $0xc] ss:$24 sps:$4 sm:$0xff]   ;;  %p11071_p6 = pnand %p11070_p13, %p11361_p3 }
  0xbb   : > { %999 = vmatprep.subr.bf16.mxu0 %v10164_v42  ;;  %v10216_v42 = vld [vmem:[#allocation7 + $0x90] ss:$24 sps:$4 sm:$0xff]   ;;  %p11078_p9 = por %p11077_p7, %p11076_p5 }
  0xbc   : > { %1248 = vmatmul.mubr.bf16.gmra.mrb[4].mxu1 %v11450_v36  ;;  %p11072_p10 = pneg %p11071_p6 }
  0xbd   : > { %1255 = vmatprep.mubr.bf16.mxu1 %v11453_v37  ;;  %9029 = vmatpush3.bf16.msra.mxu1 %v10171_v39  ;;  %v11524_v39 = vld [vmem:[%s11422_s10 + $0x68] ss:$12 sps:$4 sm:$0xff]  }
  0xbe   : > { %9030 = vmatprep.subr.bf16.mxu1 %v10181_v43  ;;  %1000 = vmatpush1.bf16.msra.mxu0 %v10166_v46  ;;  %v11530_v46 = vld [vmem:[%s11422_s10 + $0x80] ss:$12 sps:$4 sm:$0xff]   ;;  %p11079_p0 = pnand %p11078_p9, %p11072_p10 }
  0xbf   : > { %1001 = vmatprep.subr.bf16.mxu0 %v10167_v47  ;;  %v10220_v47 = vld [vmem:[#allocation7 + $0xc0] ss:$24 sps:$4 sm:$0xff]  }
  0xc1   : > { %9031 = vmatpush3.bf16.msra.mxu1 %v10181_v43  ;;  %v10222_v43 = vld [vmem:[#allocation7 + $0xc4] ss:$24 sps:$4 sm:$0xff]  }
  0xc2   : > { %9032 = vmatprep.subr.bf16.mxu1 %v10191_v48  ;;  %1002 = vmatpush1.bf16.msra.mxu0 %v10172_v49  ;;  %v10226_v49 = vld [vmem:[#allocation7 + $0xf4] ss:$24 sps:$4 sm:$0xff]  }
  0xc3   : > { %1003 = vmatprep.subr.bf16.mxu0 %v10174_v50  ;;  %v10224_v50 = vld [vmem:[#allocation7 + $0xf0] ss:$24 sps:$4 sm:$0xff]  }
  0xc4   : > { %1256 = vmatmul.mubr.bf16.gmra.mrb[8].mxu1 %v11458_v44 }
  0xc5   : > { %1263 = vmatprep.mubr.bf16.mxu1 %v11461_v45  ;;  %9033 = vmatpush3.bf16.msra.mxu1 %v10191_v48  ;;  %v11534_v48 = vld [vmem:[%s11422_s10 + $0x98] ss:$12 sps:$4 sm:$0xff]  }
  0xc6   : > { %9034 = vmatprep.subr.bf16.mxu1 %v10196_v51  ;;  %1004 = vmatpush1.bf16.msra.mxu0 %v10176_v55  ;;  %v10231_v55 = vld [vmem:[#allocation7 + $0x120] ss:$24 sps:$4 sm:$0xff]  }
  0xc7   : > { %1005 = vmatprep.subr.bf16.mxu0 %v10177_v56  ;;  %v10240_v56 = vld [vmem:[#allocation7 + $0x154] ss:$24 sps:$4 sm:$0xff]  }
  0xc9   : > { %9035 = vmatpush3.bf16.msra.mxu1 %v10196_v51  ;;  %v10233_v51 = vld [vmem:[#allocation7 + $0x124] ss:$24 sps:$4 sm:$0xff]  }
  0xca   : > { %9036 = vmatprep.subr.bf16.mxu1 %v10200_v54  ;;  %1006 = vmatpush1.bf16.msra.mxu0 %v10182_v58  ;;  %v10246_v58 = vld [vmem:[#allocation7 + $0x184] ss:$24 sps:$4 sm:$0xff]  }
  0xcb   : > { %1007 = vmatprep.subr.bf16.mxu0 %v10184_v59  ;;  %v10244_v59 = vld [vmem:[#allocation7 + $0x180] ss:$24 sps:$4 sm:$0xff]  }
  0xcc   : > { %1264 = vmatmul.mubr.bf16.gmra.mrb[12].mxu1 %v11466_v52 }
  0xcd   : > { %1271 = vmatprep.mubr.bf16.mxu1 %v11469_v53  ;;  %9037 = vmatpush3.bf16.msra.mxu1 %v10200_v54  ;;  %v11540_v54 = vld [vmem:[%s11422_s10 + $0xb0] ss:$12 sps:$4 sm:$0xff]  }
  0xce   : > { %9038 = vmatprep.subr.bf16.mxu1 %v10202_v57  ;;  %1008 = vmatpush1.bf16.msra.mxu0 %v10186_v63  ;;  %v10256_v63 = vld [vmem:[#allocation7 + $0x1e0] ss:$24 sps:$4 sm:$0xff]  }
  0xcf   : > { %1009 = vmatprep.subr.bf16.mxu0 %v10187_v0  ;;  %v13517_v0 = vmov 0  }
  0xd1   : > { %9039 = vmatpush3.bf16.msra.mxu1 %v10202_v57  ;;  %v10238_v57 = vld [vmem:[#allocation7 + $0x150] ss:$24 sps:$4 sm:$0xff]  }
  0xd2   : > { %2417 = vmatprep.subr.bf16.mxu1 %v10206_v62  ;;  %1010 = vmatpush1.bf16.msra.mxu0 %v10192_v1  ;;  %v10258_v62 = vld [vmem:[#allocation7 + $0x1e4] ss:$24 sps:$4 sm:$0xff]   ;;  %v10262_v1 = vld [vmem:[#allocation7 + $0x210] ss:$24 sps:$4 sm:$0xff]  }
  0xd3   : > { %1011 = vmatprep.subr.bf16.mxu0 %v10194_v2  ;;  %v10270_v2 = vld [vmem:[#allocation7 + $0x244] ss:$24 sps:$4 sm:$0xff]  }
  0xd4   : > { %1272 = vmatmul.mubr.bf16.gmra.mrb[16].mxu1 %v11474_v60 }
  0xd5   : > { %1279 = vmatprep.mubr.bf16.mxu1 %v11477_v61 }
  0xd6   : > { %1012 = vmatpush1.bf16.msra.mxu0 %v10197_v5  ;;  %v10268_v5 = vld [vmem:[#allocation7 + $0x240] ss:$24 sps:$4 sm:$0xff]  }
  0xd7   : > { %1094 = vmatprep.subr.bf16.mxu0 %v10229_v6  ;;  %v10286_v6 = vld [vmem:[#allocation7 + $0x38] ss:$24 sps:$4 sm:$0xff]  }
  0xd9   : > { %1014 = vmatmul.mubr.bf16.vlgmr.msra.gmra.mrb[0].mxu0 %v11442_v29 }
  0xda   : > { %1023 = vmatprep.mubr.bf16.mxu0 %v11445_v30  ;;  %1095 = vmatpush1.bf16.msra.mxu0 %v10227_v7  ;;  %v10276_v7 = vld [vmem:[#allocation7 + $0x274] ss:$24 sps:$4 sm:$0xff]  }
  0xdb   : > { %1096 = vmatprep.subr.bf16.mxu0 %v10237_v8  ;;  %v10291_v8 = vld [vmem:[#allocation7 + $0x6c] ss:$24 sps:$4 sm:$0xff]  }
  0xdc   : > { %1280 = vmatmul.mubr.bf16.gmra.mrb[20].mxu1 %v11482_v3 }
  0xdd   : > { %1287 = vmatprep.mubr.bf16.mxu1 %v11485_v4 }
  0xde   : > { %1097 = vmatpush1.bf16.msra.mxu0 %v10235_v11  ;;  %v10289_v11 = vld [vmem:[#allocation7 + $0x68] ss:$24 sps:$4 sm:$0xff]  }
  0xdf   : > { %1098 = vmatprep.subr.bf16.mxu0 %v10243_v12  ;;  %v10294_v12 = vld [vmem:[#allocation7 + $0x9c] ss:$24 sps:$4 sm:$0xff]  }
  0xe1   : > { %1024 = vmatmul.mubr.bf16.gmra.mrb[4].mxu0 %v11450_v36 }
  0xe2   : > { %1033 = vmatprep.mubr.bf16.mxu0 %v11453_v37  ;;  %1099 = vmatpush1.bf16.msra.mxu0 %v10241_v13  ;;  %v10277_v13 = vld [vmem:[#allocation7 + $0x2a0] ss:$24 sps:$4 sm:$0xff]  }
  0xe3   : > { %1100 = vmatprep.subr.bf16.mxu0 %v10249_v14  ;;  %v10292_v14 = vld [vmem:[#allocation7 + $0x98] ss:$24 sps:$4 sm:$0xff]  }
  0xe4   : > { %1288 = vmatmul.mubr.bf16.gmra.mrb[24].mxu1 %v11490_v9 }
  0xe5   : > { %1295 = vmatprep.mubr.bf16.mxu1 %v11494_v10 }
  0xe6   : > { %1101 = vmatpush1.bf16.msra.mxu0 %v10247_v17  ;;  %v10297_v17 = vld [vmem:[#allocation7 + $0xcc] ss:$24 sps:$4 sm:$0xff]  }
  0xe7   : > { %1102 = vmatprep.subr.bf16.mxu0 %v10255_v19  ;;  %v10283_v19 = vld [vmem:[#allocation7 + $0x2d0] ss:$24 sps:$4 sm:$0xff]  }
  0xe9   : > { %1034 = vmatmul.mubr.bf16.gmra.mrb[8].mxu0 %v11458_v44 }
  0xea   : > { %1043 = vmatprep.mubr.bf16.mxu0 %v11461_v45  ;;  %1103 = vmatpush1.bf16.msra.mxu0 %v10253_v20  ;;  %v10295_v20 = vld [vmem:[#allocation7 + $0xc8] ss:$24 sps:$4 sm:$0xff]  }
  0xeb   : > { %1104 = vmatprep.subr.bf16.mxu0 %v10261_v21  ;;  %v10300_v21 = vld [vmem:[#allocation7 + $0xfc] ss:$24 sps:$4 sm:$0xff]  }
  0xec   : > { %1296 = vmatmul.mubr.bf16.gmra.mrb[28].mxu1 %v11500_v15 }
  0xed   : > { %9040 = vmatprep.mubr.bf16.mxu1 %v11504_v16 }
  0xee   : > { %1105 = vmatpush1.bf16.msra.mxu0 %v10259_v26  ;;  %v10306_v26 = vld [vmem:[#allocation7 + $0x12c] ss:$24 sps:$4 sm:$0xff]  }
  0xef   : > { %1106 = vmatprep.subr.bf16.mxu0 %v10267_v27  ;;  %v10312_v27 = vld [vmem:[#allocation7 + $0x334] ss:$24 sps:$4 sm:$0xff]  }
  0xf1   : > { %1044 = vmatmul.mubr.bf16.gmra.mrb[12].mxu0 %v11466_v52 }
  0xf2   : > { %1053 = vmatprep.mubr.bf16.mxu0 %v11469_v53  ;;  %1107 = vmatpush1.bf16.msra.mxu0 %v10265_v32  ;;  %v10307_v32 = vld [vmem:[#allocation7 + $0x158] ss:$24 sps:$4 sm:$0xff]  }
  0xf3   : > { %1108 = vmatprep.subr.bf16.mxu0 %v10273_v33  ;;  %v10321_v33 = vld [vmem:[#allocation7 + $0x364] ss:$24 sps:$4 sm:$0xff]  }
  0xf4   : > { %9041 = vmatmul.mubr.bf16.vlgmr.msra.gmra.mrb[32].mxu1 %v11510_v23 }
  0xf5   : > { %2418 = vmatpush1.bf16.msra.mxu1 %v10204_v22  ;;  %9044 = vmatprep.mubr.bf16.mxu1 %v11514_v25  ;;  %v10303_v22 = vld [vmem:[#allocation7 + $0x304] ss:$24 sps:$4 sm:$0xff]  }
  0xf6   : > { %2419 = vmatprep.subr.bf16.mxu1 %v10210_v24  ;;  %1109 = vmatpush1.bf16.msra.mxu0 %v10271_v40  ;;  %v10301_v24 = vld [vmem:[#allocation7 + $0x300] ss:$24 sps:$4 sm:$0xff]   ;;  %v10318_v40 = vld [vmem:[#allocation7 + $0x1bc] ss:$24 sps:$4 sm:$0xff]  }
  0xf7   : > { %2643 = vmatprep.subr.bf16.mxu0 %v10282_v41  ;;  %v10328_v41 = vld [vmem:[#allocation7 + $0x390] ss:$24 sps:$4 sm:$0xff]  }
  0xf9   : > { %2420 = vmatpush1.bf16.msra.mxu1 %v10208_v28  ;;  %1054 = vmatmul.mubr.bf16.gmra.mrb[16].mxu0 %v11474_v60  ;;  %v10252_v60 = vld [vmem:[#allocation7 + $0x1b4] ss:$24 sps:$4 sm:$0xff]   ;;  %v10304_v28 = vld [vmem:[#allocation7 + $0x128] ss:$24 sps:$4 sm:$0xff]  }
  0xfa   : > { %2421 = vmatprep.subr.bf16.mxu1 %v10214_v31  ;;  %1063 = vmatprep.mubr.bf16.mxu0 %v11477_v61  ;;  %v10250_v61 = vld [vmem:[#allocation7 + $0x1b0] ss:$24 sps:$4 sm:$0xff]   ;;  %v10309_v31 = vld [vmem:[#allocation7 + $0x15c] ss:$24 sps:$4 sm:$0xff]  }
  0xfc   : > { %9045 = vmatmul.mubr.bf16.gmra.mrb[36].mxu1 %v11520_v35 }
  0xfd   : > { %2422 = vmatpush1.bf16.msra.mxu1 %v10212_v34  ;;  %9048 = vmatprep.mubr.bf16.mxu1 %v11524_v39  ;;  %v10315_v34 = vld [vmem:[#allocation7 + $0x18c] ss:$24 sps:$4 sm:$0xff]  }
  0xfe   : > { %2423 = vmatprep.subr.bf16.mxu1 %v10218_v38  ;;  %v10313_v38 = vld [vmem:[#allocation7 + $0x188] ss:$24 sps:$4 sm:$0xff]  }
 0x101   : > { %2424 = vmatpush1.bf16.msra.mxu1 %v10216_v42  ;;  %1064 = vmatmul.mubr.bf16.gmra.mrb[20].mxu0 %v11482_v3  ;;  %v10280_v3 = vld [vmem:[#allocation7 + $0x8] ss:$24 sps:$4 sm:$0xff]   ;;  %v10339_v42 = vld [vmem:[#allocation7 + $0x3c4] ss:$24 sps:$4 sm:$0xff]  }
 0x102   : > { %2425 = vmatprep.subr.bf16.mxu1 %v10222_v43  ;;  %1073 = vmatprep.mubr.bf16.mxu0 %v11485_v4  ;;  %v10288_v4 = vld [vmem:[#allocation7 + $0x3c] ss:$24 sps:$4 sm:$0xff]   ;;  %v10324_v43 = vld [vmem:[#allocation7 + $0x1ec] ss:$24 sps:$4 sm:$0xff]  }
 0x104   : > { %9049 = vmatmul.mubr.bf16.gmra.mrb[40].mxu1 %v11530_v46 }
 0x105   : > { %2426 = vmatpush1.bf16.msra.mxu1 %v10220_v47  ;;  %9052 = vmatprep.mubr.bf16.mxu1 %v11534_v48  ;;  %v10337_v47 = vld [vmem:[#allocation7 + $0x3c0] ss:$24 sps:$4 sm:$0xff]  }
 0x106   : > { %2427 = vmatprep.subr.bf16.mxu1 %v10226_v49  ;;  %v10345_v49 = vld [vmem:[#allocation7 + $0x3f4] ss:$24 sps:$4 sm:$0xff]  }
 0x109   : > { %2428 = vmatpush1.bf16.msra.mxu1 %v10224_v50  ;;  %1074 = vmatmul.mubr.bf16.gmra.mrb[24].mxu0 %v11490_v9  ;;  %v10274_v9 = vld [vmem:[#allocation7 + $0x270] ss:$24 sps:$4 sm:$0xff]  }
 0x10a   : > { %2429 = vmatprep.subr.bf16.mxu1 %v10233_v51  ;;  %1083 = vmatprep.mubr.bf16.mxu0 %v11494_v10  ;;  %v10279_v10 = vld [vmem:[#allocation7 + $0x2a4] ss:$24 sps:$4 sm:$0xff]   ;;  %v10343_v50 = vld [vmem:[#allocation7 + $0x3f0] ss:$24 sps:$4 sm:$0xff]  }
 0x10b   : > { %v10351_v51 = vld [vmem:[#allocation7 + $0x424] ss:$24 sps:$4 sm:$0xff]  }
 0x10c   : > { %9053 = vmatmul.mubr.bf16.gmra.mrb[44].mxu1 %v11540_v54 }
 0x10d   : > { %2430 = vmatpush1.bf16.msra.mxu1 %v10231_v55  ;;  %2449 = vmatprep.mubr.bf16.mxu1 %v11437_v18  ;;  %v10264_v18 = vld [vmem:[#allocation7 + $0x214] ss:$24 sps:$4 sm:$0xff]  }
 0x10e   : > { %2431 = vmatprep.subr.bf16.mxu1 %v10240_v56  ;;  %v10333_v55 = vld [vmem:[#allocation7 + $0x24c] ss:$24 sps:$4 sm:$0xff]   ;;  %v10349_v56 = vld [vmem:[#allocation7 + $0x420] ss:$24 sps:$4 sm:$0xff]  }
 0x111   : > { %2432 = vmatpush1.bf16.msra.mxu1 %v10238_v57  ;;  %1084 = vmatmul.mubr.bf16.gmra.mrb[28].mxu0 %v11500_v15  ;;  %v10354_v57 = vld [vmem:[#allocation7 + $0x454] ss:$24 sps:$4 sm:$0xff]  }
 0x112   : > { %2433 = vmatprep.subr.bf16.mxu1 %v10246_v58  ;;  %1126 = vmatprep.mubr.bf16.mxu0 %v13517_v0  ;;  %v10352_v58 = vld [vmem:[#allocation7 + $0x450] ss:$24 sps:$4 sm:$0xff]  }
 0x115   : > { %2434 = vmatpush1.bf16.msra.mxu1 %v10244_v59  ;;  %v10359_v59 = vld [vmem:[#allocation7 + $0x14] ss:$24 sps:$4 sm:$0xff]  }
 0x116   : > { %2435 = vmatprep.subr.bf16.mxu1 %v10252_v60  ;;  %v10342_v60 = vld [vmem:[#allocation7 + $0x2ac] ss:$24 sps:$4 sm:$0xff]  }
 0x119   : > { %2436 = vmatpush1.bf16.msra.mxu1 %v10250_v61  ;;  %1127 = vmatmul.mubr.bf16.vlgmr.msra.gmra.mrb[0].mxu0 %v11504_v16  ;;  %v10285_v16 = vld [vmem:[#allocation7 + $0x2d4] ss:$24 sps:$4 sm:$0xff]  }
 0x11a   : > { %2437 = vmatprep.subr.bf16.mxu1 %v10258_v62  ;;  %2644 = vmatpush1.bf16.msra.mxu0 %v10280_v3  ;;  %v10348_v61 = vld [vmem:[#allocation7 + $0x2dc] ss:$24 sps:$4 sm:$0xff]  }
 0x11b   : > { %2645 = vmatprep.subr.bf16.mxu0 %v10288_v4  ;;  %1136 = vmatprep.mubr.bf16.mxu0 %v13517_v0  ;;  %v11577_v62 = vld [vmem:[%s11422_s10 + $0x7c] ss:$12 sps:$4 sm:$0xff]   ;;  %v11590_v4 = vld [vmem:[%s11422_s10 + $0x94] ss:$12 sps:$4 sm:$0xff]  }
 0x11c   : > { %v10376_v3 = vld [vmem:[#allocation7 + $0x33c] ss:$24 sps:$4 sm:$0xff]  }
 0x11d   : > { %2438 = vmatpush1.bf16.msra.mxu1 %v10256_v63  ;;  %v10370_v63 = vld [vmem:[#allocation7 + $0x30c] ss:$24 sps:$4 sm:$0xff]  }
 0x11e   : > { %2439 = vmatprep.subr.bf16.mxu1 %v10264_v18  ;;  %2646 = vmatpush1.bf16.msra.mxu0 %v10286_v6  ;;  %v11582_v18 = vld [vmem:[%s11422_s10 + $0x4] ss:$12 sps:$4 sm:$0xff]  }
 0x11f   : > { %2647 = vmatprep.subr.bf16.mxu0 %v10291_v8  ;;  %v10374_v6 = vld [vmem:[#allocation7 + $0x338] ss:$24 sps:$4 sm:$0xff]  }
 0x120   : > { %v11602_v8 = vld [vmem:[%s11422_s10 + $0x90] ss:$12 sps:$4 sm:$0xff]  }
 0x121   : > { %2440 = vmatpush1.bf16.msra.mxu1 %v10262_v1  ;;  %1137 = vmatmul.mubr.bf16.gmra.mrb[4].mxu0 %v11510_v23  ;;  %v10298_v23 = vld [vmem:[#allocation7 + $0xf8] ss:$24 sps:$4 sm:$0xff]   ;;  %v10368_v1 = vld [vmem:[#allocation7 + $0x308] ss:$24 sps:$4 sm:$0xff]  }
 0x122   : > { %2441 = vmatprep.subr.bf16.mxu1 %v10270_v2  ;;  %2648 = vmatpush1.bf16.msra.mxu0 %v10289_v11  ;;  %v11586_v2 = vld [vmem:[%s11422_s10 + $0x78] ss:$12 sps:$4 sm:$0xff]   ;;  %v10389_v11 = vld [vmem:[#allocation7 + $0x39c] ss:$24 sps:$4 sm:$0xff]  }
 0x123   : > { %2649 = vmatprep.subr.bf16.mxu0 %v10294_v12  ;;  %1146 = vmatprep.mubr.bf16.mxu0 %v13517_v0  ;;  %v11610_v12 = vld [vmem:[%s11422_s10 + $0x18] ss:$12 sps:$4 sm:$0xff]  }
 0x125   : > { %2442 = vmatpush1.bf16.msra.mxu1 %v10268_v5  ;;  %v11598_v5 = vld [vmem:[%s11422_s10 + $0x1c] ss:$12 sps:$4 sm:$0xff]  }
 0x126   : > { %2443 = vmatprep.subr.bf16.mxu1 %v10276_v7  ;;  %2650 = vmatpush1.bf16.msra.mxu0 %v10292_v14  ;;  %v10383_v7 = vld [vmem:[#allocation7 + $0x36c] ss:$24 sps:$4 sm:$0xff]   ;;  %v10387_v14 = vld [vmem:[#allocation7 + $0x398] ss:$24 sps:$4 sm:$0xff]  }
 0x127   : > { %2651 = vmatprep.subr.bf16.mxu0 %v10297_v17  ;;  %v10394_v17 = vld [vmem:[#allocation7 + $0x3c8] ss:$24 sps:$4 sm:$0xff]  }
 0x129   : > { %2444 = vmatpush1.bf16.msra.mxu1 %v10274_v9  ;;  %1147 = vmatmul.mubr.bf16.gmra.mrb[8].mxu0 %v11514_v25  ;;  %v10310_v25 = vld [vmem:[#allocation7 + $0x330] ss:$24 sps:$4 sm:$0xff]   ;;  %v11606_v9 = vld [vmem:[%s11422_s10 + $0xac] ss:$12 sps:$4 sm:$0xff]  }
 0x12a   : > { %2445 = vmatprep.subr.bf16.mxu1 %v10279_v10  ;;  %2652 = vmatpush1.bf16.msra.mxu0 %v10295_v20  ;;  %v10381_v10 = vld [vmem:[#allocation7 + $0x368] ss:$24 sps:$4 sm:$0xff]  }
 0x12b   : > { %2653 = vmatprep.subr.bf16.mxu0 %v10300_v21  ;;  %1156 = vmatprep.mubr.bf16.mxu0 %v13517_v0  ;;  %v11620_v20 = vld [vmem:[%s11422_s10 + $0x8] ss:$12 sps:$4 sm:$0xff]   ;;  %v11623_v21 = vld [vmem:[%s11422_s10 + $0x30] ss:$12 sps:$4 sm:$0xff]  }
 0x12d   : > { %2446 = vmatpush1.bf16.msra.mxu1 %v10277_v13  ;;  %v11614_v13 = vld [vmem:[%s11422_s10 + $0x34] ss:$12 sps:$4 sm:$0xff]  }
 0x12e   : > { %2447 = vmatprep.subr.bf16.mxu1 %v10285_v16  ;;  %2654 = vmatpush1.bf16.msra.mxu0 %v10298_v23  ;;  %v10396_v16 = vld [vmem:[#allocation7 + $0x3cc] ss:$24 sps:$4 sm:$0xff]   ;;  %v10357_v23 = vld [vmem:[#allocation7 + $0x10] ss:$24 sps:$4 sm:$0xff]  }
 0x12f   : > { %2655 = vmatprep.subr.bf16.mxu0 %v10306_v26  ;;  %v10409_v26 = vld [vmem:[#allocation7 + $0x42c] ss:$24 sps:$4 sm:$0xff]  }
 0x131   : > { %2448 = vmatpush1.bf16.msra.mxu1 %v10283_v19  ;;  %1157 = vmatmul.mubr.bf16.gmra.mrb[12].mxu0 %v11520_v35  ;;  %v10316_v35 = vld [vmem:[#allocation7 + $0x1b8] ss:$24 sps:$4 sm:$0xff]   ;;  %v10402_v19 = vld [vmem:[#allocation7 + $0x3fc] ss:$24 sps:$4 sm:$0xff]  }
 0x132   : > { %2530 = vmatprep.subr.bf16.mxu1 %v10303_v22  ;;  %2656 = vmatpush1.bf16.msra.mxu0 %v10304_v28  ;;  %v11627_v22 = vld [vmem:[%s11422_s10 + $0x4c] ss:$12 sps:$4 sm:$0xff]  }
 0x133   : > { %1166 = vmatprep.mubr.bf16.mxu0 %v13517_v0  ;;  %2657 = vmatprep.subr.bf16.mxu0 %v10309_v31  ;;  %v10366_v28 = vld [vmem:[#allocation7 + $0x74] ss:$24 sps:$4 sm:$0xff]   ;;  %v10407_v31 = vld [vmem:[#allocation7 + $0x428] ss:$24 sps:$4 sm:$0xff]  }
 0x134   : > { %2450 = vmatmul.mubr.bf16.vlgmr.msra.gmra.mrb[48].mxu1 %v11442_v29  ;;  %v10319_v29 = vld [vmem:[#allocation7 + $0x360] ss:$24 sps:$4 sm:$0xff]  }
 0x135   : > { %2459 = vmatprep.mubr.bf16.mxu1 %v11445_v30  ;;  %2531 = vmatpush1.bf16.msra.mxu1 %v10301_v24  ;;  %v10330_v30 = vld [vmem:[#allocation7 + $0x394] ss:$24 sps:$4 sm:$0xff]   ;;  %v10400_v24 = vld [vmem:[#allocation7 + $0x3f8] ss:$24 sps:$4 sm:$0xff]  }
 0x136   : > { %2532 = vmatprep.subr.bf16.mxu1 %v10312_v27  ;;  %2658 = vmatpush1.bf16.msra.mxu0 %v10307_v32  ;;  %v10361_v27 = vld [vmem:[#allocation7 + $0x40] ss:$24 sps:$4 sm:$0xff]  }
 0x137   : > { %2659 = vmatprep.subr.bf16.mxu0 %v10315_v34  ;;  %v11633_v32 = vld [vmem:[%s11422_s10 + $0x20] ss:$12 sps:$4 sm:$0xff]   ;;  %v11640_v34 = vld [vmem:[%s11422_s10 + $0x64] ss:$12 sps:$4 sm:$0xff]  }
 0x139   : > { %2533 = vmatpush1.bf16.msra.mxu1 %v10310_v25  ;;  %1167 = vmatmul.mubr.bf16.gmra.mrb[16].mxu0 %v11524_v39  ;;  %v10325_v39 = vld [vmem:[#allocation7 + $0x218] ss:$24 sps:$4 sm:$0xff]   ;;  %v10415_v25 = vld [vmem:[#allocation7 + $0x45c] ss:$24 sps:$4 sm:$0xff]  }
 0x13a   : > { %2534 = vmatprep.subr.bf16.mxu1 %v10321_v33  ;;  %2660 = vmatpush1.bf16.msra.mxu0 %v10313_v38  ;;  %v11636_v33 = vld [vmem:[%s11422_s10 + $0x48] ss:$12 sps:$4 sm:$0xff]   ;;  %v10373_v38 = vld [vmem:[#allocation7 + $0xa4] ss:$24 sps:$4 sm:$0xff]  }
 0x13b   : > { %1176 = vmatprep.mubr.bf16.mxu0 %v13517_v0  ;;  %2661 = vmatprep.subr.bf16.mxu0 %v10318_v40  ;;  %v10371_v40 = vld [vmem:[#allocation7 + $0xa0] ss:$24 sps:$4 sm:$0xff]  }
 0x13c   : > { %2460 = vmatmul.mubr.bf16.gmra.mrb[52].mxu1 %v11450_v36  ;;  %v10322_v36 = vld [vmem:[#allocation7 + $0x1e8] ss:$24 sps:$4 sm:$0xff]  }
 0x13d   : > { %2469 = vmatprep.mubr.bf16.mxu1 %v11453_v37  ;;  %2535 = vmatpush1.bf16.msra.mxu1 %v10319_v29  ;;  %v10327_v37 = vld [vmem:[#allocation7 + $0x21c] ss:$24 sps:$4 sm:$0xff]   ;;  %v10364_v29 = vld [vmem:[#allocation7 + $0x70] ss:$24 sps:$4 sm:$0xff]  }
 0x13e   : > { %2536 = vmatprep.subr.bf16.mxu1 %v10330_v30  ;;  %2662 = vmatpush1.bf16.msra.mxu0 %v10316_v35  ;;  %v10413_v30 = vld [vmem:[#allocation7 + $0x458] ss:$24 sps:$4 sm:$0xff]  }
 0x13f   : > { %2663 = vmatprep.subr.bf16.mxu0 %v10324_v43  ;;  %v10377_v35 = vld [vmem:[#allocation7 + $0xd0] ss:$24 sps:$4 sm:$0xff]   ;;  %v10386_v43 = vld [vmem:[#allocation7 + $0x104] ss:$24 sps:$4 sm:$0xff]  }
 0x141   : > { %2537 = vmatpush1.bf16.msra.mxu1 %v10328_v41  ;;  %1177 = vmatmul.mubr.bf16.gmra.mrb[20].mxu0 %v11530_v46  ;;  %v10334_v46 = vld [vmem:[#allocation7 + $0x278] ss:$24 sps:$4 sm:$0xff]   ;;  %v10379_v41 = vld [vmem:[#allocation7 + $0xd4] ss:$24 sps:$4 sm:$0xff]  }
 0x142   : > { %2538 = vmatprep.subr.bf16.mxu1 %v10339_v42  ;;  %2664 = vmatpush1.bf16.msra.mxu0 %v10322_v36  ;;  %v11646_v42 = vld [vmem:[%s11422_s10 + $0x38] ss:$12 sps:$4 sm:$0xff]  }
 0x143   : > { %1186 = vmatprep.mubr.bf16.mxu0 %v13517_v0  ;;  %2665 = vmatprep.subr.bf16.mxu0 %v10327_v37 }
 0x144   : > { %2470 = vmatmul.mubr.bf16.gmra.mrb[56].mxu1 %v11458_v44  ;;  %v10331_v44 = vld [vmem:[#allocation7 + $0x248] ss:$24 sps:$4 sm:$0xff]  }
 0x145   : > { %2479 = vmatprep.mubr.bf16.mxu1 %v11461_v45  ;;  %2539 = vmatpush1.bf16.msra.mxu1 %v10337_v47  ;;  %v10336_v45 = vld [vmem:[#allocation7 + $0x27c] ss:$24 sps:$4 sm:$0xff]   ;;  %v10384_v47 = vld [vmem:[#allocation7 + $0x100] ss:$24 sps:$4 sm:$0xff]  }
 0x146   : > { %2540 = vmatprep.subr.bf16.mxu1 %v10345_v49  ;;  %2666 = vmatpush1.bf16.msra.mxu0 %v10325_v39  ;;  %v10392_v49 = vld [vmem:[#allocation7 + $0x134] ss:$24 sps:$4 sm:$0xff]  }
 0x147   : > { %2667 = vmatprep.subr.bf16.mxu0 %v10333_v55  ;;  %v10390_v55 = vld [vmem:[#allocation7 + $0x130] ss:$24 sps:$4 sm:$0xff]  }
 0x149   : > { %2541 = vmatpush1.bf16.msra.mxu1 %v10343_v50  ;;  %1187 = vmatmul.mubr.bf16.gmra.mrb[24].mxu0 %v11534_v48  ;;  %v10346_v48 = vld [vmem:[#allocation7 + $0x2d8] ss:$24 sps:$4 sm:$0xff]  }
 0x14a   : > { %2542 = vmatprep.subr.bf16.mxu1 %v10351_v51  ;;  %2668 = vmatpush1.bf16.msra.mxu0 %v10331_v44  ;;  %v11653_v50 = vld [vmem:[%s11422_s10 + $0x50] ss:$12 sps:$4 sm:$0xff]  }
 0x14b   : > { %1196 = vmatprep.mubr.bf16.mxu0 %v13517_v0  ;;  %2669 = vmatprep.subr.bf16.mxu0 %v10336_v45  ;;  %v10397_v45 = vld [vmem:[#allocation7 + $0x160] ss:$24 sps:$4 sm:$0xff]  }
 0x14c   : > { %2480 = vmatmul.mubr.bf16.gmra.mrb[60].mxu1 %v11466_v52  ;;  %v10340_v52 = vld [vmem:[#allocation7 + $0x2a8] ss:$24 sps:$4 sm:$0xff]  }
 0x14d   : > { %2489 = vmatprep.mubr.bf16.mxu1 %v11469_v53  ;;  %2543 = vmatpush1.bf16.msra.mxu1 %v10349_v56  ;;  %v11573_v53 = vld [vmem:[%s11422_s10 + $0x60] ss:$12 sps:$4 sm:$0xff]  }
 0x14e   : > { %2544 = vmatprep.subr.bf16.mxu1 %v10354_v57  ;;  %2670 = vmatpush1.bf16.msra.mxu0 %v10334_v46  ;;  %v10399_v57 = vld [vmem:[#allocation7 + $0x164] ss:$24 sps:$4 sm:$0xff]  }
 0x14f   : > { %2671 = vmatprep.subr.bf16.mxu0 %v10342_v60  ;;  %v11664_v60 = vld [vmem:[%s11422_s10 + $0x68] ss:$12 sps:$4 sm:$0xff]  }
 0x151   : > { %2545 = vmatpush1.bf16.msra.mxu1 %v10352_v58  ;;  %1197 = vmatmul.mubr.bf16.gmra.mrb[28].mxu0 %v11540_v54  ;;  %v11594_v54 = vld [vmem:[%s11422_s10] ss:$12 sps:$4 sm:$0xff]  }
 0x152   : > { %2869 = vmatprep.subr.bf16.mxu1 %v10359_v59  ;;  %2672 = vmatpush1.bf16.msra.mxu0 %v10340_v52  ;;  %v10405_v58 = vld [vmem:[#allocation7 + $0x194] ss:$24 sps:$4 sm:$0xff]  }
 0x153   : > { %2675 = vmatprep.mubr.bf16.mxu0 %v11582_v18  ;;  %2673 = vmatprep.subr.bf16.mxu0 %v10348_v61 }
 0x154   : > { %2490 = vmatmul.mubr.bf16.gmra.mrb[64].mxu1 %v11573_v53 }
 0x155   : > { %2499 = vmatprep.mubr.bf16.mxu1 %v11577_v62 }
 0x156   : > { %2674 = vmatpush1.bf16.msra.mxu0 %v10346_v48  ;;  %v10403_v48 = vld [vmem:[#allocation7 + $0x190] ss:$24 sps:$4 sm:$0xff]  }
 0x157   : > { %2756 = vmatprep.subr.bf16.mxu0 %v10370_v63 }
 0x159   : > { %2676 = vmatmul.mubr.bf16.vlgmr.msra.gmra.mrb[32].mxu0 %v11594_v54 }
 0x15a   : > { %2685 = vmatprep.mubr.bf16.mxu0 %v11598_v5  ;;  %2757 = vmatpush1.bf16.msra.mxu0 %v10368_v1  ;;  %v10412_v1 = vld [vmem:[#allocation7 + $0x1c4] ss:$24 sps:$4 sm:$0xff]  }
 0x15b   : > { %2758 = vmatprep.subr.bf16.mxu0 %v10376_v3 }
 0x15c   : > { %2500 = vmatmul.mubr.bf16.gmra.mrb[68].mxu1 %v11586_v2 }
 0x15d   : > { %2509 = vmatprep.mubr.bf16.mxu1 %v11590_v4 }
 0x15e   : > { %2759 = vmatpush1.bf16.msra.mxu0 %v10374_v6  ;;  %v10410_v6 = vld [vmem:[#allocation7 + $0x1c0] ss:$24 sps:$4 sm:$0xff]  }
 0x15f   : > { %2760 = vmatprep.subr.bf16.mxu0 %v10383_v7  ;;  %v10418_v7 = vld [vmem:[#allocation7 + $0x1f4] ss:$24 sps:$4 sm:$0xff]  }
 0x161   : > { %2686 = vmatmul.mubr.bf16.gmra.mrb[36].mxu0 %v11610_v12 }
 0x162   : > { %2695 = vmatprep.mubr.bf16.mxu0 %v11614_v13  ;;  %2761 = vmatpush1.bf16.msra.mxu0 %v10381_v10 }
 0x163   : > { %2762 = vmatprep.subr.bf16.mxu0 %v10389_v11 }
 0x164   : > { %2510 = vmatmul.mubr.bf16.gmra.mrb[72].mxu1 %v11602_v8 }
 0x165   : > { %2519 = vmatprep.mubr.bf16.mxu1 %v11606_v9 }
 0x166   : > { %2763 = vmatpush1.bf16.msra.mxu0 %v10387_v14  ;;  %v11675_v14 = vld [vmem:[%s11422_s10 + $0x80] ss:$12 sps:$4 sm:$0xff]  }
 0x167   : > { %2764 = vmatprep.subr.bf16.mxu0 %v10396_v16  ;;  %v11678_v16 = vld [vmem:[%s11422_s10 + $0xa8] ss:$12 sps:$4 sm:$0xff]  }
 0x169   : > { %2696 = vmatmul.mubr.bf16.gmra.mrb[40].mxu0 %v11623_v21 }
 0x16a   : > { %2705 = vmatprep.mubr.bf16.mxu0 %v11627_v22  ;;  %2765 = vmatpush1.bf16.msra.mxu0 %v10394_v17 }
 0x16b   : > { %2766 = vmatprep.subr.bf16.mxu0 %v10402_v19 }
 0x16c   : > { %2520 = vmatmul.mubr.bf16.gmra.mrb[76].mxu1 %v11500_v15  ;;  %v10363_v15 = vld [vmem:[#allocation7 + $0x44] ss:$24 sps:$4 sm:$0xff]  }
 0x16d   : > { %2562 = vmatprep.mubr.bf16.mxu1 %v13517_v0 }
 0x16e   : > { %2767 = vmatpush1.bf16.msra.mxu0 %v10400_v24  ;;  %v10422_v24 = vld [vmem:[#allocation7 + $0x224] ss:$24 sps:$4 sm:$0xff]  }
 0x16f   : > { %2768 = vmatprep.subr.bf16.mxu0 %v10409_v26 }
 0x171   : > { %2706 = vmatmul.mubr.bf16.gmra.mrb[44].mxu0 %v11636_v33 }
 0x172   : > { %2715 = vmatprep.mubr.bf16.mxu0 %v11640_v34  ;;  %2769 = vmatpush1.bf16.msra.mxu0 %v10407_v31 }
 0x173   : > { %2770 = vmatprep.subr.bf16.mxu0 %v10415_v25 }
 0x174   : > { %2563 = vmatmul.mubr.bf16.vlgmr.msra.gmra.mrb[48].mxu1 %v11620_v20 }
 0x175   : > { %2572 = vmatprep.mubr.bf16.mxu1 %v13517_v0  ;;  %2870 = vmatpush1.bf16.msra.mxu1 %v10357_v23  ;;  %v10416_v23 = vld [vmem:[#allocation7 + $0x1f0] ss:$24 sps:$4 sm:$0xff]  }
 0x176   : > { %2871 = vmatprep.subr.bf16.mxu1 %v10363_v15  ;;  %2771 = vmatpush1.bf16.msra.mxu0 %v10413_v30 }
 0x179   : > { %2872 = vmatpush1.bf16.msra.mxu1 %v10361_v27  ;;  %2716 = vmatmul.mubr.bf16.gmra.mrb[48].mxu0 %v11573_v53  ;;  %v10420_v27 = vld [vmem:[#allocation7 + $0x220] ss:$24 sps:$4 sm:$0xff]  }
 0x17a   : > { %2873 = vmatprep.subr.bf16.mxu1 %v10366_v28  ;;  %2725 = vmatprep.mubr.bf16.mxu0 %v11577_v62  ;;  %v10425_v28 = vld [vmem:[#allocation7 + $0x254] ss:$24 sps:$4 sm:$0xff]  }
 0x17c   : > { %2573 = vmatmul.mubr.bf16.gmra.mrb[52].mxu1 %v11633_v32 }
 0x17d   : > { %2582 = vmatprep.mubr.bf16.mxu1 %v13517_v0  ;;  %2874 = vmatpush1.bf16.msra.mxu1 %v10364_v29  ;;  %v11689_v29 = vld [vmem:[%s11422_s10 + $0x98] ss:$12 sps:$4 sm:$0xff]  }
 0x17e   : > { %2875 = vmatprep.subr.bf16.mxu1 %v10373_v38 }
 0x181   : > { %2876 = vmatpush1.bf16.msra.mxu1 %v10371_v40  ;;  %2726 = vmatmul.mubr.bf16.gmra.mrb[52].mxu0 %v11586_v2  ;;  %v10423_v40 = vld [vmem:[#allocation7 + $0x250] ss:$24 sps:$4 sm:$0xff]  }
 0x182   : > { %2877 = vmatprep.subr.bf16.mxu1 %v10379_v41  ;;  %2735 = vmatprep.mubr.bf16.mxu0 %v11590_v4 }
 0x184   : > { %2583 = vmatmul.mubr.bf16.gmra.mrb[56].mxu1 %v11646_v42 }
 0x185   : > { %2592 = vmatprep.mubr.bf16.mxu1 %v13517_v0  ;;  %2878 = vmatpush1.bf16.msra.mxu1 %v10377_v35  ;;  %v10428_v35 = vld [vmem:[#allocation7 + $0x284] ss:$24 sps:$4 sm:$0xff]  }
 0x186   : > { %2879 = vmatprep.subr.bf16.mxu1 %v10386_v43 }
 0x187   : > { %v8696_v36 = vpop.f32.mrb[0].mxu1 }
 0x188   : > { %v8697_v37 = vpop.f32.mrb[1].mxu1 }
 0x189   : > { %v11656_v51 = vadd.f32 %v8697_v37, %v8696_v36  ;;  %v8699_v39 = vpop.f32.mrb[2].mxu1  ;;  %2880 = vmatpush1.bf16.msra.mxu1 %v10384_v47  ;;  %2736 = vmatmul.mubr.bf16.gmra.mrb[56].mxu0 %v11602_v8  ;;  %v10426_v47 = vld [vmem:[#allocation7 + $0x280] ss:$24 sps:$4 sm:$0xff]  }
 0x18a   : > { %v8700_v56 = vpop.f32.mrb[3].mxu1  ;;  %2881 = vmatprep.subr.bf16.mxu1 %v10392_v49  ;;  %2745 = vmatprep.mubr.bf16.mxu0 %v11606_v9  ;;  %v10431_v49 = vld [vmem:[#allocation7 + $0x2b4] ss:$24 sps:$4 sm:$0xff]  }
 0x18b   : > { %v11659_v44 = vadd.f32 %v8700_v56, %v8699_v39  ;;  %v11700_v39 = vld [vmem:[%s11422_s10 + $0xb0] ss:$12 sps:$4 sm:$0xff]  }
 0x18c   : > { %2593 = vmatmul.mubr.bf16.gmra.mrb[60].mxu1 %v11653_v50 }
 0x18d   : > { %2602 = vmatprep.mubr.bf16.mxu1 %v13517_v0  ;;  %2882 = vmatpush1.bf16.msra.mxu1 %v10390_v55 }
 0x18e   : > { %2883 = vmatprep.subr.bf16.mxu1 %v10399_v57  ;;  %v10429_v57 = vld [vmem:[#allocation7 + $0x2b0] ss:$24 sps:$4 sm:$0xff]  }
 0x18f   : > { %v8702_v59 = vpop.f32.mrb[4].mxu1 }
 0x190   : > { %v8703_v46 = vpop.f32.mrb[5].mxu1 }
 0x191   : > { %v11667_v52 = vadd.f32 %v8703_v46, %v8702_v59  ;;  %v8705_v61 = vpop.f32.mrb[6].mxu1  ;;  %2884 = vmatpush1.bf16.msra.mxu1 %v10397_v45  ;;  %2746 = vmatmul.mubr.bf16.gmra.mrb[60].mxu0 %v11678_v16  ;;  %v10432_v46 = vld [vmem:[#allocation7 + $0x2e0] ss:$24 sps:$4 sm:$0xff]  }
 0x192   : > { %v8706_v63 = vpop.f32.mrb[7].mxu1  ;;  %2885 = vmatprep.subr.bf16.mxu1 %v10405_v58  ;;  %2788 = vmatprep.mubr.bf16.mxu0 %v13517_v0  ;;  %v10434_v58 = vld [vmem:[#allocation7 + $0x2e4] ss:$24 sps:$4 sm:$0xff]  }
 0x193   : > { %v11670_v3 = vadd.f32 %v8706_v63, %v8705_v61  ;;  %v10437_v61 = vld [vmem:[#allocation7 + $0x314] ss:$24 sps:$4 sm:$0xff]  }
 0x194   : > { %2603 = vmatmul.mubr.bf16.gmra.mrb[64].mxu1 %v11664_v60 }
 0x195   : > { %2612 = vmatprep.mubr.bf16.mxu1 %v13517_v0  ;;  %2886 = vmatpush1.bf16.msra.mxu1 %v10403_v48 }
 0x196   : > { %2887 = vmatprep.subr.bf16.mxu1 %v10412_v1 }
 0x197   : > { %v8708_v10 = vpop.f32.mrb[8].mxu1 }
 0x198   : > { %v8709_v11 = vpop.f32.mrb[9].mxu1 }
 0x199   : > { %v11681_v17 = vadd.f32 %v8709_v11, %v8708_v10  ;;  %v8711_v19 = vpop.f32.mrb[10].mxu1  ;;  %2888 = vmatpush1.bf16.msra.mxu1 %v10410_v6  ;;  %2789 = vmatmul.mubr.bf16.vlgmr.msra.gmra.mrb[32].mxu0 %v11620_v20  ;;  %v10440_v11 = vld [vmem:[#allocation7 + $0x344] ss:$24 sps:$4 sm:$0xff]  }
 0x19a   : > { %v8712_v15 = vpop.f32.mrb[11].mxu1  ;;  %2889 = vmatprep.subr.bf16.mxu1 %v10418_v7  ;;  %2798 = vmatprep.mubr.bf16.mxu0 %v13517_v0  ;;  %v10435_v7 = vld [vmem:[#allocation7 + $0x310] ss:$24 sps:$4 sm:$0xff]  }
 0x19b   : > { %v11684_v26 = vadd.f32 %v8712_v15, %v8711_v19 }
 0x19c   : > { %2613 = vmatmul.mubr.bf16.gmra.mrb[68].mxu1 %v11675_v14 }
 0x19d   : > { %2622 = vmatprep.mubr.bf16.mxu1 %v13517_v0  ;;  %2890 = vmatpush1.bf16.msra.mxu1 %v10416_v23  ;;  %v10443_v23 = vld [vmem:[#allocation7 + $0x374] ss:$24 sps:$4 sm:$0xff]  }
 0x19e   : > { %2891 = vmatprep.subr.bf16.mxu1 %v10422_v24 }
 0x19f   : > { %v8714_v31 = vpop.f32.mrb[12].mxu1 }
 0x1a0   : > { %v8715_v25 = vpop.f32.mrb[13].mxu1 }
 0x1a1   : > { %v11692_v38 = vadd.f32 %v8715_v25, %v8714_v31  ;;  %v8717_v30 = vpop.f32.mrb[14].mxu1  ;;  %2892 = vmatpush1.bf16.msra.mxu1 %v10420_v27  ;;  %2799 = vmatmul.mubr.bf16.gmra.mrb[36].mxu0 %v11633_v32  ;;  %v10441_v31 = vld [vmem:[#allocation7 + $0x370] ss:$24 sps:$4 sm:$0xff]  }
 0x1a2   : > { %v8718_v41 = vpop.f32.mrb[15].mxu1  ;;  %2893 = vmatprep.subr.bf16.mxu1 %v10425_v28  ;;  %2808 = vmatprep.mubr.bf16.mxu0 %v13517_v0 }
 0x1a3   : > { %v11695_v43 = vadd.f32 %v8718_v41, %v8717_v30 }
 0x1a4   : > { %2623 = vmatmul.mubr.bf16.gmra.mrb[72].mxu1 %v11689_v29 }
 0x1a5   : > { %2632 = vmatprep.mubr.bf16.mxu1 %v13517_v0  ;;  %2894 = vmatpush1.bf16.msra.mxu1 %v10423_v40  ;;  %v10449_v40 = vld [vmem:[#allocation7 + $0x3d4] ss:$24 sps:$4 sm:$0xff]  }
 0x1a6   : > { %2895 = vmatprep.subr.bf16.mxu1 %v10428_v35 }
 0x1a7   : > { %v8720_v36 = vpop.f32.mrb[16].mxu1 }
 0x1a8   : > { %v8721_v37 = vpop.f32.mrb[17].mxu1 }
 0x1a9   : > { %v11703_v55 = vadd.f32 %v8721_v37, %v8720_v36  ;;  %v8723_v56 = vpop.f32.mrb[18].mxu1  ;;  %2896 = vmatpush1.bf16.msra.mxu1 %v10426_v47  ;;  %2809 = vmatmul.mubr.bf16.gmra.mrb[40].mxu0 %v11646_v42  ;;  %v10447_v36 = vld [vmem:[#allocation7 + $0x3d0] ss:$24 sps:$4 sm:$0xff]  }
 0x1aa   : > { %v8724_v45 = vpop.f32.mrb[19].mxu1  ;;  %2897 = vmatprep.subr.bf16.mxu1 %v10431_v49  ;;  %2818 = vmatprep.mubr.bf16.mxu0 %v13517_v0 }
 0x1ab   : > { %v11706_v59 = vadd.f32 %v8724_v45, %v8723_v56 }
 0x1ac   : > { %2633 = vmatmul.mubr.bf16.gmra.mrb[76].mxu1 %v11700_v39 }
 0x1ad   : > { %2898 = vmatpush1.bf16.msra.mxu1 %v10429_v57  ;;  %2901 = vmatprep.mubr.bf16.mxu1 %v11582_v18  ;;  %v10438_v18 = vld [vmem:[#allocation7 + $0x340] ss:$24 sps:$4 sm:$0xff]   ;;  %v10455_v57 = vld [vmem:[#allocation7 + $0x434] ss:$24 sps:$4 sm:$0xff]  }
 0x1ae   : > { %2899 = vmatprep.subr.bf16.mxu1 %v10434_v58 }
 0x1af   : > { %v8726_v48 = vpop.f32.mrb[20].mxu1 }
 0x1b0   : > { %v8727_v63 = vpop.f32.mrb[21].mxu1 }
 0x1b1   : > { %v11711_v1 = vadd.f32 %v8727_v63, %v8726_v48  ;;  %v8729_v6 = vpop.f32.mrb[22].mxu1  ;;  %2900 = vmatpush1.bf16.msra.mxu1 %v10432_v46  ;;  %2819 = vmatmul.mubr.bf16.gmra.mrb[44].mxu0 %v11653_v50  ;;  %v10453_v63 = vld [vmem:[#allocation7 + $0x430] ss:$24 sps:$4 sm:$0xff]  }
 0x1b2   : > { %v8730_v10 = vpop.f32.mrb[23].mxu1  ;;  %2982 = vmatprep.subr.bf16.mxu1 %v10437_v61  ;;  %2828 = vmatprep.mubr.bf16.mxu0 %v13517_v0 }
 0x1b3   : > { %v11714_v19 = vadd.f32 %v8730_v10, %v8729_v6  ;;  %v10458_v6 = vld [vmem:[#allocation7 + $0x464] ss:$24 sps:$4 sm:$0xff]  }
 0x1b4   : > { %2902 = vmatmul.mubr.bf16.vlgmr.msra.gmra.mrb[80].mxu1 %v11594_v54  ;;  %v10446_v54 = vld [vmem:[#allocation7 + $0x3a4] ss:$24 sps:$4 sm:$0xff]  }
 0x1b5   : > { %2911 = vmatprep.mubr.bf16.mxu1 %v11598_v5  ;;  %2983 = vmatpush1.bf16.msra.mxu1 %v10435_v7  ;;  %v10444_v5 = vld [vmem:[#allocation7 + $0x3a0] ss:$24 sps:$4 sm:$0xff]  }
 0x1b6   : > { %2984 = vmatprep.subr.bf16.mxu1 %v10440_v11 }
 0x1b7   : > { %v8732_v15 = vpop.f32.mrb[24].mxu1 }
 0x1b8   : > { %v8733_v24 = vpop.f32.mrb[25].mxu1 }
 0x1b9   : > { %v11719_v27 = vadd.f32 %v8733_v24, %v8732_v15  ;;  %v8735_v28 = vpop.f32.mrb[26].mxu1  ;;  %2985 = vmatpush1.bf16.msra.mxu1 %v10438_v18  ;;  %2829 = vmatmul.mubr.bf16.gmra.mrb[48].mxu0 %v11664_v60 }
 0x1ba   : > { %v8736_v25 = vpop.f32.mrb[27].mxu1  ;;  %2986 = vmatprep.subr.bf16.mxu1 %v10443_v23  ;;  %2838 = vmatprep.mubr.bf16.mxu0 %v13517_v0 }
 0x1bb   : > { %v11722_v30 = vadd.f32 %v8736_v25, %v8735_v28 }
 0x1bc   : > { %2912 = vmatmul.mubr.bf16.gmra.mrb[84].mxu1 %v11610_v12  ;;  %v10452_v12 = vld [vmem:[#allocation7 + $0x404] ss:$24 sps:$4 sm:$0xff]  }
 0x1bd   : > { %2921 = vmatprep.mubr.bf16.mxu1 %v11614_v13  ;;  %2987 = vmatpush1.bf16.msra.mxu1 %v10441_v31  ;;  %v10450_v13 = vld [vmem:[#allocation7 + $0x400] ss:$24 sps:$4 sm:$0xff]  }
 0x1be   : > { %2988 = vmatprep.subr.bf16.mxu1 %v10446_v54 }
 0x1bf   : > { %v8738_v41 = vpop.f32.mrb[28].mxu1 }
 0x1c0   : > { %v8739_v35 = vpop.f32.mrb[29].mxu1 }
 0x1c1   : > { %v11727_v47 = vadd.f32 %v8739_v35, %v8738_v41  ;;  %v8741_v49 = vpop.f32.mrb[30].mxu1  ;;  %2989 = vmatpush1.bf16.msra.mxu1 %v10444_v5  ;;  %2839 = vmatmul.mubr.bf16.gmra.mrb[52].mxu0 %v11675_v14 }
 0x1c2   : > { %v8742_v37 = vpop.f32.mrb[31].mxu1  ;;  %2990 = vmatprep.subr.bf16.mxu1 %v10449_v40  ;;  %2848 = vmatprep.mubr.bf16.mxu0 %v13517_v0 }
 0x1c3   : > { %v8743_v56 = vadd.f32 %v8742_v37, %v8741_v49 }
 0x1c4   : > { %2922 = vmatmul.mubr.bf16.gmra.mrb[88].mxu1 %v11623_v21 }
 0x1c5   : > { %2931 = vmatprep.mubr.bf16.mxu1 %v11627_v22  ;;  %2991 = vmatpush1.bf16.msra.mxu1 %v10447_v36 }
 0x1c6   : > { %2992 = vmatprep.subr.bf16.mxu1 %v10452_v12 }
 0x1c7   : > { %v9042_v45 = vpop.f32.mrb[32].mxu1 }
 0x1c8   : > { %v1347_v58 = vadd.f32 %v9042_v45, %v11667_v52  ;;  %v1338_v46 = vpop.f32.mrb[33].mxu1 }
 0x1c9   : > { %v1339_v61 = vadd.f32 %v11656_v51, %v1338_v46  ;;  %v9043_v48 = vpop.f32.mrb[34].mxu1  ;;  %2993 = vmatpush1.bf16.msra.mxu1 %v10450_v13  ;;  %v10456_v51 = vld [vmem:[#allocation7 + $0x460] ss:$24 sps:$4 sm:$0xff]   ;;  %2849 = vmatmul.mubr.bf16.gmra.mrb[56].mxu0 %v11689_v29 }
 0x1ca   : > { %v1350_v21 = vadd.f32 %v9043_v48, %v11670_v3  ;;  %v1341_v22 = vpop.f32.mrb[35].mxu1  ;;  %2994 = vmatprep.subr.bf16.mxu1 %v10455_v57  ;;  %2858 = vmatprep.mubr.bf16.mxu0 %v13517_v0 }
 0x1cb   : > { %v1342_v7 = vadd.f32 %v11659_v44, %v1341_v22 }
 0x1cc   : > { %v11738_v10 = vpack.c.bf16 %v1350_v21, %v1347_v58  ;;  %2932 = vmatmul.mubr.bf16.gmra.mrb[92].mxu1 %v11636_v33 }
 0x1cd   : > { %v11741_v52 = vpack.c.bf16 %v1342_v7, %v1339_v61  ;;  %2941 = vmatprep.mubr.bf16.mxu1 %v11640_v34  ;;  %2995 = vmatpush1.bf16.msra.mxu1 %v10453_v63 }
 0x1ce   : > { %13617 = vst [vmem:[#allocation16_spill] sm:$0xff] %v11738_v10  ;;  %2996 = vmatprep.subr.bf16.mxu1 %v10458_v6 }
 0x1cf   : > { %13618 = vst [vmem:[#allocation17_spill] sm:$0xff] %v11741_v52  ;;  %v9046_v11 = vpop.f32.mrb[36].mxu1 }
 0x1d0   : > { %v1363_v18 = vadd.f32 %v9046_v11, %v11692_v38  ;;  %v1354_v3 = vpop.f32.mrb[37].mxu1 }
 0x1d1   : > { %v1355_v23 = vadd.f32 %v11681_v17, %v1354_v3  ;;  %v9047_v44 = vpop.f32.mrb[38].mxu1  ;;  %2997 = vmatpush1.bf16.msra.mxu1 %v10456_v51  ;;  %2859 = vmatmul.mubr.bf16.gmra.mrb[60].mxu0 %v11700_v39 }
 0x1d2   : > { %v1366_v33 = vadd.f32 %v9047_v44, %v11695_v43  ;;  %v1357_v15 = vpop.f32.mrb[39].mxu1 }
 0x1d3   : > { %v1358_v34 = vadd.f32 %v11684_v26, %v1357_v15 }
 0x1d4   : > { %v11750_v24 = vpack.c.bf16 %v1366_v33, %v1363_v18  ;;  %2942 = vmatmul.mubr.bf16.gmra.mrb[96].mxu1 %v11573_v53 }
 0x1d5   : > { %v11753_v28 = vpack.c.bf16 %v1358_v34, %v1355_v23  ;;  %2951 = vmatprep.mubr.bf16.mxu1 %v11577_v62 }
 0x1d6   : > { %13619 = vst [vmem:[#allocation18_spill] sm:$0xff] %v11750_v24 }
 0x1d7   : > { %13620 = vst [vmem:[#allocation19_spill] sm:$0xff] %v11753_v28  ;;  %v9050_v38 = vpop.f32.mrb[40].mxu1 }
 0x1d8   : > { %v1379_v17 = vadd.f32 %v9050_v38, %v11711_v1  ;;  %v1370_v31 = vpop.f32.mrb[41].mxu1 }
 0x1d9   : > { %v1371_v25 = vadd.f32 %v11703_v55, %v1370_v31  ;;  %v9051_v43 = vpop.f32.mrb[42].mxu1 }
 0x1da   : > { %v1382_v54 = vadd.f32 %v9051_v43, %v11714_v19  ;;  %v1373_v26 = vpop.f32.mrb[43].mxu1 }
 0x1db   : > { %v1374_v5 = vadd.f32 %v11706_v59, %v1373_v26 }
 0x1dc   : > { %v11761_v40 = vpack.c.bf16 %v1382_v54, %v1379_v17  ;;  %2952 = vmatmul.mubr.bf16.gmra.mrb[100].mxu1 %v11586_v2 }
 0x1dd   : > { %v11764_v53 = vpack.c.bf16 %v1374_v5, %v1371_v25  ;;  %2961 = vmatprep.mubr.bf16.mxu1 %v11590_v4 }
 0x1de   : > { %13621 = vst [vmem:[#allocation20_spill] sm:$0xff] %v11761_v40 }
 0x1df   : > { %13622 = vst [vmem:[#allocation21_spill] sm:$0xff] %v11764_v53  ;;  %v9054_v62 = vpop.f32.mrb[44].mxu1 }
 0x1e0   : > { %v1395_v1 = vadd.f32 %v9054_v62, %v11727_v47  ;;  %v1386_v41 = vpop.f32.mrb[45].mxu1 }
 0x1e1   : > { %v1387_v55 = vadd.f32 %v11719_v27, %v1386_v41  ;;  %v9055_v35 = vpop.f32.mrb[46].mxu1 }
 0x1e2   : > { %v1398_v49 = vadd.f32 %v9055_v35, %v8743_v56  ;;  %v1389_v19 = vpop.f32.mrb[47].mxu1 }
 0x1e3   : > { %v1390_v36 = vadd.f32 %v11722_v30, %v1389_v19 }
 0x1e4   : > { %v11770_v59 = vpack.c.bf16 %v1398_v49, %v1395_v1  ;;  %2962 = vmatmul.mubr.bf16.gmra.mrb[104].mxu1 %v11602_v8 }
 0x1e5   : > { %v11773_v2 = vpack.c.bf16 %v1390_v36, %v1387_v55  ;;  %2971 = vmatprep.mubr.bf16.mxu1 %v11606_v9 }
 0x1e6   : > { %13623 = vst [vmem:[#allocation22_spill] sm:$0xff] %v11770_v59 }
 0x1e7   : > { %13624 = vst [vmem:[#allocation23_spill] sm:$0xff] %v11773_v2 }
 0x1ec   : > { %2972 = vmatmul.mubr.bf16.gmra.mrb[108].mxu1 %v11678_v16  ;;  %v1128_v4 = vpop.f32.mrb[0].mxu0 }
 0x1ed   : > { %3014 = vmatprep.mubr.bf16.mxu1 %v13517_v0  ;;  %v1130_v27 = vpop.f32.mrb[1].mxu0 }
 0x1ee   : > { %v1132_v47 = vpop.f32.mrb[2].mxu0 }
 0x1ef   : > { %v11780_v30 = vpack.c.bf16 %v1132_v47, %v1128_v4  ;;  %v1134_v37 = vpop.f32.mrb[3].mxu0 }
 0x1f0   : > { %v11782_v12 = vpack.c.bf16 %v1134_v37, %v1130_v27 }
 0x1f2   : > { %13625 = vst [vmem:[#allocation24_spill] sm:$0xff] %v11782_v12 }
 0x1f4   : > { %3015 = vmatmul.mubr.bf16.vlgmr.msra.gmra.mrb[80].mxu1 %v11620_v20  ;;  %v1138_v8 = vpop.f32.mrb[4].mxu0 }
 0x1f5   : > { %3024 = vmatprep.mubr.bf16.mxu1 %v13517_v0  ;;  %v1140_v9 = vpop.f32.mrb[5].mxu0 }
 0x1f6   : > { %v1142_v16 = vpop.f32.mrb[6].mxu0 }
 0x1f7   : > { %v11786_v56 = vpack.c.bf16 %v1142_v16, %v1138_v8  ;;  %v1144_v13 = vpop.f32.mrb[7].mxu0 }
 0x1f8   : > { %v11788_v20 = vpack.c.bf16 %v1144_v13, %v1140_v9 }
 0x1fa   : > { %13626 = vst [vmem:[#allocation25_spill] sm:$0xff] %v11788_v20 }
 0x1fc   : > { %3025 = vmatmul.mubr.bf16.gmra.mrb[84].mxu1 %v11633_v32  ;;  %v1148_v57 = vpop.f32.mrb[8].mxu0 }
 0x1fd   : > { %3034 = vmatprep.mubr.bf16.mxu1 %v13517_v0  ;;  %v1150_v45 = vpop.f32.mrb[9].mxu0 }
 0x1fe   : > { %v1152_v58 = vpop.f32.mrb[10].mxu0 }
 0x1ff   : > { %v11792_v46 = vpack.c.bf16 %v1152_v58, %v1148_v57  ;;  %v1154_v61 = vpop.f32.mrb[11].mxu0 }
 0x200   : > { %v11794_v32 = vpack.c.bf16 %v1154_v61, %v1150_v45 }
 0x202   : > { %13627 = vst [vmem:[#allocation26_spill] sm:$0xff] %v11794_v32 }
 0x204   : > { %3035 = vmatmul.mubr.bf16.gmra.mrb[88].mxu1 %v11646_v42  ;;  %v1158_v48 = vpop.f32.mrb[12].mxu0 }
 0x205   : > { %3044 = vmatprep.mubr.bf16.mxu1 %v13517_v0  ;;  %v1160_v63 = vpop.f32.mrb[13].mxu0 }
 0x206   : > { %v1162_v21 = vpop.f32.mrb[14].mxu0 }
 0x207   : > { %v11798_v22 = vpack.c.bf16 %v1162_v21, %v1158_v48  ;;  %v1164_v6 = vpop.f32.mrb[15].mxu0 }
 0x208   : > { %v11800_v42 = vpack.c.bf16 %v1164_v6, %v1160_v63 }
 0x20a   : > { %13628 = vst [vmem:[#allocation27_spill] sm:$0xff] %v11800_v42 }
 0x20c   : > { %3045 = vmatmul.mubr.bf16.gmra.mrb[92].mxu1 %v11653_v50  ;;  %v1168_v7 = vpop.f32.mrb[16].mxu0 }
 0x20d   : > { %3054 = vmatprep.mubr.bf16.mxu1 %v13517_v0  ;;  %v1170_v51 = vpop.f32.mrb[17].mxu0 }
 0x20e   : > { %v1172_v11 = vpop.f32.mrb[18].mxu0 }
 0x20f   : > { %v11804_v18 = vpack.c.bf16 %v1172_v11, %v1168_v7  ;;  %v1174_v3 = vpop.f32.mrb[19].mxu0 }
 0x210   : > { %v11806_v50 = vpack.c.bf16 %v1174_v3, %v1170_v51 }
 0x212   : > { %13629 = vst [vmem:[#allocation28_spill] sm:$0xff] %v11806_v50 }
 0x214   : > { %3055 = vmatmul.mubr.bf16.gmra.mrb[96].mxu1 %v11664_v60  ;;  %v1178_v23 = vpop.f32.mrb[20].mxu0 }
 0x215   : > { %3064 = vmatprep.mubr.bf16.mxu1 %v13517_v0  ;;  %v1180_v44 = vpop.f32.mrb[21].mxu0 }
 0x216   : > { %v1182_v33 = vpop.f32.mrb[22].mxu0 }
 0x217   : > { %v11810_v15 = vpack.c.bf16 %v1182_v33, %v1178_v23  ;;  %v1184_v34 = vpop.f32.mrb[23].mxu0 }
 0x218   : > { %v11812_v60 = vpack.c.bf16 %v1184_v34, %v1180_v44 }
 0x21a   : > { %13630 = vst [vmem:[#allocation29_spill] sm:$0xff] %v11812_v60 }
 0x21c   : > { %3065 = vmatmul.mubr.bf16.gmra.mrb[100].mxu1 %v11675_v14  ;;  %v1188_v38 = vpop.f32.mrb[24].mxu0 }
 0x21d   : > { %3074 = vmatprep.mubr.bf16.mxu1 %v13517_v0  ;;  %v1190_v17 = vpop.f32.mrb[25].mxu0 }
 0x21e   : > { %v1192_v31 = vpop.f32.mrb[26].mxu0 }
 0x21f   : > { %v11816_v25 = vpack.c.bf16 %v1192_v31, %v1188_v38  ;;  %v1194_v43 = vpop.f32.mrb[27].mxu0 }
 0x220   : > { %v11818_v14 = vpack.c.bf16 %v1194_v43, %v1190_v17 }
 0x222   : > { %13631 = vst [vmem:[#allocation30_spill] sm:$0xff] %v11818_v14 }
 0x224   : > { %3075 = vmatmul.mubr.bf16.gmra.mrb[104].mxu1 %v11689_v29  ;;  %v1198_v54 = vpop.f32.mrb[28].mxu0 }
 0x225   : > { %3084 = vmatprep.mubr.bf16.mxu1 %v13517_v0  ;;  %v1200_v26 = vpop.f32.mrb[29].mxu0 }
 0x226   : > { %v1202_v5 = vpop.f32.mrb[30].mxu0 }
 0x227   : > { %v11823_v62 = vpack.c.bf16 %v1202_v5, %v1198_v54  ;;  %v1204_v29 = vpop.f32.mrb[31].mxu0 }
 0x228   : > { %v11825_v1 = vpack.c.bf16 %v1204_v29, %v1200_v26 }
 0x22a   : > { %13632 = vst [vmem:[#allocation31_spill] sm:$0xff] %v11825_v1 }
 0x22c   : > { %3085 = vmatmul.mubr.bf16.gmra.mrb[108].mxu1 %v11700_v39 }
 0x22d   : > { %9072 = vmatprep.mubr.msk.bf16.mxu1 %vm3211_vm0, %v11780_v30 }
 0x247   : > { %v2564_v41 = vpop.f32.mrb[48].mxu1 }
 0x248   : > { %v2566_v55 = vpop.f32.mrb[49].mxu1 }
 0x249   : > { %v2568_v35 = vpop.f32.mrb[50].mxu1 }
 0x24a   : > { %v3095_v49 = vpack.c.bf16 %v2568_v35, %v2564_v41  ;;  %v2570_v19 = vpop.f32.mrb[51].mxu1 }
 0x24b   : > { %v11827_v36 = vpack.c.bf16 %v2570_v19, %v2566_v55 }
 0x24c   : > { %3662 = vrot.lane.b32.xlu0 %v3095_v49, %s11170_s26  ;;  %9952 = vmatprep.subr.msk.bf16.mxu1 %vm3211_vm0, %v3095_v49  ;;  %v3237_v39 = vsel %vm3211_vm0, %v3095_v49, 0 }
 0x24d   : > { %13633 = vst [vmem:[#allocation32_spill] sm:$0xff] %v11827_v36  ;;  %9057 = vmatpush3.bf16.xpose.msra.mxu1 %v3237_v39 }
 0x24f   : > { %v2574_v4 = vpop.f32.mrb[52].mxu1 }
 0x250   : > { %v2576_v27 = vpop.f32.mrb[53].mxu1 }
 0x251   : > { %v2578_v47 = vpop.f32.mrb[54].mxu1 }
 0x252   : > { %v3101_v37 = vpack.c.bf16 %v2578_v47, %v2574_v4  ;;  %v2580_v8 = vpop.f32.mrb[55].mxu1 }
 0x253   : > { %v11832_v9 = vpack.c.bf16 %v2580_v8, %v2576_v27 }
 0x254   : > { %3664 = vrot.lane.b32.xlu1 %v3101_v37, %s11170_s26  ;;  %9953 = vmatprep.subr.msk.bf16.mxu1 %vm3211_vm0, %v3101_v37  ;;  %v3240_v16 = vsel %vm3211_vm0, %v3101_v37, 0 }
 0x255   : > { %13634 = vst [vmem:[#allocation33_spill] sm:$0xff] %v11832_v9  ;;  %9059 = vmatpush3.bf16.xpose.msra.mxu1 %v3240_v16 }
 0x257   : > { %v2584_v13 = vpop.f32.mrb[56].mxu1 }
 0x258   : > { %v2586_v57 = vpop.f32.mrb[57].mxu1 }
 0x259   : > { %v2588_v45 = vpop.f32.mrb[58].mxu1 }
 0x25a   : > { %v11837_v58 = vpack.c.bf16 %v2588_v45, %v2584_v13  ;;  %v2590_v61 = vpop.f32.mrb[59].mxu1 }
 0x25b   : > { %v11839_v48 = vpack.c.bf16 %v2590_v61, %v2586_v57 }
 0x25c   : > { %9954 = vmatprep.subr.msk.bf16.mxu1 %vm3211_vm0, %v11837_v58  ;;  %v3243_v63 = vsel %vm3211_vm0, %v11837_v58, 0 }
 0x25d   : > { %13635 = vst [vmem:[#allocation34_spill] sm:$0xff] %v11839_v48  ;;  %9061 = vmatpush3.bf16.xpose.msra.mxu1 %v3243_v63 }
 0x25f   : > { %v2594_v21 = vpop.f32.mrb[60].mxu1 }
 0x260   : > { %v2596_v6 = vpop.f32.mrb[61].mxu1 }
 0x261   : > { %v2598_v7 = vpop.f32.mrb[62].mxu1 }
 0x262   : > { %v11845_v51 = vpack.c.bf16 %v2598_v7, %v2594_v21  ;;  %v2600_v11 = vpop.f32.mrb[63].mxu1 }
 0x263   : > { %v11847_v3 = vpack.c.bf16 %v2600_v11, %v2596_v6 }
 0x264   : > { %9955 = vmatprep.subr.msk.bf16.mxu1 %vm3211_vm0, %v11845_v51  ;;  %v3246_v23 = vsel %vm3211_vm0, %v11845_v51, 0 }
 0x265   : > { %13636 = vst [vmem:[#allocation35_spill] sm:$0xff] %v11847_v3  ;;  %9063 = vmatpush3.bf16.xpose.msra.mxu1 %v3246_v23 }
 0x267   : > { %v2604_v44 = vpop.f32.mrb[64].mxu1 }
 0x268   : > { %v2606_v33 = vpop.f32.mrb[65].mxu1 }
 0x269   : > { %v2608_v34 = vpop.f32.mrb[66].mxu1 }
 0x26a   : > { %v11853_v38 = vpack.c.bf16 %v2608_v34, %v2604_v44  ;;  %v2610_v17 = vpop.f32.mrb[67].mxu1 }
 0x26b   : > { %v11855_v31 = vpack.c.bf16 %v2610_v17, %v2606_v33 }
 0x26c   : > { %9956 = vmatprep.subr.msk.bf16.mxu1 %vm3211_vm0, %v11853_v38  ;;  %v3249_v43 = vsel %vm3211_vm0, %v11853_v38, 0  ;;  %v2790_v35 = vpop.f32.mrb[32].mxu0 }
 0x26d   : > { %13637 = vst [vmem:[#allocation36_spill] sm:$0xff] %v11855_v31  ;;  %9065 = vmatpush3.bf16.xpose.msra.mxu1 %v3249_v43  ;;  %v2792_v19 = vpop.f32.mrb[33].mxu0 }
 0x26e   : > { %v2794_v39 = vpop.f32.mrb[34].mxu0 }
 0x26f   : > { %v2614_v54 = vpop.f32.mrb[68].mxu1  ;;  %v11869_v4 = vpack.c.bf16 %v2794_v39, %v2790_v35  ;;  %v2796_v27 = vpop.f32.mrb[35].mxu0 }
 0x270   : > { %v2616_v26 = vpop.f32.mrb[69].mxu1  ;;  %v11871_v37 = vpack.c.bf16 %v2796_v27, %v2792_v19 }
 0x271   : > { %v2618_v5 = vpop.f32.mrb[70].mxu1  ;;  %13639 = vst [vmem:[#allocation38_spill] sm:$0xff] %v11869_v4 }
 0x272   : > { %v11861_v29 = vpack.c.bf16 %v2618_v5, %v2614_v54  ;;  %v2620_v41 = vpop.f32.mrb[71].mxu1  ;;  %9088 = vmatprep.subr.bf16.mxu0 %v11871_v37 }
 0x273   : > { %v11863_v55 = vpack.c.bf16 %v2620_v41, %v2616_v26  ;;  %9089 = vmatpush3.bf16.msra.mxu0 %v11871_v37 }
 0x274   : > { %9957 = vmatprep.subr.msk.bf16.mxu1 %vm3211_vm0, %v11861_v29  ;;  %v3252_v49 = vsel %vm3211_vm0, %v11861_v29, 0  ;;  %v2800_v61 = vpop.f32.mrb[36].mxu0 }
 0x275   : > { %13638 = vst [vmem:[#allocation37_spill] sm:$0xff] %v11863_v55  ;;  %9067 = vmatpush3.bf16.xpose.msra.mxu1 %v3252_v49  ;;  %v2802_v21 = vpop.f32.mrb[37].mxu0 }
 0x276   : > { %v2804_v6 = vpop.f32.mrb[38].mxu0 }
 0x277   : > { %v2624_v47 = vpop.f32.mrb[72].mxu1  ;;  %v11883_v7 = vpack.c.bf16 %v2804_v6, %v2800_v61  ;;  %v2806_v11 = vpop.f32.mrb[39].mxu0 }
 0x278   : > { %v2626_v8 = vpop.f32.mrb[73].mxu1  ;;  %v11885_v44 = vpack.c.bf16 %v2806_v11, %v2802_v21 }
 0x279   : > { %v2628_v16 = vpop.f32.mrb[74].mxu1  ;;  %13641 = vst [vmem:[#allocation40_spill] sm:$0xff] %v11883_v7 }
 0x27a   : > { %v11874_v13 = vpack.c.bf16 %v2628_v16, %v2624_v47  ;;  %v2630_v57 = vpop.f32.mrb[75].mxu1  ;;  %9090 = vmatprep.subr.bf16.mxu0 %v11885_v44 }
 0x27b   : > { %v11877_v45 = vpack.c.bf16 %v2630_v57, %v2626_v8  ;;  %9091 = vmatpush3.bf16.msra.mxu0 %v11885_v44 }
 0x27c   : > { %9958 = vmatprep.subr.msk.bf16.mxu1 %vm3211_vm0, %v11874_v13  ;;  %v3255_v63 = vsel %vm3211_vm0, %v11874_v13, 0  ;;  %v2810_v26 = vpop.f32.mrb[40].mxu0 }
 0x27d   : > { %13640 = vst [vmem:[#allocation39_spill] sm:$0xff] %v11877_v45  ;;  %9069 = vmatpush3.bf16.xpose.msra.mxu1 %v3255_v63  ;;  %v2812_v41 = vpop.f32.mrb[41].mxu0 }
 0x27e   : > { %v2814_v35 = vpop.f32.mrb[42].mxu0 }
 0x27f   : > { %v2634_v23 = vpop.f32.mrb[76].mxu1  ;;  %v11897_v49 = vpack.c.bf16 %v2814_v35, %v2810_v26  ;;  %v2816_v19 = vpop.f32.mrb[43].mxu0 }
 0x280   : > { %v2636_v33 = vpop.f32.mrb[77].mxu1  ;;  %v11899_v39 = vpack.c.bf16 %v2816_v19, %v2812_v41 }
 0x281   : > { %v2638_v34 = vpop.f32.mrb[78].mxu1  ;;  %13643 = vst [vmem:[#allocation42_spill] sm:$0xff] %v11897_v49 }
 0x282   : > { %v11888_v17 = vpack.c.bf16 %v2638_v34, %v2634_v23  ;;  %v2640_v43 = vpop.f32.mrb[79].mxu1  ;;  %9092 = vmatprep.subr.bf16.mxu0 %v11899_v39 }
 0x283   : > { %v11891_v54 = vpack.c.bf16 %v2640_v43, %v2636_v33  ;;  %9093 = vmatpush3.bf16.msra.mxu0 %v11899_v39 }
 0x284   : > { %9959 = vmatprep.subr.msk.bf16.mxu1 %vm3211_vm0, %v11888_v17  ;;  %v3258_v5 = vsel %vm3211_vm0, %v11888_v17, 0  ;;  %v2820_v27 = vpop.f32.mrb[44].mxu0 }
 0x285   : > { %13642 = vst [vmem:[#allocation41_spill] sm:$0xff] %v11891_v54  ;;  %9071 = vmatpush3.bf16.xpose.msra.mxu1 %v3258_v5  ;;  %v2822_v47 = vpop.f32.mrb[45].mxu0 }
 0x286   : > { %v2824_v8 = vpop.f32.mrb[46].mxu0 }
 0x287   : > { %v11907_v16 = vpack.c.bf16 %v2824_v8, %v2820_v27  ;;  %v2826_v57 = vpop.f32.mrb[47].mxu0 }
 0x288   : > { %v11909_v61 = vpack.c.bf16 %v2826_v57, %v2822_v47 }
 0x289   : > { %13644 = vst [vmem:[#allocation43_spill] sm:$0xff] %v11907_v16 }
 0x28a   : > { %13645 = vst [vmem:[#allocation44_spill] sm:$0xff] %v11909_v61  ;;  %9094 = vmatprep.subr.bf16.mxu0 %v11909_v61 }
 0x28b   : > { %9095 = vmatpush3.bf16.msra.mxu0 %v11909_v61 }
 0x28c   : > { %9073 = vmatmul.mubr.msk.bf16.vlgmr.msra.gmra.mrb[112].mxu1 %vm3211_vm0, %v11786_v56  ;;  %v2830_v63 = vpop.f32.mrb[48].mxu0 }
 0x28d   : > { %9076 = vmatprep.mubr.msk.bf16.mxu1 %vm3211_vm0, %v11792_v46  ;;  %v2832_v21 = vpop.f32.mrb[49].mxu0 }
 0x28e   : > { %v2834_v6 = vpop.f32.mrb[50].mxu0 }
 0x28f   : > { %v11917_v11 = vpack.c.bf16 %v2834_v6, %v2830_v63  ;;  %v2836_v23 = vpop.f32.mrb[51].mxu0 }
 0x290   : > { %v11919_v33 = vpack.c.bf16 %v2836_v23, %v2832_v21 }
 0x291   : > { %13646 = vst [vmem:[#allocation45_spill] sm:$0xff] %v11917_v11 }
 0x292   : > { %13647 = vst [vmem:[#allocation46_spill] sm:$0xff] %v11919_v33  ;;  %9096 = vmatprep.subr.bf16.mxu0 %v11919_v33 }
 0x293   : > { %9097 = vmatpush3.bf16.msra.mxu0 %v11919_v33 }
 0x294   : > { %9077 = vmatmul.mubr.msk.bf16.gmra.mrb[116].mxu1 %vm3211_vm0, %v11798_v22  ;;  %v2840_v34 = vpop.f32.mrb[52].mxu0 }
 0x295   : > { %9080 = vmatprep.mubr.msk.bf16.mxu1 %vm3211_vm0, %v11804_v18  ;;  %v2842_v43 = vpop.f32.mrb[53].mxu0 }
 0x296   : > { %v2844_v26 = vpop.f32.mrb[54].mxu0 }
 0x297   : > { %v11927_v5 = vpack.c.bf16 %v2844_v26, %v2840_v34  ;;  %v2846_v41 = vpop.f32.mrb[55].mxu0 }
 0x298   : > { %v11929_v35 = vpack.c.bf16 %v2846_v41, %v2842_v43 }
 0x299   : > { %13648 = vst [vmem:[#allocation47_spill] sm:$0xff] %v11927_v5 }
 0x29a   : > { %13649 = vst [vmem:[#allocation48_spill] sm:$0xff] %v11929_v35  ;;  %9098 = vmatprep.subr.bf16.mxu0 %v11929_v35 }
 0x29b   : > { %9099 = vmatpush3.bf16.msra.mxu0 %v11929_v35 }
 0x29c   : > { %9081 = vmatmul.mubr.msk.bf16.gmra.mrb[120].mxu1 %vm3211_vm0, %v11810_v15  ;;  %v2850_v19 = vpop.f32.mrb[56].mxu0 }
 0x29d   : > { %9084 = vmatprep.mubr.msk.bf16.mxu1 %vm3211_vm0, %v11816_v25  ;;  %v2852_v27 = vpop.f32.mrb[57].mxu0 }
 0x29e   : > { %v2854_v47 = vpop.f32.mrb[58].mxu0 }
 0x29f   : > { %v11935_v8 = vpack.c.bf16 %v2854_v47, %v2850_v19  ;;  %v2856_v57 = vpop.f32.mrb[59].mxu0 }
 0x2a0   : > { %v11937_v63 = vpack.c.bf16 %v2856_v57, %v2852_v27 }
 0x2a1   : > { %13650 = vst [vmem:[#allocation49_spill] sm:$0xff] %v11935_v8 }
 0x2a2   : > { %13651 = vst [vmem:[#allocation50_spill] sm:$0xff] %v11937_v63  ;;  %9100 = vmatprep.subr.bf16.mxu0 %v11937_v63 }
 0x2a3   : > { %9101 = vmatpush3.bf16.msra.mxu0 %v11937_v63 }
 0x2a4   : > { %9085 = vmatmul.mubr.msk.bf16.gmra.mrb[124].mxu1 %vm3211_vm0, %v11823_v62  ;;  %v2860_v21 = vpop.f32.mrb[60].mxu0 }
 0x2a5   : > { %v2862_v6 = vpop.f32.mrb[61].mxu0 }
 0x2a6   : > { %v2864_v23 = vpop.f32.mrb[62].mxu0 }
 0x2a7   : > { %v11941_v34 = vpack.c.bf16 %v2864_v23, %v2860_v21  ;;  %v2866_v43 = vpop.f32.mrb[63].mxu0 }
 0x2a8   : > { %v11943_v26 = vpack.c.bf16 %v2866_v43, %v2862_v6 }
 0x2a9   : > { %13652 = vst [vmem:[#allocation51_spill] sm:$0xff] %v11941_v34 }
 0x2aa   : > { %13653 = vst [vmem:[#allocation52_spill] sm:$0xff] %v11943_v26  ;;  %9102 = vmatprep.subr.bf16.mxu0 %v11943_v26 }
 0x2ab   : > { %9103 = vmatpush3.bf16.msra.mxu0 %v11943_v26 }
 0x2be   : > { %v11947_v41 = vpop.permute.xlu0 %3662 }
 0x2bf   : > { %9960 = vmatprep.subr.msk.bf16.mxu0 %vm3211_vm0, %v11947_v41 }
 0x2c7   : > { %v3016_v19 = vpop.f32.mrb[80].mxu1 }
 0x2c8   : > { %v3018_v27 = vpop.f32.mrb[81].mxu1 }
 0x2c9   : > { %v3020_v47 = vpop.f32.mrb[82].mxu1 }
 0x2ca   : > { %v11951_v57 = vpack.c.bf16 %v3020_v47, %v3016_v19  ;;  %v3022_v0 = vpop.f32.mrb[83].mxu1 }
 0x2cb   : > { %v11953_v21 = vpack.c.bf16 %v3022_v0, %v3018_v27 }
 0x2cc   : > { %13654 = vst [vmem:[#allocation53_spill] sm:$0xff] %v11951_v57 }
 0x2cd   : > { %13655 = vst [vmem:[#allocation54_spill] sm:$0xff] %v11953_v21 }
 0x2cf   : > { %v3026_v23 = vpop.f32.mrb[84].mxu1 }
 0x2d0   : > { %v3028_v6 = vpop.f32.mrb[85].mxu1 }
 0x2d1   : > { %v3030_v43 = vpop.f32.mrb[86].mxu1 }
 0x2d2   : > { %v11955_v59 = vpack.c.bf16 %v3030_v43, %v3026_v23  ;;  %v3032_v2 = vpop.f32.mrb[87].mxu1 }
 0x2d3   : > { %v11957_v40 = vpack.c.bf16 %v3032_v2, %v3028_v6 }
 0x2d4   : > { %13656 = vst [vmem:[#allocation55_spill] sm:$0xff] %v11955_v59 }
 0x2d5   : > { %13657 = vst [vmem:[#allocation56_spill] sm:$0xff] %v11957_v40 }
 0x2d7   : > { %v3036_v53 = vpop.f32.mrb[88].mxu1 }
 0x2d8   : > { %v3038_v24 = vpop.f32.mrb[89].mxu1 }
 0x2d9   : > { %v3040_v28 = vpop.f32.mrb[90].mxu1 }
 0x2da   : > { %v11959_v10 = vpack.c.bf16 %v3040_v28, %v3036_v53  ;;  %v3042_v52 = vpop.f32.mrb[91].mxu1 }
 0x2db   : > { %v11961_v34 = vpack.c.bf16 %v3042_v52, %v3038_v24 }
 0x2dc   : > { %13658 = vst [vmem:[#allocation57_spill] sm:$0xff] %v11959_v10 }
 0x2dd   : > { %13659 = vst [vmem:[#allocation58_spill] sm:$0xff] %v11961_v34 }
 0x2df   : > { %v3046_v19 = vpop.f32.mrb[92].mxu1 }
 0x2e0   : > { %v3048_v47 = vpop.f32.mrb[93].mxu1 }
 0x2e1   : > { %v3050_v0 = vpop.f32.mrb[94].mxu1 }
 0x2e2   : > { %v11963_v27 = vpack.c.bf16 %v3050_v0, %v3046_v19  ;;  %v3052_v8 = vpop.f32.mrb[95].mxu1 }
 0x2e3   : > { %v11965_v5 = vpack.c.bf16 %v3052_v8, %v3048_v47 }
 0x2e4   : > { %13660 = vst [vmem:[#allocation59_spill] sm:$0xff] %v11963_v27 }
 0x2e5   : > { %13661 = vst [vmem:[#allocation60_spill] sm:$0xff] %v11965_v5 }
 0x2e7   : > { %v3056_v23 = vpop.f32.mrb[96].mxu1 }
 0x2e8   : > { %v3058_v43 = vpop.f32.mrb[97].mxu1 }
 0x2e9   : > { %v3060_v2 = vpop.f32.mrb[98].mxu1 }
 0x2ea   : > { %v11967_v6 = vpack.c.bf16 %v3060_v2, %v3056_v23  ;;  %v3062_v11 = vpop.f32.mrb[99].mxu1 }
 0x2eb   : > { %v11969_v16 = vpack.c.bf16 %v3062_v11, %v3058_v43 }
 0x2ec   : > { %13662 = vst [vmem:[#allocation61_spill] sm:$0xff] %v11967_v6 }
 0x2ed   : > { %13663 = vst [vmem:[#allocation62_spill] sm:$0xff] %v11969_v16 }
 0x2ef   : > { %v3066_v28 = vpop.f32.mrb[100].mxu1 }
 0x2f0   : > { %v3068_v53 = vpop.f32.mrb[101].mxu1 }
 0x2f1   : > { %v3070_v52 = vpop.f32.mrb[102].mxu1 }
 0x2f2   : > { %v11971_v24 = vpack.c.bf16 %v3070_v52, %v3066_v28  ;;  %v3072_v49 = vpop.f32.mrb[103].mxu1  ;;  %v3143_v28 = vlaneseq }
 0x2f3   : > { %v11973_v34 = vpack.c.bf16 %v3072_v49, %v3068_v53 }
 0x2f4   : > { %13664 = vst [vmem:[#allocation63_spill] sm:$0xff] %v11971_v24  ;;  %v11983_v52 = vshrl.u32 %v3143_v28, 7  ;;  %v11986_v53 = vand.u32 127, %v3143_v28 }
 0x2f5   : > { %13665 = vst [vmem:[#allocation64_spill] sm:$0xff] %v11973_v34 }
 0x2f6   : > { %13670 = vst [vmem:[#allocation69_spill] sm:$0xff] %v11983_v52  ;;  %v3146_v49 = vadd.s32 16, %v11983_v52  ;;  %vm3179_vm2 = vcmp.le.s32.totalorder %v11986_v53, %v11983_v52  ;;  %v3155_v60 = vadd.s32 88, %v11983_v52  ;;  %v3158_v45 = vadd.s32 112, %v11983_v52 }
 0x2f7   : > { %v3076_v19 = vpop.f32.mrb[104].mxu1 }
 0x2f8   : > { %v3078_v0 = vpop.f32.mrb[105].mxu1  ;;  %vm3181_vm1 = vcmp.le.s32.totalorder %v11986_v53, %v3146_v49  ;;  %v3151_v49 = vadd.s32 56, %v11983_v52  ;;  %vm3190_vm10 = vcmp.le.s32.totalorder %v11986_v53, %v3155_v60  ;;  %vm3193_vm13 = vcmp.le.s32.totalorder %v11986_v53, %v3158_v45 }
 0x2f9   : > { %v3080_v8 = vpop.f32.mrb[106].mxu1 }
 0x2fa   : > { %v11975_v47 = vpack.c.bf16 %v3080_v8, %v3076_v19  ;;  %v3082_v5 = vpop.f32.mrb[107].mxu1  ;;  %v3145_v19 = vadd.s32 8, %v11983_v52  ;;  %vm3186_vm6 = vcmp.le.s32.totalorder %v11986_v53, %v3151_v49 }
 0x2fb   : > { %v11977_v7 = vpack.c.bf16 %v3082_v5, %v3078_v0  ;;  %v3147_v5 = vadd.s32 24, %v11983_v52  ;;  %v11171_v0 = vmov -1e+30  }
 0x2fc   : > { %13666 = vst [vmem:[#allocation65_spill] sm:$0xff] %v11975_v47  ;;  %v11997_v8 = vsel %vm3179_vm2, 0.0, %v11171_v0  ;;  %vm3180_vm4 = vcmp.le.s32.totalorder %v11986_v53, %v3145_v19  ;;  %v3148_v19 = vadd.s32 32, %v11983_v52  ;;  %v12070_v60 = vsel %vm3190_vm10, 0.0, %v11171_v0 }
 0x2fd   : > { %13667 = vst [vmem:[#allocation66_spill] sm:$0xff] %v11977_v7  ;;  %vm3182_vm3 = vcmp.le.s32.totalorder %v11986_v53, %v3147_v5  ;;  %v12014_v5 = vsel %vm3180_vm4, 0.0, %v11171_v0  ;;  %13671 = vst [vmem:[#allocation70_spill] sm:$0xff] %v12070_v60  ;;  %v12094_v24 = vsel %vm3193_vm13, 0.0, %v11171_v0 }
 0x2fe   : > { %v12010_v7 = vsel %vm3182_vm3, 0.0, %v11171_v0  ;;  %vm3183_vm7 = vcmp.le.s32.totalorder %v11986_v53, %v3148_v19  ;;  %13673 = vst [vmem:[#allocation72_spill] sm:$0xff] %v12094_v24 }
 0x2ff   : > { %v3086_v23 = vpop.f32.mrb[108].mxu1  ;;  %v12043_v42 = vsel %vm3183_vm7, 0.0, %v11171_v0 }
 0x300   : > { %v3088_v2 = vpop.f32.mrb[109].mxu1 }
 0x301   : > { %v3090_v11 = vpop.f32.mrb[110].mxu1 }
 0x302   : > { %v11979_v43 = vpack.c.bf16 %v3090_v11, %v3086_v23  ;;  %v3092_v16 = vpop.f32.mrb[111].mxu1  ;;  %v3150_v23 = vadd.s32 48, %v11983_v52 }
 0x303   : > { %v11981_v40 = vpack.c.bf16 %v3092_v16, %v3088_v2  ;;  %v11994_v16 = vsel %vm3181_vm1, 0.0, %v11171_v0 }
 0x304   : > { %13668 = vst [vmem:[#allocation67_spill] sm:$0xff] %v11979_v43  ;;  %vm3185_vm5 = vcmp.le.s32.totalorder %v11986_v53, %v3150_v23  ;;  %v3154_v23 = vadd.s32 80, %v11983_v52 }
 0x305   : > { %13669 = vst [vmem:[#allocation68_spill] sm:$0xff] %v11981_v40  ;;  %v12028_v1 = vsel %vm3185_vm5, 0.0, %v11171_v0 }
 0x306   : > { %vm3189_vm9 = vcmp.le.s32.totalorder %v11986_v53, %v3154_v23 }
 0x35f   : > { %v9074_v2 = vpop.f32.mrb[112].mxu1 }
 0x360   : > { %v12003_v11 = vadd.f32 %v9074_v2, %v11994_v16  ;;  %v3294_v28 = vpop.f32.mrb[113].mxu1 }
 0x361   : > { %v12007_v40 = vadd.f32 %v3294_v28, %v11997_v8  ;;  %v9075_v34 = vpop.f32.mrb[114].mxu1  ;;  %v3149_v28 = vadd.s32 40, %v11983_v52 }
 0x362   : > { %3361 = vmax.xlane.f32.xlu1 %v12003_v11  ;;  %v3297_v21 = vpop.f32.mrb[115].mxu1  ;;  %v12020_v2 = vadd.f32 %v9075_v34, %v12010_v7  ;;  %v12035_v34 = vsel %vm3186_vm6, 0.0, %v11171_v0 }
 0x363   : > { %3357 = vmax.xlane.f32.xlu0 %v12007_v40  ;;  %v12025_v4 = vadd.f32 %v3297_v21, %v12014_v5  ;;  %vm3184_vm8 = vcmp.le.s32.totalorder %v11986_v53, %v3149_v28  ;;  %v3153_v28 = vadd.s32 72, %v11983_v52 }
 0x364   : > { %v12050_v19 = vsel %vm3184_vm8, 0.0, %v11171_v0 }
 0x365   : > { %vm3188_vm12 = vcmp.le.s32.totalorder %v11986_v53, %v3153_v28 }
 0x366   : > { %3363 = vmax.xlane.f32.xlu1 %v12020_v2 }
 0x367   : > { %v9078_v14 = vpop.f32.mrb[116].mxu1  ;;  %3359 = vmax.xlane.f32.xlu0 %v12025_v4 }
 0x368   : > { %v12038_v49 = vadd.f32 %v9078_v14, %v12028_v1  ;;  %v3310_v21 = vpop.f32.mrb[117].mxu1  ;;  %v3152_v14 = vadd.s32 64, %v11983_v52 }
 0x369   : > { %v9079_v50 = vpop.f32.mrb[118].mxu1  ;;  %v12058_v54 = vadd.f32 %v3310_v21, %v12043_v42 }
 0x36a   : > { %v12046_v32 = vadd.f32 %v9079_v50, %v12035_v34  ;;  %v3313_v20 = vpop.f32.mrb[119].mxu1  ;;  %v12061_v50 = vsel %vm3189_vm9, 0.0, %v11171_v0  ;;  %vm3187_vm11 = vcmp.le.s32.totalorder %v11986_v53, %v3152_v14  ;;  %v12085_v14 = vsel %vm3188_vm12, 0.0, %v11171_v0 }
 0x36b   : > { %3369 = vmax.xlane.f32.xlu0 %v12038_v49  ;;  %v12064_v23 = vadd.f32 %v3313_v20, %v12050_v19  ;;  %v12078_v47 = vsel %vm3187_vm11, 0.0, %v11171_v0  ;;  %13672 = vst [vmem:[#allocation71_spill] sm:$0xff] %v12085_v14 }
 0x36c   : > { %3371 = vmax.xlane.f32.xlu1 %v12046_v32 }
 0x36f   : > { %v9082_v55 = vpop.f32.mrb[120].mxu1  ;;  %3365 = vmax.xlane.f32.xlu0 %v12058_v54 }
 0x370   : > { %v12073_v43 = vadd.f32 %v9082_v55, %v12061_v50  ;;  %v3326_v21 = vpop.f32.mrb[121].mxu1  ;;  %3367 = vmax.xlane.f32.xlu1 %v12064_v23  ;;  %v3156_v55 = vadd.s32 96, %v11983_v52 }
 0x371   : > { %v9083_v20 = vpop.f32.mrb[122].mxu1  ;;  %v12091_v28 = vadd.f32 %v3326_v21, %v12078_v47 }
 0x372   : > { %v12081_v12 = vadd.f32 %v9083_v20, %v12070_v60  ;;  %v3329_v31 = vpop.f32.mrb[123].mxu1  ;;  %vm3191_vm14 = vcmp.le.s32.totalorder %v11986_v53, %v3156_v55  ;;  %v3157_v55 = vadd.s32 104, %v11983_v52 }
 0x373   : > { %3377 = vmax.xlane.f32.xlu0 %v12073_v43  ;;  %v12097_v20 = vadd.f32 %v3329_v31, %v12085_v14  ;;  %v12106_v21 = vsel %vm3191_vm14, 0.0, %v11171_v0 }
 0x374   : > { %3379 = vmax.xlane.f32.xlu1 %v12081_v12  ;;  %13674 = vst [vmem:[#allocation73_spill] sm:$0xff] %v12106_v21  ;;  %vm3192_vm1 = vcmp.le.s32.totalorder %v11986_v53, %v3157_v55 }
 0x375   : > { %v12128_v59 = vsel %vm3192_vm1, 0.0, %v11171_v0 }
 0x376   : > { %13676 = vst [vmem:[#allocation75_spill] sm:$0xff] %v12128_v59 }
 0x377   : > { %v9086_v6 = vpop.f32.mrb[124].mxu1  ;;  %3373 = vmax.xlane.f32.xlu0 %v12091_v28 }
 0x378   : > { %v12102_v45 = vadd.f32 %v9086_v6, %v12094_v24  ;;  %v3342_v3 = vpop.f32.mrb[125].mxu1  ;;  %3375 = vmax.xlane.f32.xlu1 %v12097_v20  ;;  %v3159_v6 = vadd.s32 120, %v11983_v52 }
 0x379   : > { %v9087_v27 = vpop.f32.mrb[126].mxu1  ;;  %v12110_v31 = vadd.f32 %v3342_v3, %v12106_v21 }
 0x37a   : > { %v3345_v10 = vpop.f32.mrb[127].mxu1  ;;  %vm3194_vm15 = vcmp.le.s32.totalorder %v11986_v53, %v3159_v6 }
 0x37b   : > { %3385 = vmax.xlane.f32.xlu0 %v12102_v45  ;;  %v12121_v48 = vsel %vm3194_vm15, 0.0, %v11171_v0 }
 0x37c   : > { %13675 = vst [vmem:[#allocation74_spill] sm:$0xff] %v12121_v48  ;;  %v12125_v3 = vadd.f32 %v9087_v27, %v12121_v48 }
 0x37f   : > { %3381 = vmax.xlane.f32.xlu0 %v12110_v31 }
 0x389   : > { %3668 = vrot.lane.b32.xlu1 %v11845_v51, %s11170_s26  ;;  %v12135_v51 = vpop.permute.xlu1 %3664 }
 0x395   : > { %3666 = vrot.lane.b32.xlu0 %v11837_v58, %s11170_s26  ;;  %v12132_v58 = vadd.f32 %v3345_v10, %v12128_v59 }
 0x3ad   : > { %3387 = vmax.xlane.f32.xlu1 %v12125_v3 }
 0x3b1   : > { %3383 = vmax.xlane.f32.xlu1 %v12132_v58 }
 0x3ef   : > { %v3362_v6 = vpop.xlane.xlu1 %3361 }
 0x3f0   : > { %v3391_v52 = vsub.f32 %v12003_v11, %v3362_v6  ;;  %v3358_v9 = vpop.xlane.xlu0 %3357 }
 0x3f1   : > { %v3389_v53 = vsub.f32 %v12007_v40, %v3358_v9 }
 0x3f2   : > { %v3409_v27 = vmul.f32 1.442695, %v3391_v52 }
 0x3f3   : > { %v3405_v55 = vmul.f32 1.442695, %v3389_v53  ;;  %v3364_v36 = vpop.xlane.xlu1 %3363 }
 0x3f4   : > { %10555 = vpow2.f32 %v3409_v27  ;;  %v3392_v0 = vsub.f32 %v12020_v2, %v3364_v36  ;;  %v3360_v57 = vpop.xlane.xlu0 %3359 }
 0x3f5   : > { %v3390_v10 = vsub.f32 %v12025_v4, %v3360_v57  ;;  %10557 = vpow2.f32 %v3405_v55 }
 0x3f6   : > { %v3411_v63 = vmul.f32 1.442695, %v3392_v0 }
 0x3f7   : > { %v3407_v26 = vmul.f32 1.442695, %v3390_v10 }
 0x3f8   : > { %10559 = vpow2.f32 %v3411_v63  ;;  %v3370_v9 = vpop.xlane.xlu0 %3369 }
 0x3f9   : > { %10561 = vpow2.f32 %v3407_v26  ;;  %v3372_v26 = vpop.xlane.xlu1 %3371  ;;  %v3395_v2 = vsub.f32 %v12038_v49, %v3370_v9 }
 0x3fa   : > { %v3396_v10 = vsub.f32 %v12046_v32, %v3372_v26 }
 0x3fb   : > { %v3417_v27 = vmul.f32 1.442695, %v3395_v2 }
 0x3fc   : > { %v3366_v4 = vpop.xlane.xlu0 %3365  ;;  %v3419_v61 = vmul.f32 1.442695, %v3396_v10 }
 0x3fd   : > { %v3368_v52 = vpop.xlane.xlu1 %3367  ;;  %v3393_v6 = vsub.f32 %v12058_v54, %v3366_v4  ;;  %10563 = vpow2.f32 %v3417_v27 }
 0x3fe   : > { %v12141_v35 = vpop.eup %10555  ;;  %v3394_v55 = vsub.f32 %v12064_v23, %v3368_v52 }
 0x3ff   : > { %3441 = vadd.xlane.f32.xlu0 %v12141_v35  ;;  %v12144_v11 = vpop.eup %10557  ;;  %v3413_v59 = vmul.f32 1.442695, %v3393_v6 }
 0x400   : > { %v3378_v63 = vpop.xlane.xlu0 %3377 }
 0x401   : > { %v3380_v0 = vpop.xlane.xlu1 %3379  ;;  %10565 = vpow2.f32 %v3413_v59  ;;  %v3399_v33 = vsub.f32 %v12073_v43, %v3378_v63 }
 0x402   : > { %v12146_v40 = vpop.eup %10559  ;;  %v3400_v59 = vsub.f32 %v12081_v12, %v3380_v0 }
 0x403   : > { %3443 = vadd.xlane.f32.xlu1 %v12146_v40  ;;  %3437 = vadd.xlane.f32.xlu0 %v12144_v11  ;;  %v12150_v36 = vpop.eup %10561  ;;  %v3425_v23 = vmul.f32 1.442695, %v3399_v33 }
 0x404   : > { %v3374_v57 = vpop.xlane.xlu0 %3373 }
 0x405   : > { %v3376_v49 = vpop.xlane.xlu1 %3375  ;;  %v3397_v4 = vsub.f32 %v12091_v28, %v3374_v57  ;;  %v3427_v28 = vmul.f32 1.442695, %v3400_v59 }
 0x407   : > { %3439 = vadd.xlane.f32.xlu1 %v12150_v36  ;;  %v12167_v52 = vpop.eup %10563  ;;  %v3421_v43 = vmul.f32 1.442695, %v3397_v4 }
 0x408   : > { %v3386_v53 = vpop.xlane.xlu0 %3385 }
 0x409   : > { %v12165_v26 = vpop.permute.xlu1 %3668 }
 0x40c   : > { %v3382_v48 = vpop.xlane.xlu0 %3381 }
 0x40d   : > { %v3401_v9 = vsub.f32 %v12110_v31, %v3382_v48  ;;  %v3398_v31 = vsub.f32 %v12097_v20, %v3376_v49 }
 0x40f   : > { %v3429_v32 = vmul.f32 1.442695, %v3401_v9 }
 0x418   : > { %3672 = vrot.lane.b32.xlu1 %v11861_v29, %s11170_s26  ;;  %v3415_v29 = vmul.f32 1.442695, %v3394_v55 }
 0x419   : > { %3670 = vrot.lane.b32.xlu0 %v11853_v38, %s11170_s26  ;;  %v3403_v38 = vsub.f32 %v12102_v45, %v3386_v53  ;;  %v12171_v45 = vpop.eup %10565 }
 0x41a   : > { %10567 = vpow2.f32 %v3415_v29 }
 0x41b   : > { %v3433_v54 = vmul.f32 1.442695, %v3403_v38  ;;  %10569 = vpow2.f32 %v3419_v61 }
 0x41d   : > { %10571 = vpow2.f32 %v3433_v54  ;;  %v3703_v54 = vsel %vm3211_vm0, %v11947_v41, 0 }
 0x41e   : > { %10573 = vpow2.f32 %v3425_v23 }
 0x41f   : > { %10575 = vpow2.f32 %v3429_v32 }
 0x420   : > { %10577 = vpow2.f32 %v3421_v43 }
 0x424   : > { %v12173_v61 = vpop.eup %10567 }
 0x425   : > { %v12179_v57 = vpop.eup %10569 }
 0x427   : > { %v12181_v2 = vpop.eup %10571 }
 0x428   : > { %v12186_v53 = vpop.eup %10573 }
 0x429   : > { %v12188_v27 = vpop.eup %10575 }
 0x42a   : > { %v12192_v55 = vpop.eup %10577 }
 0x438   : > { %3449 = vadd.xlane.f32.xlu0 %v12167_v52 }
 0x43a   : > { %v3388_v48 = vpop.xlane.xlu1 %3387 }
 0x43b   : > { %v3404_v33 = vsub.f32 %v12125_v3, %v3388_v48  ;;  %v3423_v3 = vmul.f32 1.442695, %v3398_v31 }
 0x43c   : > { %3447 = vadd.xlane.f32.xlu0 %v12173_v61  ;;  %3445 = vadd.xlane.f32.xlu1 %v12171_v45 }
 0x43d   : > { %v3435_v63 = vmul.f32 1.442695, %v3404_v33 }
 0x43e   : > { %v3384_v12 = vpop.xlane.xlu1 %3383 }
 0x43f   : > { %10579 = vpow2.f32 %v3435_v63  ;;  %v3402_v6 = vsub.f32 %v12132_v58, %v3384_v12 }
 0x440   : > { %3451 = vadd.xlane.f32.xlu1 %v12179_v57  ;;  %3465 = vadd.xlane.f32.xlu0 %v12181_v2  ;;  %10581 = vpow2.f32 %v3427_v28 }
 0x441   : > { %10583 = vpow2.f32 %v3423_v3  ;;  %v3431_v20 = vmul.f32 1.442695, %v3402_v6 }
 0x443   : > { %10585 = vpow2.f32 %v3431_v20 }
 0x444   : > { %3457 = vadd.xlane.f32.xlu1 %v12186_v53  ;;  %3461 = vadd.xlane.f32.xlu0 %v12188_v27 }
 0x448   : > { %3453 = vadd.xlane.f32.xlu1 %v12192_v55 }
 0x449   : > { %v12195_v0 = vpop.eup %10579 }
 0x44a   : > { %3467 = vadd.xlane.f32.xlu0 %v12195_v0  ;;  %v12198_v58 = vpop.eup %10581 }
 0x44b   : > { %v12201_v10 = vpop.eup %10583 }
 0x44c   : > { %3459 = vadd.xlane.f32.xlu1 %v12198_v58 }
 0x44d   : > { %v12204_v29 = vpop.eup %10585 }
 0x450   : > { %3455 = vadd.xlane.f32.xlu1 %v12201_v10 }
 0x454   : > { %3463 = vadd.xlane.f32.xlu1 %v12204_v29 }
 0x460   : > { %3674 = vrot.lane.b32.xlu0 %v11874_v13, %s11170_s26 }
 0x464   : > { %3638 = vrot.lane.b32.xlu0 %v11780_v30, %s11170_s26  ;;  %v3667_v30 = vpop.permute.xlu0 %3666 }
 0x465   : > { %3676 = vrot.lane.b32.xlu1 %v11888_v17, %s11170_s26 }
 0x468   : > { %3642 = vrot.lane.b32.xlu0 %v11792_v46, %s11170_s26 }
 0x469   : > { %3640 = vrot.lane.b32.xlu1 %v11786_v56, %s11170_s26 }
 0x46c   : > { %3646 = vrot.lane.b32.xlu0 %v11804_v18, %s11170_s26 }
 0x46d   : > { %3644 = vrot.lane.b32.xlu1 %v11798_v22, %s11170_s26 }
 0x470   : > { %3650 = vrot.lane.b32.xlu0 %v11816_v25, %s11170_s26 }
 0x471   : > { %3648 = vrot.lane.b32.xlu1 %v11810_v15, %s11170_s26 }
 0x474   : > { %3983 = vrot.lane.b32.xlu0 %v11871_v37, %s11170_s26 }
 0x475   : > { %3652 = vrot.lane.b32.xlu1 %v11823_v62, %s11170_s26 }
 0x478   : > { %3987 = vrot.lane.b32.xlu0 %v11899_v39, %s11170_s26 }
 0x479   : > { %3985 = vrot.lane.b32.xlu1 %v11885_v44, %s11170_s26 }
 0x48c   : > { %v3442_v56 = vpop.xlane.xlu0 %3441 }
 0x490   : > { %v3444_v46 = vpop.xlane.xlu1 %3443  ;;  %v3438_v22 = vpop.xlane.xlu0 %3437 }
 0x491   : > { %10587 = vrcp.f32 %v3444_v46 }
 0x492   : > { %10589 = vrcp.f32 %v3438_v22 }
 0x493   : > { %10591 = vrcp.f32 %v3442_v56 }
 0x494   : > { %v3440_v18 = vpop.xlane.xlu1 %3439  ;;  %v3671_v41 = vpop.permute.xlu0 %3670 }
 0x495   : > { %10593 = vrcp.f32 %v3440_v18  ;;  %v3715_v9 = vsel %vm3211_vm0, %v3671_v41, 0 }
 0x49b   : > { %v10588_v15 = vpop.eup %10587 }
 0x49c   : > { %v10590_v25 = vpop.eup %10589  ;;  %v3488_v62 = vmul.f32 %v10588_v15, %v12146_v40  ;;  %v3706_v40 = vsel %vm3211_vm0, %v12135_v51, 0 }
 0x49d   : > { %v10592_v37 = vpop.eup %10591  ;;  %v3485_v17 = vmul.f32 %v10590_v25, %v12144_v11  ;;  %v3709_v11 = vsel %vm3211_vm0, %v3667_v30, 0 }
 0x49e   : > { %v3487_v44 = vmul.f32 %v10592_v37, %v12141_v35  ;;  %v3712_v35 = vsel %vm3211_vm0, %v12165_v26, 0 }
 0x49f   : > { %v10594_v13 = vpop.eup %10593 }
 0x4a0   : > { %v3486_v39 = vmul.f32 %v10594_v13, %v12150_v36  ;;  %v3502_v49 = vpack.c.bf16 %v3488_v62, %v3487_v44  ;;  %v3673_v36 = vpop.permute.xlu1 %3672 }
 0x4a1   : > { %v3718_v59 = vsel %vm3211_vm0, %v3673_v36, 0 }
 0x4a2   : > { %v3501_v38 = vpack.c.bf16 %v3486_v39, %v3485_v17 }
 0x4a4   : > { %9104 = vmatprep.mubr.bf16.mxu0 %v3501_v38 }
 0x4a5   : > { %9105 = vmatmul.mubr.bf16.vlgmr.msra.gmra.mrb[64].mxu0 %v3502_v49 }
 0x4a6   : > { %9121 = vmatpush3.bf16.xpose.msra.mxu0 %v3703_v54 }
 0x4a7   : > { %9961 = vmatprep.subr.msk.bf16.mxu0 %vm3211_vm0, %v12135_v51 }
 0x4ae   : > { %9123 = vmatpush3.bf16.xpose.msra.mxu0 %v3706_v40 }
 0x4af   : > { %9962 = vmatprep.subr.msk.bf16.mxu0 %vm3211_vm0, %v3667_v30 }
 0x4b6   : > { %9125 = vmatpush3.bf16.xpose.msra.mxu0 %v3709_v11 }
 0x4b7   : > { %9963 = vmatprep.subr.msk.bf16.mxu0 %vm3211_vm0, %v12165_v26 }
 0x4be   : > { %9127 = vmatpush3.bf16.xpose.msra.mxu0 %v3712_v35 }
 0x4bf   : > { %9964 = vmatprep.subr.msk.bf16.mxu0 %vm3211_vm0, %v3671_v41 }
 0x4c5   : > { %v3450_v51 = vpop.xlane.xlu0 %3449 }
 0x4c6   : > { %9129 = vmatpush3.bf16.xpose.msra.mxu0 %v3715_v9 }
 0x4c7   : > { %9965 = vmatprep.subr.msk.bf16.mxu0 %vm3211_vm0, %v3673_v36 }
 0x4c9   : > { %v3446_v23 = vpop.xlane.xlu1 %3445  ;;  %v3448_v4 = vpop.xlane.xlu0 %3447 }
 0x4ca   : > { %10595 = vrcp.f32 %v3446_v23 }
 0x4cb   : > { %10597 = vrcp.f32 %v3448_v4 }
 0x4cc   : > { %10599 = vrcp.f32 %v3450_v51 }
 0x4cd   : > { %v3452_v32 = vpop.xlane.xlu1 %3451  ;;  %v3466_v26 = vpop.xlane.xlu0 %3465 }
 0x4ce   : > { %10601 = vrcp.f32 %v3452_v32  ;;  %9131 = vmatpush3.bf16.xpose.msra.mxu0 %v3718_v59 }
 0x4d1   : > { %v3458_v43 = vpop.xlane.xlu1 %3457  ;;  %v3462_v48 = vpop.xlane.xlu0 %3461 }
 0x4d4   : > { %v10596_v33 = vpop.eup %10595 }
 0x4d5   : > { %v10598_v28 = vpop.eup %10597  ;;  %v3454_v31 = vpop.xlane.xlu1 %3453  ;;  %v3489_v63 = vmul.f32 %v10596_v33, %v12171_v45 }
 0x4d6   : > { %v10600_v12 = vpop.eup %10599  ;;  %v3490_v3 = vmul.f32 %v10598_v28, %v12173_v61 }
 0x4d7   : > { %v3468_v6 = vpop.xlane.xlu0 %3467  ;;  %v3491_v46 = vmul.f32 %v10600_v12, %v12167_v52 }
 0x4d8   : > { %v10602_v20 = vpop.eup %10601  ;;  %v3503_v30 = vpack.c.bf16 %v3490_v3, %v3489_v63 }
 0x4d9   : > { %v3460_v56 = vpop.xlane.xlu1 %3459  ;;  %v3492_v22 = vmul.f32 %v10602_v20, %v12179_v57 }
 0x4da   : > { %9108 = vmatprep.mubr.bf16.mxu0 %v3503_v30  ;;  %10603 = vrcp.f32 %v3460_v56 }
 0x4db   : > { %v3675_v18 = vpop.permute.xlu0 %3674  ;;  %v3504_v15 = vpack.c.bf16 %v3492_v22, %v3491_v46  ;;  %10605 = vrcp.f32 %v3454_v31 }
 0x4dc   : > { %9966 = vmatprep.subr.msk.bf16.mxu0 %vm3211_vm0, %v3675_v18  ;;  %v3721_v45 = vsel %vm3211_vm0, %v3675_v18, 0  ;;  %10607 = vrcp.f32 %v3458_v43 }
 0x4dd   : > { %v3456_v25 = vpop.xlane.xlu1 %3455  ;;  %9109 = vmatmul.mubr.bf16.gmra.mrb[68].mxu0 %v3504_v15 }
 0x4de   : > { %10609 = vrcp.f32 %v3456_v25  ;;  %9133 = vmatpush3.bf16.xpose.msra.mxu0 %v3721_v45 }
 0x4df   : > { %v3639_v61 = vpop.permute.xlu0 %3638  ;;  %10611 = vrcp.f32 %v3462_v48 }
 0x4e1   : > { %v3464_v37 = vpop.xlane.xlu1 %3463 }
 0x4e2   : > { %10613 = vrcp.f32 %v3464_v37 }
 0x4e3   : > { %10615 = vrcp.f32 %v3468_v6  ;;  %v3643_v52 = vpop.permute.xlu0 %3642 }
 0x4e4   : > { %v10604_v57 = vpop.eup %10603  ;;  %10617 = vrcp.f32 %v3466_v26 }
 0x4e5   : > { %v3677_v13 = vpop.permute.xlu1 %3676  ;;  %v10606_v62 = vpop.eup %10605  ;;  %v3496_v49 = vmul.f32 %v10604_v57, %v12198_v58 }
 0x4e6   : > { %9967 = vmatprep.subr.msk.bf16.mxu0 %vm3211_vm0, %v3677_v13  ;;  %v3724_v17 = vsel %vm3211_vm0, %v3677_v13, 0  ;;  %v10608_v39 = vpop.eup %10607  ;;  %v3493_v40 = vmul.f32 %v10606_v62, %v12192_v55 }
 0x4e7   : > { %9135 = vmatpush3.bf16.xpose.msra.mxu0 %v3724_v17  ;;  %v3647_v44 = vpop.permute.xlu0 %3646  ;;  %v3495_v41 = vmul.f32 %v10608_v39, %v12186_v53 }
 0x4e8   : > { %v10610_v38 = vpop.eup %10609 }
 0x4e9   : > { %v3641_v54 = vpop.permute.xlu1 %3640  ;;  %v3494_v11 = vmul.f32 %v10610_v38, %v12201_v10  ;;  %v10612_v35 = vpop.eup %10611  ;;  %v3506_v23 = vpack.c.bf16 %v3496_v49, %v3495_v41 }
 0x4ea   : > { %v3497_v59 = vmul.f32 %v10612_v35, %v12188_v27 }
 0x4eb   : > { %v3651_v36 = vpop.permute.xlu0 %3650  ;;  %v3505_v9 = vpack.c.bf16 %v3494_v11, %v3493_v40 }
 0x4ec   : > { %v10614_v51 = vpop.eup %10613 }
 0x4ed   : > { %v10616_v4 = vpop.eup %10615  ;;  %v3645_v32 = vpop.permute.xlu1 %3644  ;;  %9112 = vmatprep.mubr.bf16.mxu0 %v3505_v9  ;;  %v3498_v26 = vmul.f32 %v10614_v51, %v12204_v29 }
 0x4ee   : > { %9113 = vmatmul.mubr.bf16.gmra.mrb[72].mxu0 %v3506_v23  ;;  %v10618_v58 = vpop.eup %10617  ;;  %v3500_v10 = vmul.f32 %v10616_v4, %v12195_v0 }
 0x4ef   : > { %v3984_v43 = vpop.permute.xlu0 %3983  ;;  %v3507_v55 = vpack.c.bf16 %v3498_v26, %v3497_v59  ;;  %v3499_v53 = vmul.f32 %v10618_v58, %v12181_v2  ;;  %v13677_v2 = vmov 0  }
 0x4f0   : > { %9152 = vmatprep.subr.bf16.mxu1 %v3984_v43 }
 0x4f1   : > { %v3649_v48 = vpop.permute.xlu1 %3648  ;;  %9116 = vmatprep.mubr.bf16.mxu0 %v3507_v55  ;;  %9153 = vmatpush3.bf16.msra.mxu1 %v3984_v43  ;;  %v3508_v33 = vpack.c.bf16 %v3500_v10, %v3499_v53 }
 0x4f3   : > { %v3988_v29 = vpop.permute.xlu0 %3987 }
 0x4f5   : > { %v3653_v28 = vpop.permute.xlu1 %3652 }
 0x4f6   : > { %9117 = vmatmul.mubr.bf16.gmra.mrb[76].mxu0 %v3508_v33 }
 0x4f7   : > { %9136 = vmatprep.mubr.msk.bf16.mxu0 %vm3211_vm0, %v3639_v61 }
 0x4f9   : > { %v3986_v27 = vpop.permute.xlu1 %3985 }
 0x4fa   : > { %9154 = vmatprep.subr.bf16.mxu1 %v3986_v27 }
 0x4fb   : > { %9155 = vmatpush3.bf16.msra.mxu1 %v3986_v27 }
 0x4fc   : > { %9156 = vmatprep.subr.bf16.mxu1 %v3988_v29 }
 0x4fe   : > { %9137 = vmatmul.mubr.msk.bf16.vlgmr.msra.gmra.mrb[80].mxu0 %vm3211_vm0, %v3641_v54 }
 0x4ff   : > { %9140 = vmatprep.mubr.msk.bf16.mxu0 %vm3211_vm0, %v3643_v52  ;;  %9157 = vmatpush3.bf16.msra.mxu1 %v3988_v29 }
 0x506   : > { %9141 = vmatmul.mubr.msk.bf16.gmra.mrb[84].mxu0 %vm3211_vm0, %v3645_v32 }
 0x507   : > { %9144 = vmatprep.mubr.msk.bf16.mxu0 %vm3211_vm0, %v3647_v44 }
 0x50e   : > { %9145 = vmatmul.mubr.msk.bf16.gmra.mrb[88].mxu0 %vm3211_vm0, %v3649_v48 }
 0x50f   : > { %9148 = vmatprep.mubr.msk.bf16.mxu0 %vm3211_vm0, %v3651_v36 }
 0x516   : > { %9149 = vmatmul.mubr.msk.bf16.gmra.mrb[92].mxu0 %vm3211_vm0, %v3653_v28 }
 0x517   : > { %4248 = vmatprep.mubr.bf16.mxu0 %v13677_v2 }
 0x578   : > { %v9106_v0 = vpop.f32.mrb[64].mxu0 }
 0x579   : > { %v3543_v31 = vpop.f32.mrb[65].mxu0 }
 0x57a   : > { %v9107_v63 = vpop.f32.mrb[66].mxu0 }
 0x57b   : > { %v12278_v12 = vpack.c.bf16 %v9107_v63, %v9106_v0  ;;  %v3546_v3 = vpop.f32.mrb[67].mxu0 }
 0x57c   : > { %v12280_v6 = vpack.c.bf16 %v3546_v3, %v3543_v31 }
 0x5b0   : > { %v9110_v20 = vpop.f32.mrb[68].mxu0 }
 0x5b1   : > { %v3559_v30 = vpop.f32.mrb[69].mxu0 }
 0x5b2   : > { %v9111_v56 = vpop.f32.mrb[70].mxu0 }
 0x5b3   : > { %v12282_v46 = vpack.c.bf16 %v9111_v56, %v9110_v20  ;;  %v3562_v22 = vpop.f32.mrb[71].mxu0  ;;  %v13679_v56 = vld [vmem:[#allocation44_spill] sm:$0xff] }
 0x5b4   : > { %v12284_v18 = vpack.c.bf16 %v3562_v22, %v3559_v30  ;;  %v13678_v30 = vld [vmem:[#allocation46_spill] sm:$0xff] }
 0x5b5   : > { %v13680_v22 = vld [vmem:[#allocation74_spill] sm:$0xff] }
 0x5c1   : > { %v9114_v15 = vpop.f32.mrb[72].mxu0 }
 0x5c2   : > { %v3575_v45 = vpop.f32.mrb[73].mxu0 }
 0x5c3   : > { %v9115_v25 = vpop.f32.mrb[74].mxu0 }
 0x5c4   : > { %v12286_v61 = vpack.c.bf16 %v9115_v25, %v9114_v15  ;;  %v3578_v37 = vpop.f32.mrb[75].mxu0 }
 0x5c5   : > { %v12288_v52 = vpack.c.bf16 %v3578_v37, %v3575_v45  ;;  %v13681_v45 = vld [vmem:[#allocation75_spill] sm:$0xff]  ;;  %v13682_v37 = vld [vmem:[#allocation48_spill] sm:$0xff] }
 0x5c9   : > { %v9118_v57 = vpop.f32.mrb[76].mxu0 }
 0x5ca   : > { %v3591_v13 = vpop.f32.mrb[77].mxu0 }
 0x5cb   : > { %v9119_v62 = vpop.f32.mrb[78].mxu0 }
 0x5cc   : > { %v12290_v17 = vpack.c.bf16 %v9119_v62, %v9118_v57  ;;  %v3594_v39 = vpop.f32.mrb[79].mxu0 }
 0x5cd   : > { %v12292_v44 = vpack.c.bf16 %v3594_v39, %v3591_v13 }
 0x5d1   : > { %v9138_v38 = vpop.f32.mrb[80].mxu0 }
 0x5d2   : > { %v3769_v49 = vadd.f32 %v9138_v38, %v11994_v16  ;;  %v3760_v54 = vpop.f32.mrb[81].mxu0 }
 0x5d3   : > { %v9139_v40 = vpop.f32.mrb[82].mxu0  ;;  %v3761_v41 = vadd.f32 %v3760_v54, %v11997_v8 }
 0x5d4   : > { %3827 = vmax.xlane.f32.xlu0 %v3769_v49  ;;  %v3763_v11 = vpop.f32.mrb[83].mxu0  ;;  %v3772_v9 = vadd.f32 %v9139_v40, %v12010_v7 }
 0x5d5   : > { %v3764_v35 = vadd.f32 %v3763_v11, %v12014_v5 }
 0x5d7   : > { %3825 = vmax.xlane.f32.xlu1 %v3764_v35 }
 0x5d8   : > { %3823 = vmax.xlane.f32.xlu0 %v3761_v41 }
 0x5d9   : > { %v9142_v36 = vpop.f32.mrb[84].mxu0 }
 0x5da   : > { %v3776_v51 = vpop.f32.mrb[85].mxu0  ;;  %v3785_v59 = vadd.f32 %v9142_v36, %v12028_v1 }
 0x5db   : > { %v9143_v23 = vpop.f32.mrb[86].mxu0  ;;  %v3777_v43 = vadd.f32 %v3776_v51, %v12043_v42 }
 0x5dc   : > { %v12299_v4 = vadd.f32 %v9143_v23, %v12035_v34  ;;  %3829 = vmax.xlane.f32.xlu0 %v3772_v9  ;;  %v3779_v32 = vpop.f32.mrb[87].mxu0 }
 0x5dd   : > { %v3780_v26 = vadd.f32 %v3779_v32, %v12050_v19 }
 0x5de   : > { %3837 = vmax.xlane.f32.xlu1 %v12299_v4 }
 0x5e0   : > { %3835 = vmax.xlane.f32.xlu0 %v3785_v59 }
 0x5e1   : > { %v9146_v58 = vpop.f32.mrb[88].mxu0 }
 0x5e2   : > { %3833 = vmax.xlane.f32.xlu1 %v3780_v26  ;;  %v3792_v55 = vpop.f32.mrb[89].mxu0  ;;  %v3801_v33 = vadd.f32 %v9146_v58, %v12061_v50 }
 0x5e3   : > { %v9147_v10 = vpop.f32.mrb[90].mxu0  ;;  %v12314_v29 = vadd.f32 %v3792_v55, %v12078_v47 }
 0x5e4   : > { %v12306_v48 = vadd.f32 %v9147_v10, %v12070_v60  ;;  %3831 = vmax.xlane.f32.xlu0 %v3777_v43  ;;  %v3795_v53 = vpop.f32.mrb[91].mxu0 }
 0x5e5   : > { %v12311_v28 = vadd.f32 %v3795_v53, %v12085_v14 }
 0x5e6   : > { %3845 = vmax.xlane.f32.xlu1 %v12306_v48 }
 0x5e8   : > { %3843 = vmax.xlane.f32.xlu0 %v3801_v33 }
 0x5e9   : > { %v9150_v27 = vpop.f32.mrb[92].mxu0 }
 0x5ea   : > { %3841 = vmax.xlane.f32.xlu1 %v12311_v28  ;;  %v3808_v0 = vpop.f32.mrb[93].mxu0  ;;  %v12319_v3 = vadd.f32 %v9150_v27, %v12094_v24 }
 0x5eb   : > { %v9151_v31 = vpop.f32.mrb[94].mxu0  ;;  %v12323_v20 = vadd.f32 %v3808_v0, %v12106_v21 }
 0x5ec   : > { %3839 = vmax.xlane.f32.xlu0 %v12314_v29  ;;  %v3811_v63 = vpop.f32.mrb[95].mxu0  ;;  %v12331_v15 = vadd.f32 %v9151_v31, %v13680_v22 }
 0x5ed   : > { %v12335_v25 = vadd.f32 %v3811_v63, %v13681_v45 }
 0x5f0   : > { %3851 = vmax.xlane.f32.xlu0 %v12319_v3 }
 0x5f4   : > { %3847 = vmax.xlane.f32.xlu0 %v12323_v20 }
 0x5fb   : > { %3991 = vrot.lane.b32.xlu1 %v13678_v30, %s11170_s26 }
 0x60a   : > { %3989 = vrot.lane.b32.xlu0 %v13679_v56, %s11170_s26 }
 0x61f   : > { %3853 = vmax.xlane.f32.xlu1 %v12331_v15 }
 0x623   : > { %3849 = vmax.xlane.f32.xlu1 %v12335_v25 }
 0x634   : > { %3993 = vrot.lane.b32.xlu1 %v13682_v37, %s11170_s26 }
 0x661   : > { %v3828_v57 = vpop.xlane.xlu0 %3827 }
 0x662   : > { %v3857_v13 = vsub.f32 %v3769_v49, %v3828_v57 }
 0x664   : > { %v3875_v62 = vmul.f32 1.442695, %v3857_v13  ;;  %v3826_v38 = vpop.xlane.xlu1 %3825 }
 0x665   : > { %v3824_v39 = vpop.xlane.xlu0 %3823  ;;  %v3856_v11 = vsub.f32 %v3764_v35, %v3826_v38 }
 0x666   : > { %10619 = vpow2.f32 %v3875_v62  ;;  %v3855_v54 = vsub.f32 %v3761_v41, %v3824_v39 }
 0x667   : > { %v3873_v58 = vmul.f32 1.442695, %v3856_v11 }
 0x668   : > { %v3871_v40 = vmul.f32 1.442695, %v3855_v54 }
 0x669   : > { %v3830_v36 = vpop.xlane.xlu0 %3829 }
 0x66a   : > { %10621 = vpow2.f32 %v3871_v40  ;;  %v3858_v51 = vsub.f32 %v3772_v9, %v3830_v36 }
 0x66b   : > { %v3838_v23 = vpop.xlane.xlu1 %3837 }
 0x66c   : > { %v3877_v32 = vmul.f32 1.442695, %v3858_v51  ;;  %v3862_v35 = vsub.f32 %v12299_v4, %v3838_v23 }
 0x66d   : > { %v3836_v55 = vpop.xlane.xlu0 %3835 }
 0x66e   : > { %10623 = vpow2.f32 %v3877_v32  ;;  %v3861_v10 = vsub.f32 %v3785_v59, %v3836_v55  ;;  %v3885_v37 = vmul.f32 1.442695, %v3862_v35 }
 0x66f   : > { %v3834_v53 = vpop.xlane.xlu1 %3833  ;;  %10625 = vpow2.f32 %v3873_v58 }
 0x670   : > { %v12340_v27 = vpop.eup %10619  ;;  %v3883_v49 = vmul.f32 1.442695, %v3861_v10  ;;  %v3860_v0 = vsub.f32 %v3780_v26, %v3834_v53 }
 0x671   : > { %3907 = vadd.xlane.f32.xlu1 %v12340_v27  ;;  %v3832_v41 = vpop.xlane.xlu0 %3831 }
 0x672   : > { %10627 = vpow2.f32 %v3883_v49  ;;  %v3881_v31 = vmul.f32 1.442695, %v3860_v0  ;;  %v3859_v9 = vsub.f32 %v3777_v43, %v3832_v41 }
 0x673   : > { %v3846_v56 = vpop.xlane.xlu1 %3845 }
 0x674   : > { %v12344_v63 = vpop.eup %10621  ;;  %v3879_v30 = vmul.f32 1.442695, %v3859_v9  ;;  %10629 = vpow2.f32 %v3881_v31  ;;  %v3866_v13 = vsub.f32 %v12306_v48, %v3846_v56  ;;  %v13683_v9 = vld [vmem:[#allocation52_spill] sm:$0xff] }
 0x675   : > { %3903 = vadd.xlane.f32.xlu1 %v12344_v63  ;;  %v3844_v59 = vpop.xlane.xlu0 %3843 }
 0x676   : > { %10631 = vpow2.f32 %v3879_v30  ;;  %v3865_v26 = vsub.f32 %v3801_v33, %v3844_v59  ;;  %v3893_v11 = vmul.f32 1.442695, %v3866_v13  ;;  %v13684_v30 = vld [vmem:[#allocation50_spill] sm:$0xff] }
 0x677   : > { %10633 = vpow2.f32 %v3885_v37  ;;  %v3842_v43 = vpop.xlane.xlu1 %3841 }
 0x678   : > { %v12347_v57 = vpop.eup %10623  ;;  %v3891_v62 = vmul.f32 1.442695, %v3865_v26  ;;  %v3864_v33 = vsub.f32 %v12311_v28, %v3842_v43 }
 0x679   : > { %3909 = vadd.xlane.f32.xlu1 %v12347_v57  ;;  %v3840_v4 = vpop.xlane.xlu0 %3839  ;;  %v12352_v38 = vpop.eup %10625 }
 0x67a   : > { %v3863_v39 = vsub.f32 %v12314_v29, %v3840_v4  ;;  %10635 = vpow2.f32 %v3891_v62  ;;  %v3889_v32 = vmul.f32 1.442695, %v3864_v33  ;;  %v10463_v33 = vld [vmem:[#allocation8 + $0x78] ss:$12 sps:$4 sm:$0xff]  }
 0x67b   : > { %v3992_v49 = vpop.permute.xlu1 %3991 }
 0x67c   : > { %v12354_v54 = vpop.eup %10627  ;;  %v3887_v40 = vmul.f32 1.442695, %v3863_v39 }
 0x67d   : > { %3905 = vadd.xlane.f32.xlu1 %v12352_v38  ;;  %3915 = vadd.xlane.f32.xlu0 %v12354_v54  ;;  %v3852_v48 = vpop.xlane.xlu0 %3851 }
 0x67e   : > { %10637 = vpow2.f32 %v3887_v40  ;;  %v3869_v36 = vsub.f32 %v12319_v3, %v3852_v48  ;;  %v12360_v51 = vpop.eup %10629  ;;  %v10459_v40 = vld [vmem:[#allocation8 + $0x60] ss:$12 sps:$4 sm:$0xff]   ;;  %v10467_v48 = vld [vmem:[#allocation8 + $0x90] ss:$12 sps:$4 sm:$0xff]  }
 0x67f   : > { %10639 = vpow2.f32 %v3893_v11  ;;  %v10461_v11 = vld [vmem:[#allocation8 + $0x64] ss:$12 sps:$4 sm:$0xff]  }
 0x680   : > { %v12362_v29 = vpop.eup %10631  ;;  %v3899_v23 = vmul.f32 1.442695, %v3869_v36  ;;  %4216 = vmatprep.subr.bf16.mxu0 %v10461_v11 }
 0x681   : > { %3913 = vadd.xlane.f32.xlu1 %v12360_v51  ;;  %3911 = vadd.xlane.f32.xlu0 %v12362_v29  ;;  %v3848_v28 = vpop.xlane.xlu0 %3847  ;;  %v12367_v55 = vpop.eup %10633 }
 0x682   : > { %10641 = vpow2.f32 %v3899_v23  ;;  %v3867_v58 = vsub.f32 %v12323_v20, %v3848_v28  ;;  %4217 = vmatpush1.bf16.msra.mxu0 %v10459_v40 }
 0x683   : > { %10643 = vpow2.f32 %v3889_v32 }
 0x684   : > { %v3895_v10 = vmul.f32 1.442695, %v3867_v58  ;;  %v12370_v53 = vpop.eup %10635 }
 0x685   : > { %3917 = vadd.xlane.f32.xlu0 %v12367_v55  ;;  %v3990_v3 = vpop.permute.xlu0 %3989 }
 0x686   : > { %10645 = vpow2.f32 %v3895_v10  ;;  %9158 = vmatprep.subr.bf16.mxu1 %v3990_v3 }
 0x687   : > { %9159 = vmatpush3.bf16.msra.mxu1 %v3990_v3 }
 0x688   : > { %v12372_v0 = vpop.eup %10637  ;;  %9160 = vmatprep.subr.bf16.mxu1 %v3992_v49 }
 0x689   : > { %3923 = vadd.xlane.f32.xlu0 %v12370_v53  ;;  %3919 = vadd.xlane.f32.xlu1 %v12372_v0  ;;  %v12376_v20 = vpop.eup %10639 }
 0x68b   : > { %9161 = vmatpush3.bf16.msra.mxu1 %v3992_v49 }
 0x68c   : > { %v12378_v41 = vpop.eup %10641 }
 0x68d   : > { %3925 = vadd.xlane.f32.xlu0 %v12376_v20  ;;  %3931 = vadd.xlane.f32.xlu1 %v12378_v41  ;;  %v12382_v35 = vpop.eup %10643 }
 0x690   : > { %v12384_v31 = vpop.eup %10645 }
 0x691   : > { %3921 = vadd.xlane.f32.xlu0 %v12382_v35  ;;  %3927 = vadd.xlane.f32.xlu1 %v12384_v31 }
 0x6a2   : > { %3997 = vrot.lane.b32.xlu1 %v13683_v9, %s11170_s26 }
 0x6a7   : > { %3995 = vrot.lane.b32.xlu0 %v13684_v30, %s11170_s26 }
 0x6ac   : > { %v3854_v56 = vpop.xlane.xlu1 %3853 }
 0x6ad   : > { %v3870_v13 = vsub.f32 %v12331_v15, %v3854_v56  ;;  %v10469_v15 = vld [vmem:[#allocation8 + $0x94] ss:$12 sps:$4 sm:$0xff]  }
 0x6af   : > { %v3901_v4 = vmul.f32 1.442695, %v3870_v13 }
 0x6b0   : > { %v3850_v59 = vpop.xlane.xlu1 %3849 }
 0x6b1   : > { %v3868_v37 = vsub.f32 %v12335_v25, %v3850_v59  ;;  %v10465_v25 = vld [vmem:[#allocation8 + $0x7c] ss:$12 sps:$4 sm:$0xff]  }
 0x6b2   : > { %4218 = vmatprep.subr.bf16.mxu0 %v10465_v25 }
 0x6b3   : > { %v3897_v62 = vmul.f32 1.442695, %v3868_v37  ;;  %4219 = vmatpush1.bf16.msra.mxu0 %v10463_v33 }
 0x6b4   : > { %v3994_v26 = vpop.permute.xlu1 %3993  ;;  %4220 = vmatprep.subr.bf16.mxu0 %v10469_v15 }
 0x6b5   : > { %9162 = vmatprep.subr.bf16.mxu1 %v3994_v26  ;;  %10647 = vpow2.f32 %v3897_v62 }
 0x6b6   : > { %9163 = vmatpush3.bf16.msra.mxu1 %v3994_v26  ;;  %10649 = vpow2.f32 %v3901_v4 }
 0x6b7   : > { %4221 = vmatpush1.bf16.msra.mxu0 %v10467_v48 }
 0x6bf   : > { %v12394_v43 = vpop.eup %10647 }
 0x6c0   : > { %v12397_v39 = vpop.eup %10649 }
 0x6c6   : > { %3929 = vadd.xlane.f32.xlu0 %v12394_v43 }
 0x6ca   : > { %3933 = vadd.xlane.f32.xlu0 %v12397_v39 }
 0x6fe   : > { %v3908_v36 = vpop.xlane.xlu1 %3907 }
 0x702   : > { %v3904_v23 = vpop.xlane.xlu1 %3903 }
 0x703   : > { %10651 = vrcp.f32 %v3904_v23 }
 0x706   : > { %v3910_v32 = vpop.xlane.xlu1 %3909 }
 0x70a   : > { %v3906_v28 = vpop.xlane.xlu1 %3905  ;;  %v3916_v58 = vpop.xlane.xlu0 %3915 }
 0x70b   : > { %10653 = vrcp.f32 %v3906_v28 }
 0x70c   : > { %10655 = vrcp.f32 %v3910_v32 }
 0x70d   : > { %v10652_v9 = vpop.eup %10651 }
 0x70e   : > { %v3912_v10 = vpop.xlane.xlu0 %3911  ;;  %v3914_v3 = vpop.xlane.xlu1 %3913  ;;  %v3951_v37 = vmul.f32 %v10652_v9, %v12344_v63 }
 0x70f   : > { %10657 = vrcp.f32 %v3914_v3  ;;  %v10466_v3 = vld [vmem:[#allocation8 + $0x80] ss:$12 sps:$4 sm:$0xff]  }
 0x710   : > { %10659 = vrcp.f32 %v3912_v10 }
 0x711   : > { %10661 = vrcp.f32 %v3908_v36  ;;  %v10462_v36 = vld [vmem:[#allocation8 + $0x68] ss:$12 sps:$4 sm:$0xff]  }
 0x712   : > { %v3918_v49 = vpop.xlane.xlu0 %3917 }
 0x713   : > { %10663 = vrcp.f32 %v3918_v49 }
 0x715   : > { %v10654_v30 = vpop.eup %10653 }
 0x716   : > { %v3920_v56 = vpop.xlane.xlu1 %3919  ;;  %v3924_v59 = vpop.xlane.xlu0 %3923  ;;  %v3952_v26 = vmul.f32 %v10654_v30, %v12352_v38 }
 0x717   : > { %v10656_v25 = vpop.eup %10655 }
 0x718   : > { %v3967_v13 = vpack.c.bf16 %v3952_v26, %v3951_v37  ;;  %v3954_v23 = vmul.f32 %v10656_v25, %v12347_v57 }
 0x719   : > { %v10658_v33 = vpop.eup %10657 }
 0x71a   : > { %9168 = vmatprep.mubr.bf16.mxu1 %v3967_v13  ;;  %v3932_v62 = vpop.xlane.xlu1 %3931  ;;  %v3926_v4 = vpop.xlane.xlu0 %3925  ;;  %v3956_v28 = vmul.f32 %v10658_v33, %v12360_v51  ;;  %v10470_v51 = vld [vmem:[#allocation8 + $0x98] ss:$12 sps:$4 sm:$0xff]  }
 0x71b   : > { %v10660_v48 = vpop.eup %10659 }
 0x71c   : > { %v10662_v63 = vpop.eup %10661  ;;  %v3955_v32 = vmul.f32 %v10660_v48, %v12362_v29 }
 0x71d   : > { %v3953_v10 = vmul.f32 %v10662_v63, %v12340_v27  ;;  %v10664_v49 = vpop.eup %10663 }
 0x71e   : > { %v3928_v40 = vpop.xlane.xlu1 %3927  ;;  %v3922_v11 = vpop.xlane.xlu0 %3921  ;;  %v3969_v9 = vpack.c.bf16 %v3956_v28, %v3955_v32  ;;  %v3958_v29 = vmul.f32 %v10664_v49, %v12367_v55  ;;  %v10473_v32 = vld [vmem:[#allocation8 + $0xac] ss:$12 sps:$4 sm:$0xff]   ;;  %v10474_v28 = vld [vmem:[#allocation8 + $0xb0] ss:$12 sps:$4 sm:$0xff]  }
 0x71f   : > { %10665 = vrcp.f32 %v3922_v11  ;;  %4222 = vmatprep.subr.bf16.mxu0 %v10473_v32 }
 0x720   : > { %10667 = vrcp.f32 %v3916_v58  ;;  %v3968_v58 = vpack.c.bf16 %v3954_v23, %v3953_v10  ;;  %v10478_v10 = vld [vmem:[#allocation8 + $0x8] ss:$12 sps:$4 sm:$0xff]  }
 0x721   : > { %10669 = vrcp.f32 %v3920_v56 }
 0x722   : > { %v3996_v15 = vpop.permute.xlu0 %3995  ;;  %v3998_v38 = vpop.permute.xlu1 %3997  ;;  %10671 = vrcp.f32 %v3926_v4 }
 0x723   : > { %9164 = vmatprep.subr.bf16.mxu1 %v3996_v15  ;;  %10673 = vrcp.f32 %v3924_v59 }
 0x724   : > { %9165 = vmatpush3.bf16.msra.mxu1 %v3996_v15  ;;  %10675 = vrcp.f32 %v3928_v40 }
 0x725   : > { %9166 = vmatprep.subr.bf16.mxu1 %v3998_v38 }
 0x728   : > { %9167 = vmatpush3.bf16.msra.mxu1 %v3998_v38 }
 0x729   : > { %9184 = vmatprep.subr.bf16.mxu1 %v10462_v36  ;;  %v10666_v30 = vpop.eup %10665 }
 0x72a   : > { %v10668_v56 = vpop.eup %10667  ;;  %v3960_v27 = vmul.f32 %v10666_v30, %v12382_v35  ;;  %v10481_v30 = vld [vmem:[#allocation8 + $0x1c] ss:$12 sps:$4 sm:$0xff]  }
 0x72b   : > { %9169 = vmatmul.mubr.bf16.vlgmr.msra.gmra.mrb[128].mxu1 %v3968_v58  ;;  %v10670_v57 = vpop.eup %10669  ;;  %v3957_v37 = vmul.f32 %v10668_v56, %v12354_v54  ;;  %v10482_v56 = vld [vmem:[#allocation8 + $0x20] ss:$12 sps:$4 sm:$0xff]  }
 0x72c   : > { %9172 = vmatprep.mubr.bf16.mxu1 %v3969_v9  ;;  %9185 = vmatpush3.bf16.msra.mxu1 %v10462_v36  ;;  %v3959_v26 = vmul.f32 %v10670_v57, %v12372_v0  ;;  %v10672_v59 = vpop.eup %10671  ;;  %v10475_v9 = vld [vmem:[#allocation8] ss:$12 sps:$4 sm:$0xff]   ;;  %v10479_v57 = vld [vmem:[#allocation8 + $0x18] ss:$12 sps:$4 sm:$0xff]  }
 0x72d   : > { %9186 = vmatprep.subr.bf16.mxu1 %v10466_v3  ;;  %v3970_v13 = vpack.c.bf16 %v3958_v29, %v3957_v37  ;;  %v10674_v11 = vpop.eup %10673  ;;  %v3962_v25 = vmul.f32 %v10672_v59, %v12376_v20  ;;  %v10486_v37 = vld [vmem:[#allocation8 + $0x38] ss:$12 sps:$4 sm:$0xff]  }
 0x72e   : > { %v3971_v4 = vpack.c.bf16 %v3960_v27, %v3959_v26  ;;  %v3961_v55 = vmul.f32 %v10674_v11, %v12370_v53  ;;  %v10676_v0 = vpop.eup %10675 }
 0x72f   : > { %v3963_v48 = vmul.f32 %v10676_v0, %v12384_v31  ;;  %v10477_v31 = vld [vmem:[#allocation8 + $0x4] ss:$12 sps:$4 sm:$0xff]  }
 0x730   : > { %9187 = vmatpush3.bf16.msra.mxu1 %v10466_v3  ;;  %v3972_v33 = vpack.c.bf16 %v3962_v25, %v3961_v55  ;;  %v10489_v25 = vld [vmem:[#allocation8 + $0x4c] ss:$12 sps:$4 sm:$0xff]   ;;  %v10490_v55 = vld [vmem:[#allocation8 + $0x50] ss:$12 sps:$4 sm:$0xff]  }
 0x731   : > { %9188 = vmatprep.subr.bf16.mxu1 %v10470_v51 }
 0x733   : > { %9173 = vmatmul.mubr.bf16.gmra.mrb[132].mxu1 %v3970_v13 }
 0x734   : > { %9176 = vmatprep.mubr.bf16.mxu1 %v3971_v4  ;;  %9189 = vmatpush3.bf16.msra.mxu1 %v10470_v51  ;;  %v10485_v51 = vld [vmem:[#allocation8 + $0x34] ss:$12 sps:$4 sm:$0xff]   ;;  %v10483_v4 = vld [vmem:[#allocation8 + $0x30] ss:$12 sps:$4 sm:$0xff]  }
 0x735   : > { %9190 = vmatprep.subr.bf16.mxu1 %v10474_v28 }
 0x738   : > { %9191 = vmatpush3.bf16.msra.mxu1 %v10474_v28 }
 0x739   : > { %9208 = vmatprep.subr.bf16.mxu1 %v10478_v10 }
 0x73b   : > { %9177 = vmatmul.mubr.bf16.gmra.mrb[136].mxu1 %v3972_v33  ;;  %v10487_v33 = vld [vmem:[#allocation8 + $0x48] ss:$12 sps:$4 sm:$0xff]  }
 0x753   : > { %v3930_v35 = vpop.xlane.xlu0 %3929 }
 0x754   : > { %10677 = vrcp.f32 %v3930_v35 }
 0x755   : > { %10679 = vrcp.f32 %v3932_v62  ;;  %v10471_v62 = vld [vmem:[#allocation8 + $0xa8] ss:$12 sps:$4 sm:$0xff]  }
 0x756   : > { %4223 = vmatpush1.bf16.msra.mxu0 %v10471_v62 }
 0x757   : > { %v3934_v54 = vpop.xlane.xlu0 %3933  ;;  %4514 = vmatprep.subr.bf16.mxu0 %v10477_v31  ;;  %v13687_v31 = vld [vmem:[#allocation33_spill] sm:$0xff] }
 0x758   : > { %10681 = vrcp.f32 %v3934_v54 }
 0x75e   : > { %v10678_v15 = vpop.eup %10677 }
 0x75f   : > { %v3964_v63 = vmul.f32 %v10678_v15, %v12394_v43  ;;  %v10680_v38 = vpop.eup %10679 }
 0x760   : > { %v3965_v53 = vmul.f32 %v10680_v38, %v12378_v41  ;;  %v13685_v38 = vld [vmem:[#allocation53_spill] sm:$0xff] }
 0x761   : > { %v3973_v23 = vpack.c.bf16 %v3964_v63, %v3963_v48 }
 0x762   : > { %v10682_v36 = vpop.eup %10681 }
 0x763   : > { %9180 = vmatprep.mubr.bf16.mxu1 %v3973_v23  ;;  %v3966_v20 = vmul.f32 %v10682_v36, %v12397_v39  ;;  %v13686_v23 = vld [vmem:[#allocation32_spill] sm:$0xff] }
 0x764   : > { %v4749_v28 = vsel %vm3211_vm0, %v13686_v23, 0 }
 0x765   : > { %v3974_v40 = vpack.c.bf16 %v3966_v20, %v3965_v53 }
 0x767   : > { %9181 = vmatmul.mubr.bf16.gmra.mrb[140].mxu1 %v3974_v40 }
 0x7fe   : > { %v9170_v43 = vpop.f32.mrb[128].mxu1 }
 0x7ff   : > { %v4041_v58 = vpop.f32.mrb[129].mxu1 }
 0x800   : > { %v9171_v3 = vpop.f32.mrb[130].mxu1 }
 0x801   : > { %v4105_v49 = vpack.c.bf16 %v9171_v3, %v9170_v43  ;;  %v4044_v41 = vpop.f32.mrb[131].mxu1  ;;  %v13688_v43 = vld [vmem:[#allocation55_spill] sm:$0xff] }
 0x802   : > { %v4104_v39 = vpack.c.bf16 %v4044_v41, %v4041_v58  ;;  %v13689_v58 = vld [vmem:[#allocation34_spill] sm:$0xff]  ;;  %v13692_v41 = vld [vmem:[#allocation35_spill] sm:$0xff] }
 0x803   : > { %v4755_v3 = vsel %vm3211_vm0, %v13689_v58, 0 }
 0x804   : > { %8489 = vmatmul.mubr.msk.bf16.vlgmr.msra.gmra.mrb[96].mxu0 %vm3211_vm0, %v4104_v39  ;;  %9192 = vmatprep.mubr.msk.bf16.mxu1 %vm3211_vm0, %v4104_v39  ;;  %v13694_v39 = vld [vmem:[#allocation63_spill] sm:$0xff] }
 0x805   : > { %4515 = vmatpush1.bf16.msra.mxu0 %v10475_v9  ;;  %9193 = vmatmul.mubr.msk.bf16.vlgmr.msra.gmra.mrb[144].mxu1 %vm3211_vm0, %v4105_v49  ;;  %v4758_v9 = vsel %vm3211_vm0, %v13692_v41, 0 }
 0x806   : > { %9209 = vmatpush3.bf16.msra.mxu1 %v10478_v10  ;;  %v9174_v29 = vpop.f32.mrb[132].mxu1  ;;  %4516 = vmatprep.subr.bf16.mxu0 %v10481_v30  ;;  %v4752_v10 = vsel %vm3211_vm0, %v13687_v31, 0  ;;  %v13695_v30 = vld [vmem:[#allocation36_spill] sm:$0xff] }
 0x807   : > { %v4057_v27 = vpop.f32.mrb[133].mxu1  ;;  %9210 = vmatprep.subr.bf16.mxu1 %v10482_v56  ;;  %4258 = vmatprep.mubr.bf16.mxu0 %v13677_v2 }
 0x808   : > { %v9175_v26 = vpop.f32.mrb[134].mxu1 }
 0x809   : > { %v4107_v13 = vpack.c.bf16 %v9175_v26, %v9174_v29  ;;  %4517 = vmatpush1.bf16.msra.mxu0 %v10479_v57  ;;  %v4060_v59 = vpop.f32.mrb[135].mxu1  ;;  %v4761_v57 = vsel %vm3211_vm0, %v13695_v30, 0  ;;  %v13698_v29 = vld [vmem:[#allocation67_spill] sm:$0xff]  ;;  %v13701_v26 = vld [vmem:[#allocation41_spill] sm:$0xff] }
 0x80a   : > { %v4106_v11 = vpack.c.bf16 %v4060_v59, %v4057_v27  ;;  %9211 = vmatpush3.bf16.msra.mxu1 %v10482_v56  ;;  %4518 = vmatprep.subr.bf16.mxu0 %v10485_v51  ;;  %v13696_v56 = vld [vmem:[#allocation24_spill] sm:$0xff]  ;;  %v13699_v51 = vld [vmem:[#allocation37_spill] sm:$0xff]  ;;  %v13700_v27 = vld [vmem:[#allocation39_spill] sm:$0xff] }
 0x80b   : > { %9212 = vmatprep.subr.bf16.mxu1 %v10486_v37  ;;  %v13704_v59 = vld [vmem:[#allocation27_spill] sm:$0xff] }
 0x80c   : > { %8490 = vmatmul.mubr.msk.bf16.gmra.mrb[100].mxu0 %vm3211_vm0, %v4105_v49  ;;  %9196 = vmatprep.mubr.msk.bf16.mxu1 %vm3211_vm0, %v4106_v11  ;;  %v13691_v49 = vld [vmem:[#allocation59_spill] sm:$0xff] }
 0x80d   : > { %4519 = vmatpush1.bf16.msra.mxu0 %v10483_v4  ;;  %9197 = vmatmul.mubr.msk.bf16.gmra.mrb[148].mxu1 %vm3211_vm0, %v4107_v13  ;;  %v13705_v4 = vld [vmem:[#allocation28_spill] sm:$0xff] }
 0x80e   : > { %9213 = vmatpush3.bf16.msra.mxu1 %v10486_v37  ;;  %v9178_v35 = vpop.f32.mrb[136].mxu1  ;;  %4520 = vmatprep.subr.bf16.mxu0 %v10489_v25  ;;  %v4767_v37 = vsel %vm3211_vm0, %v13700_v27, 0  ;;  %v13708_v25 = vld [vmem:[#allocation31_spill] sm:$0xff] }
 0x80f   : > { %v4073_v54 = vpop.f32.mrb[137].mxu1  ;;  %9214 = vmatprep.subr.bf16.mxu1 %v10490_v55  ;;  %4268 = vmatprep.mubr.bf16.mxu0 %v13677_v2 }
 0x810   : > { %v9179_v0 = vpop.f32.mrb[138].mxu1 }
 0x811   : > { %v4109_v15 = vpack.c.bf16 %v9179_v0, %v9178_v35  ;;  %4521 = vmatpush1.bf16.msra.mxu0 %v10487_v33  ;;  %v4076_v48 = vpop.f32.mrb[139].mxu1 }
 0x812   : > { %v4108_v63 = vpack.c.bf16 %v4076_v48, %v4073_v54  ;;  %9215 = vmatpush3.bf16.msra.mxu1 %v10490_v55  ;;  %9264 = vmatprep.subr.bf16.mxu0 %v13685_v38 }
 0x813   : > { %9968 = vmatprep.subr.msk.bf16.mxu1 %vm3211_vm0, %v13686_v23 }
 0x814   : > { %8491 = vmatmul.mubr.msk.bf16.gmra.mrb[104].mxu0 %vm3211_vm0, %v4106_v11  ;;  %9200 = vmatprep.mubr.msk.bf16.mxu1 %vm3211_vm0, %v4108_v63  ;;  %v13707_v11 = vld [vmem:[#allocation30_spill] sm:$0xff] }
 0x815   : > { %9201 = vmatmul.mubr.msk.bf16.gmra.mrb[152].mxu1 %vm3211_vm0, %v4109_v15  ;;  %4278 = vmatprep.mubr.bf16.mxu0 %v13677_v2 }
 0x81c   : > { %8492 = vmatmul.mubr.msk.bf16.gmra.mrb[108].mxu0 %vm3211_vm0, %v4107_v13  ;;  %v13703_v13 = vld [vmem:[#allocation26_spill] sm:$0xff] }
 0x81d   : > { %4288 = vmatprep.mubr.bf16.mxu0 %v13677_v2 }
 0x824   : > { %8493 = vmatmul.mubr.msk.bf16.gmra.mrb[112].mxu0 %vm3211_vm0, %v4108_v63 }
 0x825   : > { %4298 = vmatprep.mubr.bf16.mxu0 %v13677_v2 }
 0x82c   : > { %8494 = vmatmul.mubr.msk.bf16.gmra.mrb[116].mxu0 %vm3211_vm0, %v4109_v15 }
 0x82d   : > { %4308 = vmatprep.mubr.bf16.mxu0 %v13677_v2 }
 0x83a   : > { %v9182_v36 = vpop.f32.mrb[140].mxu1 }
 0x83b   : > { %v4089_v53 = vpop.f32.mrb[141].mxu1 }
 0x83c   : > { %v9183_v20 = vpop.f32.mrb[142].mxu1 }
 0x83d   : > { %v4111_v40 = vpack.c.bf16 %v9183_v20, %v9182_v36  ;;  %v4092_v32 = vpop.f32.mrb[143].mxu1 }
 0x83e   : > { %v4110_v62 = vpack.c.bf16 %v4092_v32, %v4089_v53 }
 0x840   : > { %8495 = vmatmul.mubr.msk.bf16.gmra.mrb[120].mxu0 %vm3211_vm0, %v4110_v62  ;;  %9204 = vmatprep.mubr.msk.bf16.mxu1 %vm3211_vm0, %v4110_v62 }
 0x841   : > { %9205 = vmatmul.mubr.msk.bf16.gmra.mrb[156].mxu1 %vm3211_vm0, %v4111_v40  ;;  %4318 = vmatprep.mubr.bf16.mxu0 %v13677_v2 }
 0x842   : > { %9216 = vmatprep.mubr.msk.bf16.mxu1 %vm3211_vm0, %v12280_v6 }
 0x848   : > { %8496 = vmatmul.mubr.msk.bf16.gmra.mrb[124].mxu0 %vm3211_vm0, %v4111_v40 }
 0x849   : > { %9217 = vmatmul.mubr.msk.bf16.vlgmr.msra.gmra.mrb[144].mxu1 %vm3211_vm0, %v12278_v12  ;;  %4546 = vmatprep.mubr.bf16.mxu0 %v13677_v2 }
 0x84a   : > { %9233 = vmatpush3.bf16.xpose.msra.mxu1 %v4749_v28  ;;  %9220 = vmatprep.mubr.msk.bf16.mxu1 %vm3211_vm0, %v12284_v18 }
 0x84b   : > { %9969 = vmatprep.subr.msk.bf16.mxu1 %vm3211_vm0, %v13687_v31 }
 0x850   : > { %8517 = vmatmul.mubr.msk.bf16.vlgmr.msra.gmra.mrb[96].mxu0 %vm3211_vm0, %v12280_v6  ;;  %v13690_v6 = vld [vmem:[#allocation57_spill] sm:$0xff] }
 0x851   : > { %9265 = vmatpush3.bf16.msra.mxu0 %v13685_v38  ;;  %9221 = vmatmul.mubr.msk.bf16.gmra.mrb[148].mxu1 %vm3211_vm0, %v12282_v46 }
 0x852   : > { %9235 = vmatpush3.bf16.xpose.msra.mxu1 %v4752_v10  ;;  %9266 = vmatprep.subr.bf16.mxu0 %v13688_v43 }
 0x853   : > { %9224 = vmatprep.mubr.msk.bf16.mxu1 %vm3211_vm0, %v12288_v52  ;;  %9970 = vmatprep.subr.msk.bf16.mxu1 %vm3211_vm0, %v13689_v58 }
 0x854   : > { %4556 = vmatprep.mubr.bf16.mxu0 %v13677_v2 }
 0x855   : > { %9267 = vmatpush3.bf16.msra.mxu0 %v13688_v43 }
 0x856   : > { %9268 = vmatprep.subr.bf16.mxu0 %v13690_v6 }
 0x858   : > { %8518 = vmatmul.mubr.msk.bf16.gmra.mrb[100].mxu0 %vm3211_vm0, %v12278_v12  ;;  %v13693_v12 = vld [vmem:[#allocation61_spill] sm:$0xff] }
 0x859   : > { %9269 = vmatpush3.bf16.msra.mxu0 %v13690_v6  ;;  %9225 = vmatmul.mubr.msk.bf16.gmra.mrb[152].mxu1 %vm3211_vm0, %v12286_v61 }
 0x85a   : > { %9237 = vmatpush3.bf16.xpose.msra.mxu1 %v4755_v3  ;;  %9270 = vmatprep.subr.bf16.mxu0 %v13691_v49 }
 0x85b   : > { %9228 = vmatprep.mubr.msk.bf16.mxu1 %vm3211_vm0, %v12292_v44  ;;  %9971 = vmatprep.subr.msk.bf16.mxu1 %vm3211_vm0, %v13692_v41 }
 0x85c   : > { %4566 = vmatprep.mubr.bf16.mxu0 %v13677_v2 }
 0x85d   : > { %9271 = vmatpush3.bf16.msra.mxu0 %v13691_v49 }
 0x85e   : > { %9272 = vmatprep.subr.bf16.mxu0 %v13693_v12 }
 0x860   : > { %8519 = vmatmul.mubr.msk.bf16.gmra.mrb[104].mxu0 %vm3211_vm0, %v12284_v18  ;;  %v13697_v18 = vld [vmem:[#allocation65_spill] sm:$0xff] }
 0x861   : > { %9273 = vmatpush3.bf16.msra.mxu0 %v13693_v12  ;;  %9229 = vmatmul.mubr.msk.bf16.gmra.mrb[156].mxu1 %vm3211_vm0, %v12290_v17 }
 0x862   : > { %9239 = vmatpush3.bf16.xpose.msra.mxu1 %v4758_v9  ;;  %9274 = vmatprep.subr.bf16.mxu0 %v13694_v39 }
 0x863   : > { %9972 = vmatprep.subr.msk.bf16.mxu1 %vm3211_vm0, %v13695_v30  ;;  %9248 = vmatprep.mubr.msk.bf16.mxu1 %vm3211_vm0, %v13696_v56 }
 0x864   : > { %4576 = vmatprep.mubr.bf16.mxu0 %v13677_v2 }
 0x865   : > { %9275 = vmatpush3.bf16.msra.mxu0 %v13694_v39 }
 0x866   : > { %9276 = vmatprep.subr.bf16.mxu0 %v13697_v18 }
 0x868   : > { %8520 = vmatmul.mubr.msk.bf16.gmra.mrb[108].mxu0 %vm3211_vm0, %v12282_v46  ;;  %v4764_v46 = vsel %vm3211_vm0, %v13699_v51, 0 }
 0x869   : > { %9277 = vmatpush3.bf16.msra.mxu0 %v13697_v18  ;;  %4586 = vmatprep.mubr.bf16.mxu0 %v13677_v2 }
 0x86a   : > { %9241 = vmatpush3.bf16.xpose.msra.mxu1 %v4761_v57  ;;  %9278 = vmatprep.subr.bf16.mxu0 %v13698_v29 }
 0x86b   : > { %9973 = vmatprep.subr.msk.bf16.mxu1 %vm3211_vm0, %v13699_v51 }
 0x86d   : > { %9279 = vmatpush3.bf16.msra.mxu0 %v13698_v29 }
 0x870   : > { %8521 = vmatmul.mubr.msk.bf16.gmra.mrb[112].mxu0 %vm3211_vm0, %v12288_v52  ;;  %v4770_v52 = vsel %vm3211_vm0, %v13701_v26, 0 }
 0x871   : > { %4596 = vmatprep.mubr.bf16.mxu0 %v13677_v2 }
 0x872   : > { %9243 = vmatpush3.bf16.xpose.msra.mxu1 %v4764_v46 }
 0x873   : > { %9974 = vmatprep.subr.msk.bf16.mxu1 %vm3211_vm0, %v13700_v27 }
 0x878   : > { %8522 = vmatmul.mubr.msk.bf16.gmra.mrb[116].mxu0 %vm3211_vm0, %v12286_v61  ;;  %v13702_v61 = vld [vmem:[#allocation25_spill] sm:$0xff] }
 0x879   : > { %4606 = vmatprep.mubr.bf16.mxu0 %v13677_v2 }
 0x87a   : > { %9245 = vmatpush3.bf16.xpose.msra.mxu1 %v4767_v37 }
 0x87b   : > { %9975 = vmatprep.subr.msk.bf16.mxu1 %vm3211_vm0, %v13701_v26 }
 0x880   : > { %8523 = vmatmul.mubr.msk.bf16.gmra.mrb[120].mxu0 %vm3211_vm0, %v12292_v44  ;;  %v13706_v44 = vld [vmem:[#allocation29_spill] sm:$0xff] }
 0x881   : > { %4616 = vmatprep.mubr.bf16.mxu0 %v13677_v2 }
 0x882   : > { %9247 = vmatpush3.bf16.xpose.msra.mxu1 %v4770_v52 }
 0x888   : > { %8524 = vmatmul.mubr.msk.bf16.gmra.mrb[124].mxu0 %vm3211_vm0, %v12290_v17 }
 0x889   : > { %9249 = vmatmul.mubr.msk.bf16.vlgmr.msra.gmra.mrb[160].mxu1 %vm3211_vm0, %v13702_v61 }
 0x88a   : > { %9252 = vmatprep.mubr.msk.bf16.mxu1 %vm3211_vm0, %v13703_v13 }
 0x891   : > { %9253 = vmatmul.mubr.msk.bf16.gmra.mrb[164].mxu1 %vm3211_vm0, %v13704_v59 }
 0x892   : > { %9256 = vmatprep.mubr.msk.bf16.mxu1 %vm3211_vm0, %v13705_v4 }
 0x899   : > { %9257 = vmatmul.mubr.msk.bf16.gmra.mrb[168].mxu1 %vm3211_vm0, %v13706_v44 }
 0x89a   : > { %9260 = vmatprep.mubr.msk.bf16.mxu1 %vm3211_vm0, %v13707_v11 }
 0x8a1   : > { %9261 = vmatmul.mubr.msk.bf16.gmra.mrb[172].mxu1 %vm3211_vm0, %v13708_v25 }
 0x95c   : > { %v9250_v17 = vpop.f32.mrb[160].mxu1 }
 0x95d   : > { %v4815_v55 = vadd.f32 %v9250_v17, %v11994_v16  ;;  %v4806_v33 = vpop.f32.mrb[161].mxu1 }
 0x95e   : > { %v9251_v35 = vpop.f32.mrb[162].mxu1  ;;  %v4807_v0 = vadd.f32 %v4806_v33, %v11997_v8 }
 0x95f   : > { %4873 = vmax.xlane.f32.xlu0 %v4815_v55  ;;  %v4809_v54 = vpop.f32.mrb[163].mxu1  ;;  %v4818_v40 = vadd.f32 %v9251_v35, %v12010_v7 }
 0x960   : > { %v4810_v48 = vadd.f32 %v4809_v54, %v12014_v5 }
 0x963   : > { %4869 = vmax.xlane.f32.xlu0 %v4807_v0 }
 0x964   : > { %v9254_v15 = vpop.f32.mrb[164].mxu1 }
 0x965   : > { %v4822_v63 = vpop.f32.mrb[165].mxu1  ;;  %v4831_v62 = vadd.f32 %v9254_v15, %v12028_v1 }
 0x966   : > { %v4823_v36 = vadd.f32 %v4822_v63, %v12043_v42  ;;  %v9255_v53 = vpop.f32.mrb[166].mxu1 }
 0x967   : > { %v4825_v20 = vpop.f32.mrb[167].mxu1  ;;  %4871 = vmax.xlane.f32.xlu0 %v4810_v48  ;;  %v12550_v9 = vadd.f32 %v9255_v53, %v12035_v34 }
 0x968   : > { %4877 = vmax.xlane.f32.xlu1 %v4823_v36  ;;  %v4826_v46 = vadd.f32 %v4825_v20, %v12050_v19 }
 0x96b   : > { %4875 = vmax.xlane.f32.xlu0 %v4818_v40 }
 0x96c   : > { %v9258_v32 = vpop.f32.mrb[168].mxu1 }
 0x96d   : > { %v4838_v28 = vpop.f32.mrb[169].mxu1  ;;  %v12559_v35 = vadd.f32 %v9258_v32, %v12061_v50 }
 0x96e   : > { %v9259_v10 = vpop.f32.mrb[170].mxu1  ;;  %v4839_v54 = vadd.f32 %v4838_v28, %v12078_v47 }
 0x96f   : > { %v4841_v3 = vpop.f32.mrb[171].mxu1  ;;  %4881 = vmax.xlane.f32.xlu0 %v4831_v62  ;;  %v12564_v15 = vadd.f32 %v9259_v10, %v12070_v60 }
 0x970   : > { %v12568_v63 = vadd.f32 %v4841_v3, %v12085_v14 }
 0x973   : > { %4883 = vmax.xlane.f32.xlu0 %v12550_v9 }
 0x974   : > { %v9262_v57 = vpop.f32.mrb[172].mxu1 }
 0x975   : > { %v12555_v37 = vadd.f32 %v9262_v57, %v12094_v24  ;;  %v4854_v52 = vpop.f32.mrb[173].mxu1 }
 0x976   : > { %v9263_v17 = vpop.f32.mrb[174].mxu1  ;;  %v12572_v53 = vadd.f32 %v4854_v52, %v12106_v21 }
 0x977   : > { %v4857_v33 = vpop.f32.mrb[175].mxu1  ;;  %4897 = vmax.xlane.f32.xlu1 %v12555_v37  ;;  %4879 = vmax.xlane.f32.xlu0 %v4826_v46  ;;  %v12580_v32 = vadd.f32 %v9263_v17, %v13680_v22 }
 0x978   : > { %v12576_v20 = vadd.f32 %v4857_v33, %v13681_v45 }
 0x97b   : > { %4889 = vmax.xlane.f32.xlu0 %v12559_v35 }
 0x97f   : > { %4885 = vmax.xlane.f32.xlu0 %v4839_v54 }
 0x983   : > { %4891 = vmax.xlane.f32.xlu0 %v12564_v15 }
 0x987   : > { %4887 = vmax.xlane.f32.xlu0 %v12568_v63 }
 0x98b   : > { %4893 = vmax.xlane.f32.xlu0 %v12572_v53 }
 0x98f   : > { %4895 = vmax.xlane.f32.xlu0 %v12576_v20 }
 0x993   : > { %4899 = vmax.xlane.f32.xlu0 %v12580_v32 }
 0x9ec   : > { %v4874_v28 = vpop.xlane.xlu0 %4873 }
 0x9ed   : > { %v4903_v10 = vsub.f32 %v4815_v55, %v4874_v28 }
 0x9ef   : > { %v4921_v29 = vmul.f32 1.442695, %v4903_v10 }
 0x9f0   : > { %v4870_v3 = vpop.xlane.xlu0 %4869 }
 0x9f1   : > { %v4901_v57 = vsub.f32 %v4807_v0, %v4870_v3 }
 0x9f3   : > { %v4917_v6 = vmul.f32 1.442695, %v4901_v57 }
 0x9f4   : > { %v4872_v52 = vpop.xlane.xlu0 %4871 }
 0x9f5   : > { %10683 = vpow2.f32 %v4917_v6  ;;  %v4902_v18 = vsub.f32 %v4810_v48, %v4872_v52  ;;  %v4878_v39 = vpop.xlane.xlu1 %4877 }
 0x9f6   : > { %v4905_v12 = vsub.f32 %v4823_v36, %v4878_v39  ;;  %10685 = vpow2.f32 %v4921_v29 }
 0x9f7   : > { %v4919_v33 = vmul.f32 1.442695, %v4902_v18 }
 0x9f8   : > { %v4925_v49 = vmul.f32 1.442695, %v4905_v12  ;;  %v4876_v43 = vpop.xlane.xlu0 %4875 }
 0x9f9   : > { %10687 = vpow2.f32 %v4919_v33  ;;  %v4904_v17 = vsub.f32 %v4818_v40, %v4876_v43 }
 0x9fa   : > { %10689 = vpow2.f32 %v4925_v49 }
 0x9fb   : > { %v4923_v21 = vmul.f32 1.442695, %v4904_v17 }
 0x9fc   : > { %v4882_v24 = vpop.xlane.xlu0 %4881 }
 0x9fd   : > { %10691 = vpow2.f32 %v4923_v21  ;;  %v4907_v55 = vsub.f32 %v4831_v62, %v4882_v24 }
 0x9ff   : > { %v12583_v28 = vpop.eup %10683  ;;  %v4929_v0 = vmul.f32 1.442695, %v4907_v55 }
 0xa00   : > { %4949 = vadd.xlane.f32.xlu1 %v12583_v28  ;;  %v4884_v6 = vpop.xlane.xlu0 %4883  ;;  %v12586_v48 = vpop.eup %10685 }
 0xa01   : > { %10693 = vpow2.f32 %v4929_v0  ;;  %v4908_v24 = vsub.f32 %v12550_v9, %v4884_v6 }
 0xa03   : > { %v12588_v39 = vpop.eup %10687  ;;  %v4931_v36 = vmul.f32 1.442695, %v4908_v24 }
 0xa04   : > { %4953 = vadd.xlane.f32.xlu1 %v12586_v48  ;;  %4951 = vadd.xlane.f32.xlu0 %v12588_v39  ;;  %v4880_v43 = vpop.xlane.xlu0 %4879  ;;  %v12592_v12 = vpop.eup %10689 }
 0xa05   : > { %v4906_v49 = vsub.f32 %v4826_v46, %v4880_v43  ;;  %v4898_v55 = vpop.xlane.xlu1 %4897 }
 0xa07   : > { %v12595_v21 = vpop.eup %10691  ;;  %v4927_v18 = vmul.f32 1.442695, %v4906_v49 }
 0xa08   : > { %4957 = vadd.xlane.f32.xlu1 %v12592_v12  ;;  %4955 = vadd.xlane.f32.xlu0 %v12595_v21  ;;  %v4890_v29 = vpop.xlane.xlu0 %4889 }
 0xa09   : > { %10695 = vpow2.f32 %v4927_v18  ;;  %v4911_v46 = vsub.f32 %v12559_v35, %v4890_v29  ;;  %v4915_v35 = vsub.f32 %v12555_v37, %v4898_v55  ;;  %v10492_v55 = vld [vmem:[#allocation8 + $0xe0] ss:$12 sps:$4 sm:$0xff]  }
 0xa0a   : > { %10697 = vpow2.f32 %v4931_v36 }
 0xa0b   : > { %v12599_v40 = vpop.eup %10693  ;;  %v4937_v57 = vmul.f32 1.442695, %v4911_v46  ;;  %v4945_v29 = vmul.f32 1.442695, %v4915_v35 }
 0xa0c   : > { %4961 = vadd.xlane.f32.xlu1 %v12599_v40  ;;  %v4886_v62 = vpop.xlane.xlu0 %4885 }
 0xa0d   : > { %v4909_v10 = vsub.f32 %v4839_v54, %v4886_v62 }
 0xa0f   : > { %v4933_v9 = vmul.f32 1.442695, %v4909_v10 }
 0xa10   : > { %v4892_v3 = vpop.xlane.xlu0 %4891 }
 0xa11   : > { %10699 = vpow2.f32 %v4933_v9  ;;  %v4912_v33 = vsub.f32 %v12564_v15, %v4892_v3 }
 0xa12   : > { %10701 = vpow2.f32 %v4937_v57 }
 0xa13   : > { %v12603_v52 = vpop.eup %10695  ;;  %v4939_v54 = vmul.f32 1.442695, %v4912_v33 }
 0xa14   : > { %v4888_v17 = vpop.xlane.xlu0 %4887  ;;  %4959 = vadd.xlane.f32.xlu0 %v12603_v52  ;;  %v12608_v43 = vpop.eup %10697 }
 0xa15   : > { %v4910_v0 = vsub.f32 %v12568_v63, %v4888_v17 }
 0xa17   : > { %v4935_v6 = vmul.f32 1.442695, %v4910_v0  ;;  %v10493_v0 = vld [vmem:[#allocation8 + $0xf8] ss:$12 sps:$4 sm:$0xff]  }
 0xa18   : > { %v4894_v49 = vpop.xlane.xlu0 %4893  ;;  %4963 = vadd.xlane.f32.xlu0 %v12608_v43 }
 0xa19   : > { %10703 = vpow2.f32 %v4935_v6  ;;  %v4913_v24 = vsub.f32 %v12572_v53, %v4894_v49  ;;  %v10494_v6 = vld [vmem:[#allocation8 + $0x110] ss:$12 sps:$4 sm:$0xff]  }
 0xa1a   : > { %10705 = vpow2.f32 %v4939_v54  ;;  %v10495_v54 = vld [vmem:[#allocation8 + $0xc0] ss:$12 sps:$4 sm:$0xff]  }
 0xa1b   : > { %v12613_v15 = vpop.eup %10699  ;;  %v4941_v18 = vmul.f32 1.442695, %v4913_v24  ;;  %v10500_v24 = vld [vmem:[#allocation8 + $0xdc] ss:$12 sps:$4 sm:$0xff]  }
 0xa1c   : > { %4965 = vadd.xlane.f32.xlu1 %v12613_v15  ;;  %v4896_v63 = vpop.xlane.xlu0 %4895  ;;  %v12617_v62 = vpop.eup %10701 }
 0xa1d   : > { %10707 = vpow2.f32 %v4941_v18  ;;  %v4914_v36 = vsub.f32 %v12576_v20, %v4896_v63 }
 0xa1e   : > { %10709 = vpow2.f32 %v4945_v29 }
 0xa1f   : > { %v4943_v37 = vmul.f32 1.442695, %v4914_v36 }
 0xa20   : > { %4969 = vadd.xlane.f32.xlu1 %v12617_v62  ;;  %v4900_v46 = vpop.xlane.xlu0 %4899 }
 0xa21   : > { %10711 = vpow2.f32 %v4943_v37  ;;  %v4916_v53 = vsub.f32 %v12580_v32, %v4900_v46  ;;  %v10491_v32 = vld [vmem:[#allocation8 + $0xc8] ss:$12 sps:$4 sm:$0xff]  }
 0xa22   : > { %9296 = vmatprep.subr.bf16.mxu1 %v10491_v32 }
 0xa23   : > { %v12621_v10 = vpop.eup %10703  ;;  %v4947_v9 = vmul.f32 1.442695, %v4916_v53  ;;  %9297 = vmatpush3.bf16.msra.mxu1 %v10491_v32 }
 0xa24   : > { %4967 = vadd.xlane.f32.xlu0 %v12621_v10  ;;  %v12624_v3 = vpop.eup %10705  ;;  %9298 = vmatprep.subr.bf16.mxu1 %v10492_v55 }
 0xa25   : > { %10713 = vpow2.f32 %v4947_v9 }
 0xa27   : > { %v12626_v57 = vpop.eup %10707  ;;  %9299 = vmatpush3.bf16.msra.mxu1 %v10492_v55 }
 0xa28   : > { %4971 = vadd.xlane.f32.xlu0 %v12624_v3  ;;  %4973 = vadd.xlane.f32.xlu1 %v12626_v57  ;;  %v12630_v20 = vpop.eup %10709 }
 0xa29   : > { %9300 = vmatprep.subr.bf16.mxu1 %v10493_v0 }
 0xa2b   : > { %v12632_v33 = vpop.eup %10711  ;;  %9301 = vmatpush3.bf16.msra.mxu1 %v10493_v0 }
 0xa2c   : > { %4977 = vadd.xlane.f32.xlu1 %v12630_v20  ;;  %4975 = vadd.xlane.f32.xlu0 %v12632_v33 }
 0xa2d   : > { %9302 = vmatprep.subr.bf16.mxu1 %v10494_v6 }
 0xa2f   : > { %v12636_v17 = vpop.eup %10713  ;;  %9303 = vmatpush3.bf16.msra.mxu1 %v10494_v6 }
 0xa30   : > { %4979 = vadd.xlane.f32.xlu0 %v12636_v17 }
 0xa3d   : > { %5520 = vrot.lane.b32.xlu1 %v13686_v23, %s11170_s26  ;;  %v10497_v23 = vld [vmem:[#allocation8 + $0xc4] ss:$12 sps:$4 sm:$0xff]  }
 0xa3e   : > { %5230 = vmatprep.subr.bf16.mxu0 %v10497_v23 }
 0xa41   : > { %5524 = vrot.lane.b32.xlu1 %v13689_v58, %s11170_s26 }
 0xa45   : > { %5526 = vrot.lane.b32.xlu1 %v13692_v41, %s11170_s26 }
 0xa46   : > { %5522 = vrot.lane.b32.xlu0 %v13687_v31, %s11170_s26 }
 0xa49   : > { %5530 = vrot.lane.b32.xlu1 %v13699_v51, %s11170_s26 }
 0xa4a   : > { %5528 = vrot.lane.b32.xlu0 %v13695_v30, %s11170_s26 }
 0xa4d   : > { %5534 = vrot.lane.b32.xlu1 %v13701_v26, %s11170_s26 }
 0xa4e   : > { %5532 = vrot.lane.b32.xlu0 %v13700_v27, %s11170_s26 }
 0xa51   : > { %5498 = vrot.lane.b32.xlu1 %v13702_v61, %s11170_s26 }
 0xa52   : > { %5496 = vrot.lane.b32.xlu0 %v13696_v56, %s11170_s26 }
 0xa55   : > { %5502 = vrot.lane.b32.xlu1 %v13704_v59, %s11170_s26 }
 0xa56   : > { %5500 = vrot.lane.b32.xlu0 %v13703_v13, %s11170_s26 }
 0xa59   : > { %5506 = vrot.lane.b32.xlu1 %v13706_v44, %s11170_s26 }
 0xa5a   : > { %5504 = vrot.lane.b32.xlu0 %v13705_v4, %s11170_s26 }
 0xa5d   : > { %5510 = vrot.lane.b32.xlu1 %v13708_v25, %s11170_s26 }
 0xa5e   : > { %5508 = vrot.lane.b32.xlu0 %v13707_v11, %s11170_s26 }
 0xa8d   : > { %v4950_v31 = vpop.xlane.xlu1 %4949 }
 0xa8e   : > { %10715 = vrcp.f32 %v4950_v31 }
 0xa91   : > { %v4952_v58 = vpop.xlane.xlu0 %4951  ;;  %v4954_v41 = vpop.xlane.xlu1 %4953 }
 0xa92   : > { %10717 = vrcp.f32 %v4952_v58 }
 0xa93   : > { %10719 = vrcp.f32 %v4954_v41 }
 0xa95   : > { %v4956_v30 = vpop.xlane.xlu0 %4955  ;;  %v4958_v51 = vpop.xlane.xlu1 %4957 }
 0xa96   : > { %10721 = vrcp.f32 %v4956_v30 }
 0xa97   : > { %10723 = vrcp.f32 %v4958_v51 }
 0xa98   : > { %v10716_v56 = vpop.eup %10715 }
 0xa99   : > { %v4997_v26 = vmul.f32 %v10716_v56, %v12583_v28  ;;  %v4962_v25 = vpop.xlane.xlu1 %4961  ;;  %v10498_v28 = vld [vmem:[#allocation8 + $0xd8] ss:$12 sps:$4 sm:$0xff]  }
 0xa9c   : > { %v10718_v27 = vpop.eup %10717 }
 0xa9d   : > { %v4998_v61 = vmul.f32 %v10718_v27, %v12588_v39  ;;  %v10720_v13 = vpop.eup %10719  ;;  %v10503_v39 = vld [vmem:[#allocation8 + $0xf4] ss:$12 sps:$4 sm:$0xff]  }
 0xa9e   : > { %v4999_v44 = vmul.f32 %v10720_v13, %v12586_v48  ;;  %v10501_v48 = vld [vmem:[#allocation8 + $0xf0] ss:$12 sps:$4 sm:$0xff]  }
 0xa9f   : > { %v5013_v59 = vpack.c.bf16 %v4998_v61, %v4997_v26 }
 0xaa0   : > { %v10722_v4 = vpop.eup %10721 }
 0xaa1   : > { %v5000_v11 = vmul.f32 %v10722_v4, %v12595_v21  ;;  %v4960_v35 = vpop.xlane.xlu0 %4959  ;;  %9280 = vmatprep.mubr.bf16.mxu0 %v5013_v59  ;;  %v10724_v29 = vpop.eup %10723 }
 0xaa2   : > { %10725 = vrcp.f32 %v4960_v35  ;;  %v5001_v36 = vmul.f32 %v10724_v29, %v12592_v12 }
 0xaa3   : > { %v5014_v49 = vpack.c.bf16 %v5000_v11, %v4999_v44  ;;  %10727 = vrcp.f32 %v4962_v25 }
 0xaa5   : > { %v4964_v18 = vpop.xlane.xlu0 %4963  ;;  %9281 = vmatmul.mubr.bf16.vlgmr.msra.gmra.mrb[128].mxu0 %v5014_v49 }
 0xaa6   : > { %10729 = vrcp.f32 %v4964_v18  ;;  %5231 = vmatpush1.bf16.msra.mxu0 %v10495_v54 }
 0xaa7   : > { %5232 = vmatprep.subr.bf16.mxu0 %v10500_v24 }
 0xaa9   : > { %v4966_v63 = vpop.xlane.xlu1 %4965 }
 0xaaa   : > { %5233 = vmatpush1.bf16.msra.mxu0 %v10498_v28  ;;  %10731 = vrcp.f32 %v4966_v63 }
 0xaab   : > { %5234 = vmatprep.subr.bf16.mxu0 %v10503_v39 }
 0xaac   : > { %v10726_v21 = vpop.eup %10725 }
 0xaad   : > { %v5002_v37 = vmul.f32 %v10726_v21, %v12603_v52  ;;  %v10728_v46 = vpop.eup %10727  ;;  %v4970_v32 = vpop.xlane.xlu1 %4969 }
 0xaae   : > { %5235 = vmatpush1.bf16.msra.mxu0 %v10501_v48  ;;  %v5003_v0 = vmul.f32 %v10728_v46, %v12599_v40 }
 0xaaf   : > { %v5015_v53 = vpack.c.bf16 %v5002_v37, %v5001_v36 }
 0xab0   : > { %v10730_v9 = vpop.eup %10729 }
 0xab1   : > { %v4968_v55 = vpop.xlane.xlu0 %4967  ;;  %9284 = vmatprep.mubr.bf16.mxu0 %v5015_v53  ;;  %v5004_v6 = vmul.f32 %v10730_v9, %v12608_v43 }
 0xab2   : > { %10733 = vrcp.f32 %v4968_v55 }
 0xab3   : > { %v5016_v23 = vpack.c.bf16 %v5004_v6, %v5003_v0  ;;  %10735 = vrcp.f32 %v4970_v32 }
 0xab4   : > { %v10732_v41 = vpop.eup %10731 }
 0xab5   : > { %v4974_v31 = vpop.xlane.xlu1 %4973  ;;  %v4972_v58 = vpop.xlane.xlu0 %4971  ;;  %9285 = vmatmul.mubr.bf16.gmra.mrb[132].mxu0 %v5016_v23  ;;  %v5005_v27 = vmul.f32 %v10732_v41, %v12613_v15 }
 0xab6   : > { %10737 = vrcp.f32 %v4972_v58 }
 0xab7   : > { %10739 = vrcp.f32 %v4974_v31 }
 0xab9   : > { %v4978_v12 = vpop.xlane.xlu1 %4977  ;;  %v4976_v52 = vpop.xlane.xlu0 %4975 }
 0xaba   : > { %10741 = vrcp.f32 %v4976_v52 }
 0xabb   : > { %10743 = vrcp.f32 %v4978_v12 }
 0xabc   : > { %v10734_v30 = vpop.eup %10733 }
 0xabd   : > { %v5521_v56 = vpop.permute.xlu1 %5520  ;;  %v4980_v51 = vpop.xlane.xlu0 %4979  ;;  %v5006_v40 = vmul.f32 %v10734_v30, %v12621_v10 }
 0xabe   : > { %10745 = vrcp.f32 %v4980_v51  ;;  %9976 = vmatprep.subr.msk.bf16.mxu1 %vm3211_vm0, %v5521_v56  ;;  %v10736_v43 = vpop.eup %10735 }
 0xabf   : > { %v5017_v26 = vpack.c.bf16 %v5006_v40, %v5005_v27  ;;  %v5007_v13 = vmul.f32 %v10736_v43, %v12617_v62  ;;  %v10506_v62 = vld [vmem:[#allocation8 + $0x10c] ss:$12 sps:$4 sm:$0xff]  }
 0xac0   : > { %v10738_v61 = vpop.eup %10737  ;;  %5236 = vmatprep.subr.bf16.mxu0 %v10506_v62 }
 0xac1   : > { %9288 = vmatprep.mubr.bf16.mxu0 %v5017_v26  ;;  %v5008_v59 = vmul.f32 %v10738_v61, %v12624_v3  ;;  %v10740_v4 = vpop.eup %10739  ;;  %v10504_v3 = vld [vmem:[#allocation8 + $0x108] ss:$12 sps:$4 sm:$0xff]   ;;  %v5525_v21 = vpop.permute.xlu1 %5524 }
 0xac2   : > { %v5009_v15 = vmul.f32 %v10740_v4, %v12626_v57  ;;  %5237 = vmatpush1.bf16.msra.mxu0 %v10504_v3  ;;  %v5567_v55 = vsel %vm3211_vm0, %v5525_v21, 0 }
 0xac3   : > { %v5018_v44 = vpack.c.bf16 %v5008_v59, %v5007_v13 }
 0xac4   : > { %v10742_v11 = vpop.eup %10741 }
 0xac5   : > { %v10744_v25 = vpop.eup %10743  ;;  %9289 = vmatmul.mubr.bf16.gmra.mrb[136].mxu0 %v5018_v44  ;;  %v5010_v10 = vmul.f32 %v10742_v11, %v12632_v33  ;;  %v5527_v0 = vpop.permute.xlu1 %5526 }
 0xac6   : > { %v5011_v49 = vmul.f32 %v10744_v25, %v12630_v20  ;;  %v5561_v20 = vsel %vm3211_vm0, %v5521_v56, 0  ;;  %v5570_v6 = vsel %vm3211_vm0, %v5527_v0, 0 }
 0xac7   : > { %v5019_v54 = vpack.c.bf16 %v5010_v10, %v5009_v15  ;;  %v10507_v15 = vld [vmem:[#allocation8 + $0x128] ss:$12 sps:$4 sm:$0xff]  }
 0xac8   : > { %v10746_v35 = vpop.eup %10745 }
 0xac9   : > { %v5012_v24 = vmul.f32 %v10746_v35, %v12636_v17  ;;  %9292 = vmatprep.mubr.bf16.mxu0 %v5019_v54  ;;  %v5523_v17 = vpop.permute.xlu0 %5522  ;;  %v5531_v51 = vpop.permute.xlu1 %5530  ;;  %v10508_v35 = vld [vmem:[#allocation8 + $0x140] ss:$12 sps:$4 sm:$0xff]  }
 0xaca   : > { %v5564_v48 = vsel %vm3211_vm0, %v5523_v17, 0  ;;  %v5576_v44 = vsel %vm3211_vm0, %v5531_v51, 0 }
 0xacb   : > { %v5020_v18 = vpack.c.bf16 %v5012_v24, %v5011_v49  ;;  %v10509_v24 = vld [vmem:[#allocation8 + $0x158] ss:$12 sps:$4 sm:$0xff]  }
 0xacd   : > { %9293 = vmatmul.mubr.bf16.gmra.mrb[140].mxu0 %v5020_v18  ;;  %v5529_v23 = vpop.permute.xlu0 %5528  ;;  %v5535_v25 = vpop.permute.xlu1 %5534  ;;  %v10510_v18 = vld [vmem:[#allocation8 + $0x170] ss:$12 sps:$4 sm:$0xff]  }
 0xace   : > { %5262 = vmatprep.mubr.bf16.mxu0 %v13677_v2  ;;  %v5573_v56 = vsel %vm3211_vm0, %v5529_v23, 0  ;;  %v5582_v10 = vsel %vm3211_vm0, %v5535_v25, 0 }
 0xad1   : > { %v5533_v40 = vpop.permute.xlu0 %5532  ;;  %v5499_v54 = vpop.permute.xlu1 %5498 }
 0xad2   : > { %v5579_v11 = vsel %vm3211_vm0, %v5533_v40, 0 }
 0xad5   : > { %v5497_v4 = vpop.permute.xlu0 %5496  ;;  %v5503_v62 = vpop.permute.xlu1 %5502 }
 0xad9   : > { %v5501_v49 = vpop.permute.xlu0 %5500 }
 0xadd   : > { %v5505_v3 = vpop.permute.xlu0 %5504 }
 0xb78   : > { %v9282_v28 = vpop.f32.mrb[128].mxu0 }
 0xb79   : > { %v5055_v39 = vpop.f32.mrb[129].mxu0 }
 0xb7a   : > { %v9283_v57 = vpop.f32.mrb[130].mxu0 }
 0xb7b   : > { %v5119_v29 = vpack.c.bf16 %v9283_v57, %v9282_v28  ;;  %v5058_v33 = vpop.f32.mrb[131].mxu0  ;;  %v13709_v28 = vld [vmem:[#allocation38_spill] sm:$0xff]  ;;  %v5509_v57 = vpop.permute.xlu0 %5508 }
 0xb7c   : > { %v5118_v63 = vpack.c.bf16 %v5058_v33, %v5055_v39  ;;  %v5507_v39 = vpop.permute.xlu1 %5506 }
 0xb7e   : > { %8553 = vmatmul.mubr.msk.bf16.vlgmr.msra.gmra.mrb[96].mxu0 %vm3211_vm0, %v5118_v63  ;;  %9304 = vmatprep.mubr.msk.bf16.mxu1 %vm3211_vm0, %v5118_v63 }
 0xb7f   : > { %9305 = vmatmul.mubr.msk.bf16.vlgmr.msra.gmra.mrb[144].mxu1 %vm3211_vm0, %v5119_v29  ;;  %5272 = vmatprep.mubr.bf16.mxu0 %v13677_v2 }
 0xb80   : > { %9321 = vmatpush3.bf16.xpose.msra.mxu1 %v5561_v20 }
 0xb81   : > { %9977 = vmatprep.subr.msk.bf16.mxu1 %vm3211_vm0, %v5523_v17 }
 0xb86   : > { %8554 = vmatmul.mubr.msk.bf16.gmra.mrb[100].mxu0 %vm3211_vm0, %v5119_v29  ;;  %v5511_v29 = vpop.permute.xlu1 %5510 }
 0xb87   : > { %5282 = vmatprep.mubr.bf16.mxu0 %v13677_v2 }
 0xb88   : > { %9323 = vmatpush3.bf16.xpose.msra.mxu1 %v5564_v48  ;;  %v9286_v36 = vpop.f32.mrb[132].mxu0 }
 0xb89   : > { %9978 = vmatprep.subr.msk.bf16.mxu1 %vm3211_vm0, %v5525_v21  ;;  %v5071_v37 = vpop.f32.mrb[133].mxu0 }
 0xb8a   : > { %v9287_v46 = vpop.f32.mrb[134].mxu0 }
 0xb8b   : > { %v5121_v53 = vpack.c.bf16 %v9287_v46, %v9286_v36  ;;  %v5074_v9 = vpop.f32.mrb[135].mxu0 }
 0xb8c   : > { %v5120_v32 = vpack.c.bf16 %v5074_v9, %v5071_v37 }
 0xb8e   : > { %8555 = vmatmul.mubr.msk.bf16.gmra.mrb[104].mxu0 %vm3211_vm0, %v5120_v32  ;;  %9308 = vmatprep.mubr.msk.bf16.mxu1 %vm3211_vm0, %v5120_v32 }
 0xb8f   : > { %9309 = vmatmul.mubr.msk.bf16.gmra.mrb[148].mxu1 %vm3211_vm0, %v5121_v53  ;;  %5292 = vmatprep.mubr.bf16.mxu0 %v13677_v2 }
 0xb90   : > { %9325 = vmatpush3.bf16.xpose.msra.mxu1 %v5567_v55 }
 0xb91   : > { %9979 = vmatprep.subr.msk.bf16.mxu1 %vm3211_vm0, %v5527_v0 }
 0xb96   : > { %8556 = vmatmul.mubr.msk.bf16.gmra.mrb[108].mxu0 %vm3211_vm0, %v5121_v53 }
 0xb97   : > { %5302 = vmatprep.mubr.bf16.mxu0 %v13677_v2 }
 0xb98   : > { %9327 = vmatpush3.bf16.xpose.msra.mxu1 %v5570_v6  ;;  %v9290_v31 = vpop.f32.mrb[136].mxu0 }
 0xb99   : > { %9980 = vmatprep.subr.msk.bf16.mxu1 %vm3211_vm0, %v5529_v23  ;;  %v5087_v58 = vpop.f32.mrb[137].mxu0 }
 0xb9a   : > { %v9291_v12 = vpop.f32.mrb[138].mxu0 }
 0xb9b   : > { %v5123_v52 = vpack.c.bf16 %v9291_v12, %v9290_v31  ;;  %v5090_v41 = vpop.f32.mrb[139].mxu0 }
 0xb9c   : > { %v5122_v30 = vpack.c.bf16 %v5090_v41, %v5087_v58 }
 0xb9e   : > { %8557 = vmatmul.mubr.msk.bf16.gmra.mrb[112].mxu0 %vm3211_vm0, %v5122_v30  ;;  %9312 = vmatprep.mubr.msk.bf16.mxu1 %vm3211_vm0, %v5122_v30 }
 0xb9f   : > { %9313 = vmatmul.mubr.msk.bf16.gmra.mrb[152].mxu1 %vm3211_vm0, %v5123_v52  ;;  %5312 = vmatprep.mubr.bf16.mxu0 %v13677_v2 }
 0xba0   : > { %9329 = vmatpush3.bf16.xpose.msra.mxu1 %v5573_v56  ;;  %v9294_v27 = vpop.f32.mrb[140].mxu0 }
 0xba1   : > { %9981 = vmatprep.subr.msk.bf16.mxu1 %vm3211_vm0, %v5531_v51  ;;  %v5103_v43 = vpop.f32.mrb[141].mxu0 }
 0xba2   : > { %v9295_v26 = vpop.f32.mrb[142].mxu0 }
 0xba3   : > { %v5125_v61 = vpack.c.bf16 %v9295_v26, %v9294_v27  ;;  %v5106_v13 = vpop.f32.mrb[143].mxu0 }
 0xba4   : > { %v5124_v59 = vpack.c.bf16 %v5106_v13, %v5103_v43  ;;  %v13710_v13 = vld [vmem:[#allocation72_spill] sm:$0xff] }
 0xba6   : > { %8558 = vmatmul.mubr.msk.bf16.gmra.mrb[116].mxu0 %vm3211_vm0, %v5123_v52  ;;  %9316 = vmatprep.mubr.msk.bf16.mxu1 %vm3211_vm0, %v5124_v59 }
 0xba7   : > { %9317 = vmatmul.mubr.msk.bf16.gmra.mrb[156].mxu1 %vm3211_vm0, %v5125_v61  ;;  %5322 = vmatprep.mubr.bf16.mxu0 %v13677_v2 }
 0xba8   : > { %9331 = vmatpush3.bf16.xpose.msra.mxu1 %v5576_v44  ;;  %9336 = vmatprep.mubr.msk.bf16.mxu1 %vm3211_vm0, %v5497_v4  ;;  %v13711_v4 = vld [vmem:[#allocation73_spill] sm:$0xff] }
 0xba9   : > { %9982 = vmatprep.subr.msk.bf16.mxu1 %vm3211_vm0, %v5533_v40 }
 0xbae   : > { %8559 = vmatmul.mubr.msk.bf16.gmra.mrb[120].mxu0 %vm3211_vm0, %v5124_v59 }
 0xbaf   : > { %5332 = vmatprep.mubr.bf16.mxu0 %v13677_v2 }
 0xbb0   : > { %9333 = vmatpush3.bf16.xpose.msra.mxu1 %v5579_v11  ;;  %v13712_v11 = vld [vmem:[#allocation55_spill] sm:$0xff] }
 0xbb1   : > { %9983 = vmatprep.subr.msk.bf16.mxu1 %vm3211_vm0, %v5535_v25  ;;  %v13713_v25 = vld [vmem:[#allocation59_spill] sm:$0xff] }
 0xbb6   : > { %8560 = vmatmul.mubr.msk.bf16.gmra.mrb[124].mxu0 %vm3211_vm0, %v5125_v61 }
 0xbb8   : > { %9335 = vmatpush3.bf16.xpose.msra.mxu1 %v5582_v10  ;;  %v13715_v10 = vld [vmem:[#allocation63_spill] sm:$0xff] }
 0xbb9   : > { %9384 = vmatprep.subr.bf16.mxu1 %v10507_v15 }
 0xbbf   : > { %9337 = vmatmul.mubr.msk.bf16.vlgmr.msra.gmra.mrb[176].mxu1 %vm3211_vm0, %v5499_v54  ;;  %v13717_v54 = vld [vmem:[#allocation67_spill] sm:$0xff] }
 0xbc0   : > { %9340 = vmatprep.mubr.msk.bf16.mxu1 %vm3211_vm0, %v5501_v49  ;;  %9385 = vmatpush3.bf16.msra.mxu1 %v10507_v15  ;;  %v13714_v15 = vld [vmem:[#allocation61_spill] sm:$0xff] }
 0xbc1   : > { %9386 = vmatprep.subr.bf16.mxu1 %v10508_v35 }
 0xbc4   : > { %9387 = vmatpush3.bf16.msra.mxu1 %v10508_v35  ;;  %v13716_v35 = vld [vmem:[#allocation65_spill] sm:$0xff] }
 0xbc5   : > { %9388 = vmatprep.subr.bf16.mxu1 %v10509_v24 }
 0xbc7   : > { %9341 = vmatmul.mubr.msk.bf16.gmra.mrb[180].mxu1 %vm3211_vm0, %v5503_v62 }
 0xbc8   : > { %9344 = vmatprep.mubr.msk.bf16.mxu1 %vm3211_vm0, %v5505_v3  ;;  %9389 = vmatpush3.bf16.msra.mxu1 %v10509_v24 }
 0xbc9   : > { %9390 = vmatprep.subr.bf16.mxu1 %v10510_v18 }
 0xbcc   : > { %9391 = vmatpush3.bf16.msra.mxu1 %v10510_v18 }
 0xbcd   : > { %9984 = vmatprep.subr.msk.bf16.mxu1 %vm3211_vm0, %v13709_v28 }
 0xbcf   : > { %9345 = vmatmul.mubr.msk.bf16.gmra.mrb[184].mxu1 %vm3211_vm0, %v5507_v39 }
 0xbd0   : > { %9348 = vmatprep.mubr.msk.bf16.mxu1 %vm3211_vm0, %v5509_v57 }
 0xbd7   : > { %9349 = vmatmul.mubr.msk.bf16.gmra.mrb[188].mxu1 %vm3211_vm0, %v5511_v29 }
 0xc92   : > { %v9338_v33 = vpop.f32.mrb[176].mxu1 }
 0xc93   : > { %v5627_v63 = vadd.f32 %v9338_v33, %v11994_v16  ;;  %v5618_v20 = vpop.f32.mrb[177].mxu1 }
 0xc94   : > { %v9339_v17 = vpop.f32.mrb[178].mxu1  ;;  %v5619_v36 = vadd.f32 %v5618_v20, %v11997_v8 }
 0xc95   : > { %5685 = vmax.xlane.f32.xlu0 %v5627_v63  ;;  %v5621_v48 = vpop.f32.mrb[179].mxu1  ;;  %v5630_v46 = vadd.f32 %v9339_v17, %v12010_v7 }
 0xc96   : > { %v12739_v21 = vadd.f32 %v5621_v48, %v12014_v5 }
 0xc98   : > { %5683 = vmax.xlane.f32.xlu1 %v12739_v21 }
 0xc99   : > { %5681 = vmax.xlane.f32.xlu0 %v5619_v36 }
 0xc9a   : > { %v9342_v37 = vpop.f32.mrb[180].mxu1 }
 0xc9b   : > { %v5634_v53 = vpop.f32.mrb[181].mxu1 }
 0xc9c   : > { %v9343_v9 = vpop.f32.mrb[182].mxu1  ;;  %v5635_v43 = vadd.f32 %v5634_v53, %v12043_v42 }
 0xc9d   : > { %v5637_v32 = vpop.f32.mrb[183].mxu1  ;;  %5687 = vmax.xlane.f32.xlu0 %v5630_v46  ;;  %v12745_v55 = vadd.f32 %v9343_v9, %v12035_v34 }
 0xc9e   : > { %v5638_v6 = vadd.f32 %v5637_v32, %v12050_v19 }
 0xca1   : > { %5695 = vmax.xlane.f32.xlu0 %v12745_v55 }
 0xca2   : > { %v9346_v0 = vpop.f32.mrb[184].mxu1 }
 0xca3   : > { %v5650_v23 = vpop.f32.mrb[185].mxu1  ;;  %v12773_v26 = vadd.f32 %v9346_v0, %v12061_v50 }
 0xca4   : > { %v9347_v31 = vpop.f32.mrb[186].mxu1  ;;  %v5651_v61 = vadd.f32 %v5650_v23, %v12078_v47 }
 0xca5   : > { %v5653_v58 = vpop.f32.mrb[187].mxu1  ;;  %5691 = vmax.xlane.f32.xlu0 %v5638_v6  ;;  %v12750_v12 = vadd.f32 %v9347_v31, %v12070_v60 }
 0xca6   : > { %v12756_v41 = vadd.f32 %v5653_v58, %v12085_v14 }
 0xca9   : > { %5841 = vrot.lane.b32.xlu1 %v13685_v38, %s11170_s26  ;;  %5703 = vmax.xlane.f32.xlu0 %v12750_v12  ;;  %v12768_v38 = vadd.f32 %v9342_v37, %v12028_v1 }
 0xcaa   : > { %v9350_v52 = vpop.f32.mrb[188].mxu1 }
 0xcab   : > { %v5666_v30 = vpop.f32.mrb[189].mxu1  ;;  %v12778_v59 = vadd.f32 %v9350_v52, %v13710_v13 }
 0xcac   : > { %v9351_v56 = vpop.f32.mrb[190].mxu1  ;;  %v12782_v44 = vadd.f32 %v5666_v30, %v13711_v4 }
 0xcad   : > { %v5669_v51 = vpop.f32.mrb[191].mxu1  ;;  %5699 = vmax.xlane.f32.xlu0 %v12756_v41  ;;  %v12760_v27 = vadd.f32 %v9351_v56, %v13680_v22 }
 0xcae   : > { %v12764_v40 = vadd.f32 %v5669_v51, %v13681_v45 }
 0xcb1   : > { %5711 = vmax.xlane.f32.xlu0 %v12760_v27 }
 0xcb5   : > { %5707 = vmax.xlane.f32.xlu0 %v12764_v40 }
 0xccd   : > { %5693 = vmax.xlane.f32.xlu1 %v12768_v38 }
 0xcd1   : > { %5689 = vmax.xlane.f32.xlu1 %v5635_v43 }
 0xcd5   : > { %5701 = vmax.xlane.f32.xlu1 %v12773_v26 }
 0xcd9   : > { %5697 = vmax.xlane.f32.xlu1 %v5651_v61 }
 0xcdd   : > { %5709 = vmax.xlane.f32.xlu1 %v12778_v59 }
 0xce1   : > { %5705 = vmax.xlane.f32.xlu1 %v12782_v44 }
 0xcf2   : > { %5843 = vrot.lane.b32.xlu1 %v13712_v11, %s11170_s26 }
 0xcf6   : > { %5847 = vrot.lane.b32.xlu1 %v13713_v25, %s11170_s26 }
 0xcfa   : > { %5849 = vrot.lane.b32.xlu1 %v13714_v15, %s11170_s26 }
 0xcfe   : > { %5851 = vrot.lane.b32.xlu1 %v13715_v10, %s11170_s26 }
 0xd02   : > { %5853 = vrot.lane.b32.xlu1 %v13716_v35, %s11170_s26 }
 0xd06   : > { %5855 = vrot.lane.b32.xlu1 %v13717_v54, %s11170_s26 }
 0xd22   : > { %v5686_v49 = vpop.xlane.xlu0 %5685 }
 0xd23   : > { %v5715_v24 = vsub.f32 %v5627_v63, %v5686_v49 }
 0xd25   : > { %v5733_v18 = vmul.f32 1.442695, %v5715_v24  ;;  %v5684_v62 = vpop.xlane.xlu1 %5683 }
 0xd26   : > { %v5682_v3 = vpop.xlane.xlu0 %5681  ;;  %v5714_v20 = vsub.f32 %v12739_v21, %v5684_v62 }
 0xd27   : > { %10747 = vpow2.f32 %v5733_v18  ;;  %v5713_v39 = vsub.f32 %v5619_v36, %v5682_v3 }
 0xd28   : > { %v5731_v53 = vmul.f32 1.442695, %v5714_v20 }
 0xd29   : > { %v5729_v57 = vmul.f32 1.442695, %v5713_v39  ;;  %v5842_v29 = vpop.permute.xlu1 %5841 }
 0xd2a   : > { %9352 = vmatprep.subr.bf16.mxu0 %v5842_v29  ;;  %v5688_v33 = vpop.xlane.xlu0 %5687 }
 0xd2b   : > { %10749 = vpow2.f32 %v5729_v57  ;;  %v5716_v17 = vsub.f32 %v5630_v46, %v5688_v33  ;;  %9353 = vmatpush3.bf16.msra.mxu0 %v5842_v29 }
 0xd2d   : > { %v5735_v48 = vmul.f32 1.442695, %v5716_v17 }
 0xd2e   : > { %v5696_v37 = vpop.xlane.xlu0 %5695 }
 0xd2f   : > { %10751 = vpow2.f32 %v5735_v48  ;;  %v5720_v54 = vsub.f32 %v12745_v55, %v5696_v37 }
 0xd30   : > { %10753 = vpow2.f32 %v5731_v53 }
 0xd31   : > { %v12798_v9 = vpop.eup %10747  ;;  %v5743_v39 = vmul.f32 1.442695, %v5720_v54 }
 0xd32   : > { %5765 = vadd.xlane.f32.xlu0 %v12798_v9  ;;  %v5692_v63 = vpop.xlane.xlu0 %5691 }
 0xd33   : > { %v5718_v36 = vsub.f32 %v5638_v6, %v5692_v63  ;;  %v13718_v6 = vld [vmem:[#allocation57_spill] sm:$0xff] }
 0xd35   : > { %v12801_v32 = vpop.eup %10749  ;;  %v5739_v0 = vmul.f32 1.442695, %v5718_v36 }
 0xd36   : > { %5761 = vadd.xlane.f32.xlu0 %v12801_v32  ;;  %v5704_v52 = vpop.xlane.xlu0 %5703 }
 0xd37   : > { %10755 = vpow2.f32 %v5739_v0  ;;  %v5724_v55 = vsub.f32 %v12750_v12, %v5704_v52 }
 0xd39   : > { %v12804_v21 = vpop.eup %10751 }
 0xd3a   : > { %5767 = vadd.xlane.f32.xlu0 %v12804_v21  ;;  %v12807_v46 = vpop.eup %10753  ;;  %v5700_v25 = vpop.xlane.xlu0 %5699 }
 0xd3e   : > { %5763 = vadd.xlane.f32.xlu0 %v12807_v46  ;;  %v5712_v62 = vpop.xlane.xlu0 %5711 }
 0xd3f   : > { %v5728_v12 = vsub.f32 %v12760_v27, %v5712_v62 }
 0xd41   : > { %v12810_v23 = vpop.eup %10755 }
 0xd42   : > { %5771 = vadd.xlane.f32.xlu1 %v12810_v23  ;;  %v5708_v29 = vpop.xlane.xlu0 %5707 }
 0xd54   : > { %5845 = vrot.lane.b32.xlu0 %v13718_v6, %s11170_s26 }
 0xd5a   : > { %v5694_v31 = vpop.xlane.xlu1 %5693 }
 0xd5b   : > { %v5719_v51 = vsub.f32 %v12768_v38, %v5694_v31 }
 0xd5d   : > { %v5741_v49 = vmul.f32 1.442695, %v5719_v51 }
 0xd5e   : > { %v5690_v58 = vpop.xlane.xlu1 %5689 }
 0xd5f   : > { %v5717_v30 = vsub.f32 %v5635_v43, %v5690_v58  ;;  %v5722_v43 = vsub.f32 %v12756_v41, %v5700_v25  ;;  %v5751_v41 = vmul.f32 1.442695, %v5724_v55 }
 0xd61   : > { %v5737_v11 = vmul.f32 1.442695, %v5717_v30 }
 0xd62   : > { %v5702_v56 = vpop.xlane.xlu1 %5701 }
 0xd63   : > { %v5723_v10 = vsub.f32 %v12773_v26, %v5702_v56  ;;  %10757 = vpow2.f32 %v5737_v11 }
 0xd65   : > { %v5749_v3 = vmul.f32 1.442695, %v5723_v10 }
 0xd66   : > { %v5698_v15 = vpop.xlane.xlu1 %5697 }
 0xd67   : > { %v5721_v35 = vsub.f32 %v5651_v61, %v5698_v15  ;;  %v5747_v61 = vmul.f32 1.442695, %v5722_v43 }
 0xd69   : > { %v5745_v24 = vmul.f32 1.442695, %v5721_v35 }
 0xd6a   : > { %v5710_v18 = vpop.xlane.xlu1 %5709 }
 0xd6b   : > { %10759 = vpow2.f32 %v5745_v24  ;;  %v5727_v57 = vsub.f32 %v12778_v59, %v5710_v18  ;;  %v5726_v59 = vsub.f32 %v12764_v40, %v5708_v29  ;;  %v5759_v40 = vmul.f32 1.442695, %v5728_v12  ;;  %v10514_v29 = vld [vmem:[#allocation8 + $0x138] ss:$12 sps:$4 sm:$0xff]  }
 0xd6c   : > { %10761 = vpow2.f32 %v5741_v49 }
 0xd6d   : > { %10763 = vpow2.f32 %v5749_v3  ;;  %v12822_v20 = vpop.eup %10757  ;;  %v5757_v48 = vmul.f32 1.442695, %v5727_v57  ;;  %v5755_v53 = vmul.f32 1.442695, %v5726_v59 }
 0xd6e   : > { %v5706_v38 = vpop.xlane.xlu1 %5705  ;;  %10765 = vpow2.f32 %v5743_v39 }
 0xd6f   : > { %v5725_v26 = vsub.f32 %v12782_v44, %v5706_v38 }
 0xd71   : > { %v5753_v33 = vmul.f32 1.442695, %v5725_v26  ;;  %v10513_v26 = vld [vmem:[#allocation8 + $0x124] ss:$12 sps:$4 sm:$0xff]  }
 0xd72   : > { %v5844_v17 = vpop.permute.xlu1 %5843 }
 0xd73   : > { %10767 = vpow2.f32 %v5753_v33  ;;  %9354 = vmatprep.subr.bf16.mxu0 %v5844_v17  ;;  %5769 = vadd.xlane.f32.xlu0 %v12822_v20  ;;  %v10519_v33 = vld [vmem:[#allocation8 + $0x154] ss:$12 sps:$4 sm:$0xff]  }
 0xd74   : > { %10769 = vpow2.f32 %v5747_v61  ;;  %9355 = vmatpush3.bf16.msra.mxu0 %v5844_v17  ;;  %v10516_v61 = vld [vmem:[#allocation8 + $0x13c] ss:$12 sps:$4 sm:$0xff]  }
 0xd75   : > { %v12826_v44 = vpop.eup %10759  ;;  %10771 = vpow2.f32 %v5757_v48  ;;  %v10517_v17 = vld [vmem:[#allocation8 + $0x150] ss:$12 sps:$4 sm:$0xff]   ;;  %v10522_v48 = vld [vmem:[#allocation8 + $0x16c] ss:$12 sps:$4 sm:$0xff]  }
 0xd76   : > { %v12828_v37 = vpop.eup %10761  ;;  %5777 = vadd.xlane.f32.xlu1 %v12826_v44  ;;  %10773 = vpow2.f32 %v5751_v41  ;;  %v5848_v11 = vpop.permute.xlu1 %5847  ;;  %v13719_v41 = vld [vmem:[#allocation54_spill] sm:$0xff] }
 0xd77   : > { %5773 = vadd.xlane.f32.xlu0 %v12828_v37  ;;  %v12833_v63 = vpop.eup %10763  ;;  %10775 = vpow2.f32 %v5755_v53 }
 0xd78   : > { %v12835_v36 = vpop.eup %10765  ;;  %10777 = vpow2.f32 %v5759_v40 }
 0xd7a   : > { %5781 = vadd.xlane.f32.xlu1 %v12833_v63  ;;  %v5850_v15 = vpop.permute.xlu1 %5849 }
 0xd7b   : > { %5775 = vadd.xlane.f32.xlu0 %v12835_v36 }
 0xd7d   : > { %v12839_v0 = vpop.eup %10767 }
 0xd7e   : > { %v12841_v6 = vpop.eup %10769  ;;  %5785 = vadd.xlane.f32.xlu1 %v12839_v0  ;;  %v5852_v54 = vpop.permute.xlu1 %5851 }
 0xd7f   : > { %5779 = vadd.xlane.f32.xlu0 %v12841_v6  ;;  %v12845_v27 = vpop.eup %10771 }
 0xd80   : > { %v12847_v31 = vpop.eup %10773 }
 0xd81   : > { %v12851_v58 = vpop.eup %10775 }
 0xd82   : > { %5789 = vadd.xlane.f32.xlu1 %v12845_v27  ;;  %v12854_v52 = vpop.eup %10777  ;;  %v5854_v3 = vpop.permute.xlu1 %5853 }
 0xd83   : > { %5783 = vadd.xlane.f32.xlu0 %v12847_v31 }
 0xd86   : > { %v5856_v38 = vpop.permute.xlu1 %5855 }
 0xd87   : > { %5787 = vadd.xlane.f32.xlu0 %v12851_v58 }
 0xd8b   : > { %5791 = vadd.xlane.f32.xlu0 %v12854_v52 }
 0xdbf   : > { %v5766_v30 = vpop.xlane.xlu0 %5765 }
 0xdc3   : > { %v5762_v56 = vpop.xlane.xlu0 %5761 }
 0xdc4   : > { %10779 = vrcp.f32 %v5762_v56 }
 0xdc7   : > { %v5768_v51 = vpop.xlane.xlu0 %5767 }
 0xdcb   : > { %v5764_v25 = vpop.xlane.xlu0 %5763 }
 0xdcc   : > { %10781 = vrcp.f32 %v5764_v25 }
 0xdcd   : > { %10783 = vrcp.f32 %v5768_v51 }
 0xdce   : > { %v10780_v35 = vpop.eup %10779  ;;  %10785 = vrcp.f32 %v5766_v30 }
 0xdcf   : > { %v5846_v10 = vpop.permute.xlu0 %5845  ;;  %v5809_v24 = vmul.f32 %v10780_v35, %v12801_v32  ;;  %v10511_v32 = vld [vmem:[#allocation8 + $0x120] ss:$12 sps:$4 sm:$0xff]  }
 0xdd0   : > { %9356 = vmatprep.subr.bf16.mxu0 %v5846_v10 }
 0xdd1   : > { %9357 = vmatpush3.bf16.msra.mxu0 %v5846_v10 }
 0xdd2   : > { %9358 = vmatprep.subr.bf16.mxu0 %v5848_v11 }
 0xdd5   : > { %9359 = vmatpush3.bf16.msra.mxu0 %v5848_v11 }
 0xdd6   : > { %v10782_v49 = vpop.eup %10781  ;;  %9360 = vmatprep.subr.bf16.mxu0 %v5850_v15 }
 0xdd7   : > { %v5810_v18 = vmul.f32 %v10782_v49, %v12807_v46  ;;  %v10784_v39 = vpop.eup %10783 }
 0xdd8   : > { %v10786_v43 = vpop.eup %10785  ;;  %v5812_v57 = vmul.f32 %v10784_v39, %v12804_v21  ;;  %v10520_v21 = vld [vmem:[#allocation8 + $0x168] ss:$12 sps:$4 sm:$0xff]  }
 0xdd9   : > { %9361 = vmatpush3.bf16.msra.mxu0 %v5850_v15  ;;  %v5825_v62 = vpack.c.bf16 %v5810_v18, %v5809_v24  ;;  %v5811_v55 = vmul.f32 %v10786_v43, %v12798_v9  ;;  %v5772_v9 = vpop.xlane.xlu1 %5771 }
 0xdda   : > { %9362 = vmatprep.subr.bf16.mxu0 %v5852_v54  ;;  %10787 = vrcp.f32 %v5772_v9 }
 0xddb   : > { %9368 = vmatprep.mubr.bf16.mxu0 %v5825_v62  ;;  %v5826_v46 = vpack.c.bf16 %v5812_v57, %v5811_v55 }
 0xddd   : > { %9363 = vmatpush3.bf16.msra.mxu0 %v5852_v54 }
 0xdde   : > { %9364 = vmatprep.subr.bf16.mxu0 %v5854_v3 }
 0xde1   : > { %9365 = vmatpush3.bf16.msra.mxu0 %v5854_v3 }
 0xde2   : > { %9366 = vmatprep.subr.bf16.mxu0 %v5856_v38 }
 0xde4   : > { %v10788_v56 = vpop.eup %10787 }
 0xde5   : > { %9367 = vmatpush3.bf16.msra.mxu0 %v5856_v38  ;;  %v5814_v15 = vmul.f32 %v10788_v56, %v12810_v23  ;;  %v13722_v56 = vld [vmem:[#allocation58_spill] sm:$0xff] }
 0xde6   : > { %6074 = vmatprep.subr.bf16.mxu0 %v10513_v26 }
 0xde8   : > { %9369 = vmatmul.mubr.bf16.vlgmr.msra.gmra.mrb[144].mxu0 %v5826_v46 }
 0xde9   : > { %6075 = vmatpush1.bf16.msra.mxu0 %v10511_v32 }
 0xdea   : > { %6076 = vmatprep.subr.bf16.mxu0 %v10516_v61 }
 0xded   : > { %6077 = vmatpush1.bf16.msra.mxu0 %v10514_v29 }
 0xdee   : > { %6078 = vmatprep.subr.bf16.mxu0 %v10519_v33 }
 0xdf1   : > { %6079 = vmatpush1.bf16.msra.mxu0 %v10517_v17 }
 0xdf2   : > { %6080 = vmatprep.subr.bf16.mxu0 %v10522_v48 }
 0xdf5   : > { %6081 = vmatpush1.bf16.msra.mxu0 %v10520_v21 }
 0xdf6   : > { %9440 = vmatprep.subr.bf16.mxu0 %v13719_v41 }
 0xe00   : > { %v5770_v59 = vpop.xlane.xlu0 %5769 }
 0xe01   : > { %10789 = vrcp.f32 %v5770_v59 }
 0xe03   : > { %v5778_v12 = vpop.xlane.xlu1 %5777 }
 0xe04   : > { %v5774_v53 = vpop.xlane.xlu0 %5773 }
 0xe05   : > { %10791 = vrcp.f32 %v5774_v53 }
 0xe07   : > { %v5782_v40 = vpop.xlane.xlu1 %5781 }
 0xe08   : > { %v5776_v30 = vpop.xlane.xlu0 %5775 }
 0xe09   : > { %10793 = vrcp.f32 %v5776_v30 }
 0xe0a   : > { %10795 = vrcp.f32 %v5778_v12 }
 0xe0b   : > { %v10790_v51 = vpop.eup %10789  ;;  %v5786_v10 = vpop.xlane.xlu1 %5785 }
 0xe0c   : > { %v5780_v11 = vpop.xlane.xlu0 %5779  ;;  %v5813_v25 = vmul.f32 %v10790_v51, %v12822_v20 }
 0xe0d   : > { %10797 = vrcp.f32 %v5780_v11  ;;  %v13723_v11 = vld [vmem:[#allocation60_spill] sm:$0xff] }
 0xe0e   : > { %v5827_v35 = vpack.c.bf16 %v5814_v15, %v5813_v25  ;;  %10799 = vrcp.f32 %v5782_v40  ;;  %v13724_v25 = vld [vmem:[#allocation42_spill] sm:$0xff] }
 0xe0f   : > { %v10792_v49 = vpop.eup %10791  ;;  %v5790_v18 = vpop.xlane.xlu1 %5789  ;;  %v13725_v15 = vld [vmem:[#allocation62_spill] sm:$0xff] }
 0xe10   : > { %v5784_v54 = vpop.xlane.xlu0 %5783  ;;  %9372 = vmatprep.mubr.bf16.mxu0 %v5827_v35  ;;  %v5815_v3 = vmul.f32 %v10792_v49, %v12828_v37  ;;  %v13726_v35 = vld [vmem:[#allocation64_spill] sm:$0xff]  ;;  %v13728_v49 = vld [vmem:[#allocation66_spill] sm:$0xff] }
 0xe11   : > { %10801 = vrcp.f32 %v5784_v54  ;;  %v13727_v54 = vld [vmem:[#allocation43_spill] sm:$0xff] }
 0xe12   : > { %10803 = vrcp.f32 %v5786_v10  ;;  %v6363_v10 = vsel %vm3211_vm0, %v13724_v25, 0 }
 0xe13   : > { %v10794_v24 = vpop.eup %10793 }
 0xe14   : > { %v5788_v62 = vpop.xlane.xlu0 %5787  ;;  %v5816_v39 = vmul.f32 %v10794_v24, %v12835_v36  ;;  %v10796_v43 = vpop.eup %10795  ;;  %v6366_v24 = vsel %vm3211_vm0, %v13727_v54, 0 }
 0xe15   : > { %10805 = vrcp.f32 %v5788_v62  ;;  %v5817_v57 = vmul.f32 %v10796_v43, %v12826_v44  ;;  %v13730_v62 = vld [vmem:[#allocation45_spill] sm:$0xff] }
 0xe16   : > { %v5828_v20 = vpack.c.bf16 %v5816_v39, %v5815_v3  ;;  %10807 = vrcp.f32 %v5790_v18  ;;  %v13729_v18 = vld [vmem:[#allocation68_spill] sm:$0xff]  ;;  %v6369_v3 = vsel %vm3211_vm0, %v13730_v62, 0  ;;  %v13731_v39 = vld [vmem:[#allocation47_spill] sm:$0xff] }
 0xe17   : > { %v10798_v23 = vpop.eup %10797  ;;  %v6372_v43 = vsel %vm3211_vm0, %v13731_v39, 0 }
 0xe18   : > { %v5792_v38 = vpop.xlane.xlu0 %5791  ;;  %9373 = vmatmul.mubr.bf16.gmra.mrb[148].mxu0 %v5828_v20  ;;  %v5818_v26 = vmul.f32 %v10798_v23, %v12841_v6  ;;  %v10800_v55 = vpop.eup %10799  ;;  %v13732_v23 = vld [vmem:[#allocation49_spill] sm:$0xff] }
 0xe19   : > { %10809 = vrcp.f32 %v5792_v38  ;;  %v5819_v37 = vmul.f32 %v10800_v55, %v12833_v63 }
 0xe1a   : > { %v5829_v32 = vpack.c.bf16 %v5818_v26, %v5817_v57 }
 0xe1b   : > { %v10802_v46 = vpop.eup %10801 }
 0xe1c   : > { %9376 = vmatprep.mubr.bf16.mxu0 %v5829_v32  ;;  %v5820_v36 = vmul.f32 %v10802_v46, %v12847_v31  ;;  %v10804_v61 = vpop.eup %10803  ;;  %v6375_v46 = vsel %vm3211_vm0, %v13732_v23, 0 }
 0xe1d   : > { %v5821_v17 = vmul.f32 %v10804_v61, %v12839_v0 }
 0xe1e   : > { %v5830_v29 = vpack.c.bf16 %v5820_v36, %v5819_v37  ;;  %v13733_v36 = vld [vmem:[#allocation51_spill] sm:$0xff] }
 0xe1f   : > { %v10806_v33 = vpop.eup %10805 }
 0xe20   : > { %9377 = vmatmul.mubr.bf16.gmra.mrb[152].mxu0 %v5830_v29  ;;  %v5822_v48 = vmul.f32 %v10806_v33, %v12851_v58  ;;  %v10808_v44 = vpop.eup %10807  ;;  %v13720_v58 = vld [vmem:[#allocation56_spill] sm:$0xff] }
 0xe21   : > { %v5823_v9 = vmul.f32 %v10808_v44, %v12845_v27  ;;  %v6357_v27 = vsel %vm3211_vm0, %v13709_v28, 0  ;;  %v6378_v44 = vsel %vm3211_vm0, %v13733_v36, 0 }
 0xe22   : > { %v5831_v21 = vpack.c.bf16 %v5822_v48, %v5821_v17 }
 0xe23   : > { %v10810_v6 = vpop.eup %10809 }
 0xe24   : > { %9380 = vmatprep.mubr.bf16.mxu0 %v5831_v21  ;;  %v5824_v59 = vmul.f32 %v10810_v6, %v12854_v52  ;;  %v13721_v52 = vld [vmem:[#allocation40_spill] sm:$0xff] }
 0xe25   : > { %v6360_v51 = vsel %vm3211_vm0, %v13721_v52, 0 }
 0xe26   : > { %v5832_v12 = vpack.c.bf16 %v5824_v59, %v5823_v9 }
 0xe28   : > { %9381 = vmatmul.mubr.bf16.gmra.mrb[156].mxu0 %v5832_v12 }
 0xe29   : > { %6106 = vmatprep.mubr.bf16.mxu0 %v13677_v2 }
 0xebb   : > { %v9370_v63 = vpop.f32.mrb[144].mxu0 }
 0xebc   : > { %v5899_v31 = vpop.f32.mrb[145].mxu0 }
 0xebd   : > { %v9371_v53 = vpop.f32.mrb[146].mxu0 }
 0xebe   : > { %v5963_v40 = vpack.c.bf16 %v9371_v53, %v9370_v63  ;;  %v5902_v30 = vpop.f32.mrb[147].mxu0  ;;  %v13735_v53 = vld [vmem:[#allocation16_spill] sm:$0xff] }
 0xebf   : > { %v5962_v0 = vpack.c.bf16 %v5902_v30, %v5899_v31  ;;  %v13734_v31 = vld [vmem:[#allocation17_spill] sm:$0xff]  ;;  %v13737_v30 = vld [vmem:[#allocation18_spill] sm:$0xff] }
 0xec1   : > { %8589 = vmatmul.mubr.msk.bf16.vlgmr.msra.gmra.mrb[96].mxu0 %vm3211_vm0, %v5962_v0  ;;  %9392 = vmatprep.mubr.msk.bf16.mxu1 %vm3211_vm0, %v5962_v0  ;;  %v13738_v0 = vld [vmem:[#allocation21_spill] sm:$0xff] }
 0xec2   : > { %9441 = vmatpush3.bf16.msra.mxu0 %v13719_v41  ;;  %9393 = vmatmul.mubr.msk.bf16.vlgmr.msra.gmra.mrb[144].mxu1 %vm3211_vm0, %v5963_v40 }
 0xec3   : > { %9409 = vmatpush3.bf16.xpose.msra.mxu1 %v6357_v27  ;;  %9442 = vmatprep.subr.bf16.mxu0 %v13720_v58  ;;  %v13739_v27 = vld [vmem:[#allocation20_spill] sm:$0xff] }
 0xec4   : > { %9985 = vmatprep.subr.msk.bf16.mxu1 %vm3211_vm0, %v13721_v52  ;;  %6116 = vmatprep.mubr.bf16.mxu0 %v13677_v2 }
 0xec6   : > { %9443 = vmatpush3.bf16.msra.mxu0 %v13720_v58 }
 0xec7   : > { %9444 = vmatprep.subr.bf16.mxu0 %v13722_v56 }
 0xec9   : > { %8590 = vmatmul.mubr.msk.bf16.gmra.mrb[100].mxu0 %vm3211_vm0, %v5963_v40  ;;  %v13736_v40 = vld [vmem:[#allocation19_spill] sm:$0xff] }
 0xeca   : > { %9445 = vmatpush3.bf16.msra.mxu0 %v13722_v56  ;;  %6126 = vmatprep.mubr.bf16.mxu0 %v13677_v2 }
 0xecb   : > { %9411 = vmatpush3.bf16.xpose.msra.mxu1 %v6360_v51  ;;  %9446 = vmatprep.subr.bf16.mxu0 %v13723_v11  ;;  %v13740_v51 = vld [vmem:[#allocation23_spill] sm:$0xff] }
 0xecc   : > { %9986 = vmatprep.subr.msk.bf16.mxu1 %vm3211_vm0, %v13724_v25 }
 0xece   : > { %9447 = vmatpush3.bf16.msra.mxu0 %v13723_v11 }
 0xecf   : > { %9448 = vmatprep.subr.bf16.mxu0 %v13725_v15 }
 0xed2   : > { %9449 = vmatpush3.bf16.msra.mxu0 %v13725_v15 }
 0xed3   : > { %9413 = vmatpush3.bf16.xpose.msra.mxu1 %v6363_v10  ;;  %9450 = vmatprep.subr.bf16.mxu0 %v13726_v35  ;;  %v13741_v10 = vld [vmem:[#allocation22_spill] sm:$0xff] }
 0xed4   : > { %9987 = vmatprep.subr.msk.bf16.mxu1 %vm3211_vm0, %v13727_v54 }
 0xed6   : > { %9451 = vmatpush3.bf16.msra.mxu0 %v13726_v35 }
 0xed7   : > { %9452 = vmatprep.subr.bf16.mxu0 %v13728_v49 }
 0xeda   : > { %9453 = vmatpush3.bf16.msra.mxu0 %v13728_v49 }
 0xedb   : > { %9415 = vmatpush3.bf16.xpose.msra.mxu1 %v6366_v24  ;;  %9454 = vmatprep.subr.bf16.mxu0 %v13729_v18 }
 0xedc   : > { %9988 = vmatprep.subr.msk.bf16.mxu1 %vm3211_vm0, %v13730_v62 }
 0xede   : > { %9455 = vmatpush3.bf16.msra.mxu0 %v13729_v18 }
 0xee3   : > { %9417 = vmatpush3.bf16.xpose.msra.mxu1 %v6369_v3 }
 0xee4   : > { %9989 = vmatprep.subr.msk.bf16.mxu1 %vm3211_vm0, %v13731_v39 }
 0xeeb   : > { %9419 = vmatpush3.bf16.xpose.msra.mxu1 %v6372_v43  ;;  %v9374_v20 = vpop.f32.mrb[148].mxu0 }
 0xeec   : > { %9990 = vmatprep.subr.msk.bf16.mxu1 %vm3211_vm0, %v13732_v23  ;;  %v5915_v38 = vpop.f32.mrb[149].mxu0 }
 0xeed   : > { %v9375_v57 = vpop.f32.mrb[150].mxu0 }
 0xeee   : > { %v5965_v26 = vpack.c.bf16 %v9375_v57, %v9374_v20  ;;  %v5918_v55 = vpop.f32.mrb[151].mxu0 }
 0xeef   : > { %v5964_v32 = vpack.c.bf16 %v5918_v55, %v5915_v38 }
 0xef1   : > { %8591 = vmatmul.mubr.msk.bf16.gmra.mrb[104].mxu0 %vm3211_vm0, %v5964_v32  ;;  %9396 = vmatprep.mubr.msk.bf16.mxu1 %vm3211_vm0, %v5964_v32 }
 0xef2   : > { %9397 = vmatmul.mubr.msk.bf16.gmra.mrb[148].mxu1 %vm3211_vm0, %v5965_v26  ;;  %6136 = vmatprep.mubr.bf16.mxu0 %v13677_v2 }
 0xef3   : > { %9421 = vmatpush3.bf16.xpose.msra.mxu1 %v6375_v46  ;;  %v9378_v37 = vpop.f32.mrb[152].mxu0 }
 0xef4   : > { %9991 = vmatprep.subr.msk.bf16.mxu1 %vm3211_vm0, %v13733_v36  ;;  %v5931_v61 = vpop.f32.mrb[153].mxu0 }
 0xef5   : > { %v9379_v29 = vpop.f32.mrb[154].mxu0 }
 0xef6   : > { %v5967_v33 = vpack.c.bf16 %v9379_v29, %v9378_v37  ;;  %v5934_v17 = vpop.f32.mrb[155].mxu0 }
 0xef7   : > { %v5966_v48 = vpack.c.bf16 %v5934_v17, %v5931_v61 }
 0xef9   : > { %8592 = vmatmul.mubr.msk.bf16.gmra.mrb[108].mxu0 %vm3211_vm0, %v5965_v26  ;;  %9400 = vmatprep.mubr.msk.bf16.mxu1 %vm3211_vm0, %v5966_v48 }
 0xefa   : > { %9401 = vmatmul.mubr.msk.bf16.gmra.mrb[152].mxu1 %vm3211_vm0, %v5967_v33  ;;  %6146 = vmatprep.mubr.bf16.mxu0 %v13677_v2 }
 0xefb   : > { %9423 = vmatpush3.bf16.xpose.msra.mxu1 %v6378_v44  ;;  %v9382_v21 = vpop.f32.mrb[156].mxu0 }
 0xefc   : > { %v5947_v6 = vpop.f32.mrb[157].mxu0 }
 0xefd   : > { %v9383_v9 = vpop.f32.mrb[158].mxu0 }
 0xefe   : > { %v5969_v59 = vpack.c.bf16 %v9383_v9, %v9382_v21  ;;  %v5950_v12 = vpop.f32.mrb[159].mxu0 }
 0xeff   : > { %v5968_v63 = vpack.c.bf16 %v5950_v12, %v5947_v6 }
 0xf01   : > { %8593 = vmatmul.mubr.msk.bf16.gmra.mrb[112].mxu0 %vm3211_vm0, %v5966_v48  ;;  %9404 = vmatprep.mubr.msk.bf16.mxu1 %vm3211_vm0, %v5968_v63 }
 0xf02   : > { %9405 = vmatmul.mubr.msk.bf16.gmra.mrb[156].mxu1 %vm3211_vm0, %v5969_v59  ;;  %6156 = vmatprep.mubr.bf16.mxu0 %v13677_v2 }
 0xf03   : > { %9424 = vmatprep.mubr.msk.bf16.mxu1 %vm3211_vm0, %v13734_v31 }
 0xf09   : > { %8594 = vmatmul.mubr.msk.bf16.gmra.mrb[116].mxu0 %vm3211_vm0, %v5967_v33 }
 0xf0a   : > { %9425 = vmatmul.mubr.msk.bf16.vlgmr.msra.gmra.mrb[192].mxu1 %vm3211_vm0, %v13735_v53  ;;  %6166 = vmatprep.mubr.bf16.mxu0 %v13677_v2 }
 0xf0b   : > { %9428 = vmatprep.mubr.msk.bf16.mxu1 %vm3211_vm0, %v13736_v40 }
 0xf11   : > { %8595 = vmatmul.mubr.msk.bf16.gmra.mrb[120].mxu0 %vm3211_vm0, %v5968_v63 }
 0xf12   : > { %9429 = vmatmul.mubr.msk.bf16.gmra.mrb[196].mxu1 %vm3211_vm0, %v13737_v30  ;;  %6176 = vmatprep.mubr.bf16.mxu0 %v13677_v2 }
 0xf13   : > { %9432 = vmatprep.mubr.msk.bf16.mxu1 %vm3211_vm0, %v13738_v0 }
 0xf19   : > { %8596 = vmatmul.mubr.msk.bf16.gmra.mrb[124].mxu0 %vm3211_vm0, %v5969_v59 }
 0xf1a   : > { %9433 = vmatmul.mubr.msk.bf16.gmra.mrb[200].mxu1 %vm3211_vm0, %v13739_v27 }
 0xf1b   : > { %9436 = vmatprep.mubr.msk.bf16.mxu1 %vm3211_vm0, %v13740_v51 }
 0xf22   : > { %9437 = vmatmul.mubr.msk.bf16.gmra.mrb[204].mxu1 %vm3211_vm0, %v13741_v10 }
 0xfdd   : > { %v9426_v24 = vpop.f32.mrb[192].mxu1 }
 0xfde   : > { %v6414_v3 = vpop.f32.mrb[193].mxu1  ;;  %v6423_v26 = vadd.f32 %v9426_v24, %v11994_v16 }
 0xfdf   : > { %v6415_v43 = vadd.f32 %v6414_v3, %v11997_v8  ;;  %v9427_v20 = vpop.f32.mrb[194].mxu1 }
 0xfe0   : > { %v6417_v38 = vpop.f32.mrb[195].mxu1  ;;  %v6426_v55 = vadd.f32 %v9427_v20, %v12010_v7 }
 0xfe1   : > { %v6418_v57 = vadd.f32 %v6417_v38, %v12014_v5  ;;  %6477 = vmax.xlane.f32.xlu1 %v6415_v43 }
 0xfe3   : > { %6479 = vmax.xlane.f32.xlu0 %v6418_v57 }
 0xfe5   : > { %v9430_v32 = vpop.f32.mrb[196].mxu1  ;;  %6481 = vmax.xlane.f32.xlu1 %v6423_v26 }
 0xfe6   : > { %v6430_v46 = vpop.f32.mrb[197].mxu1  ;;  %v6439_v17 = vadd.f32 %v9430_v32, %v12028_v1 }
 0xfe7   : > { %v6431_v37 = vadd.f32 %v6430_v46, %v12043_v42  ;;  %v9431_v61 = vpop.f32.mrb[198].mxu1  ;;  %6483 = vmax.xlane.f32.xlu0 %v6426_v55 }
 0xfe8   : > { %v6433_v29 = vpop.f32.mrb[199].mxu1  ;;  %v6442_v48 = vadd.f32 %v9431_v61, %v12035_v34 }
 0xfe9   : > { %v6434_v33 = vadd.f32 %v6433_v29, %v12050_v19  ;;  %6485 = vmax.xlane.f32.xlu1 %v6431_v37 }
 0xfeb   : > { %6487 = vmax.xlane.f32.xlu0 %v6434_v33 }
 0xfed   : > { %v9434_v44 = vpop.f32.mrb[200].mxu1  ;;  %6489 = vmax.xlane.f32.xlu1 %v6439_v17 }
 0xfee   : > { %v6446_v21 = vpop.f32.mrb[201].mxu1  ;;  %v12975_v63 = vadd.f32 %v9434_v44, %v12061_v50 }
 0xfef   : > { %v12968_v6 = vadd.f32 %v6446_v21, %v12078_v47  ;;  %v9435_v9 = vpop.f32.mrb[202].mxu1  ;;  %6491 = vmax.xlane.f32.xlu0 %v6442_v48 }
 0xff0   : > { %v6449_v59 = vpop.f32.mrb[203].mxu1  ;;  %v12979_v24 = vadd.f32 %v9435_v9, %v12070_v60 }
 0xff1   : > { %v12971_v12 = vadd.f32 %v6449_v59, %v12085_v14  ;;  %6493 = vmax.xlane.f32.xlu1 %v12968_v6 }
 0xff3   : > { %6495 = vmax.xlane.f32.xlu0 %v12971_v12 }
 0xff5   : > { %v9438_v3 = vpop.f32.mrb[204].mxu1  ;;  %6497 = vmax.xlane.f32.xlu1 %v12975_v63 }
 0xff6   : > { %v6462_v20 = vpop.f32.mrb[205].mxu1  ;;  %v12991_v29 = vadd.f32 %v9438_v3, %v13710_v13 }
 0xff7   : > { %v12983_v38 = vadd.f32 %v6462_v20, %v13711_v4  ;;  %v9439_v32 = vpop.f32.mrb[206].mxu1  ;;  %6499 = vmax.xlane.f32.xlu0 %v12979_v24 }
 0xff8   : > { %v6465_v46 = vpop.f32.mrb[207].mxu1  ;;  %v12995_v44 = vadd.f32 %v9439_v32, %v13680_v22 }
 0xff9   : > { %v12987_v61 = vadd.f32 %v6465_v46, %v13681_v45  ;;  %6501 = vmax.xlane.f32.xlu1 %v12983_v38 }
 0xffb   : > { %6503 = vmax.xlane.f32.xlu0 %v12987_v61 }
 0xffd   : > { %6505 = vmax.xlane.f32.xlu1 %v12991_v29 }
 0xfff   : > { %6507 = vmax.xlane.f32.xlu0 %v12995_v44 }
0x106e   : > { %v6478_v21 = vpop.xlane.xlu1 %6477 }
0x106f   : > { %v6509_v9 = vsub.f32 %v6415_v43, %v6478_v21 }
0x1070   : > { %v6480_v59 = vpop.xlane.xlu0 %6479 }
0x1071   : > { %v6525_v20 = vmul.f32 1.442695, %v6509_v9  ;;  %v6510_v46 = vsub.f32 %v6418_v57, %v6480_v59 }
0x1072   : > { %v6482_v35 = vpop.xlane.xlu1 %6481 }
0x1073   : > { %10811 = vpow2.f32 %v6525_v20  ;;  %v6527_v18 = vmul.f32 1.442695, %v6510_v46  ;;  %v6511_v49 = vsub.f32 %v6423_v26, %v6482_v35 }
0x1074   : > { %v6484_v3 = vpop.xlane.xlu0 %6483 }
0x1075   : > { %10813 = vpow2.f32 %v6527_v18  ;;  %v6529_v15 = vmul.f32 1.442695, %v6511_v49  ;;  %v6512_v45 = vsub.f32 %v6426_v55, %v6484_v3 }
0x1076   : > { %v6486_v4 = vpop.xlane.xlu1 %6485 }
0x1077   : > { %10815 = vpow2.f32 %v6529_v15  ;;  %v6531_v32 = vmul.f32 1.442695, %v6512_v45  ;;  %v6513_v22 = vsub.f32 %v6431_v37, %v6486_v4 }
0x1078   : > { %v6488_v13 = vpop.xlane.xlu0 %6487 }
0x1079   : > { %10817 = vpow2.f32 %v6531_v32  ;;  %v6533_v14 = vmul.f32 1.442695, %v6513_v22  ;;  %v6514_v60 = vsub.f32 %v6434_v33, %v6488_v13 }
0x107a   : > { %v6490_v43 = vpop.xlane.xlu1 %6489 }
0x107b   : > { %10819 = vpow2.f32 %v6533_v14  ;;  %v6535_v21 = vmul.f32 1.442695, %v6514_v60  ;;  %v6515_v57 = vsub.f32 %v6439_v17, %v6490_v43 }
0x107c   : > { %v6492_v9 = vpop.xlane.xlu0 %6491 }
0x107d   : > { %v12999_v59 = vpop.eup %10811  ;;  %10821 = vpow2.f32 %v6535_v21  ;;  %v6537_v35 = vmul.f32 1.442695, %v6515_v57  ;;  %v6516_v18 = vsub.f32 %v6442_v48, %v6492_v9 }
0x107e   : > { %6557 = vadd.xlane.f32.xlu1 %v12999_v59  ;;  %v6494_v49 = vpop.xlane.xlu1 %6493 }
0x107f   : > { %v13002_v15 = vpop.eup %10813  ;;  %10823 = vpow2.f32 %v6537_v35  ;;  %v6539_v45 = vmul.f32 1.442695, %v6516_v18  ;;  %v6517_v22 = vsub.f32 %v12968_v6, %v6494_v49 }
0x1080   : > { %6559 = vadd.xlane.f32.xlu0 %v13002_v15  ;;  %v6496_v14 = vpop.xlane.xlu0 %6495 }
0x1081   : > { %v13006_v60 = vpop.eup %10815  ;;  %10825 = vpow2.f32 %v6539_v45  ;;  %v6541_v13 = vmul.f32 1.442695, %v6517_v22  ;;  %v6518_v4 = vsub.f32 %v12971_v12, %v6496_v14 }
0x1082   : > { %6561 = vadd.xlane.f32.xlu1 %v13006_v60  ;;  %v6498_v26 = vpop.xlane.xlu1 %6497 }
0x1083   : > { %v13010_v55 = vpop.eup %10817  ;;  %10827 = vpow2.f32 %v6541_v13  ;;  %v6543_v37 = vmul.f32 1.442695, %v6518_v4  ;;  %v6519_v33 = vsub.f32 %v12975_v63, %v6498_v26 }
0x1084   : > { %6563 = vadd.xlane.f32.xlu0 %v13010_v55  ;;  %v6500_v17 = vpop.xlane.xlu0 %6499 }
0x1085   : > { %v13014_v48 = vpop.eup %10819  ;;  %10829 = vpow2.f32 %v6543_v37  ;;  %v6545_v6 = vmul.f32 1.442695, %v6519_v33  ;;  %v6520_v20 = vsub.f32 %v12979_v24, %v6500_v17  ;;  %v10523_v33 = vld [vmem:[#allocation8 + $0x188] ss:$12 sps:$4 sm:$0xff]   ;;  %v10524_v17 = vld [vmem:[#allocation8 + $0x1a0] ss:$12 sps:$4 sm:$0xff]  }
0x1086   : > { %6565 = vadd.xlane.f32.xlu1 %v13014_v48  ;;  %v6502_v12 = vpop.xlane.xlu1 %6501  ;;  %9472 = vmatprep.subr.bf16.mxu1 %v10523_v33 }
0x1087   : > { %v13018_v46 = vpop.eup %10821  ;;  %10831 = vpow2.f32 %v6545_v6  ;;  %v6547_v3 = vmul.f32 1.442695, %v6520_v20  ;;  %v6521_v32 = vsub.f32 %v12983_v38, %v6502_v12  ;;  %9473 = vmatpush3.bf16.msra.mxu1 %v10523_v33  ;;  %v10525_v6 = vld [vmem:[#allocation8 + $0x1b8] ss:$12 sps:$4 sm:$0xff]   ;;  %v10526_v20 = vld [vmem:[#allocation8 + $0x1d0] ss:$12 sps:$4 sm:$0xff]  }
0x1088   : > { %6567 = vadd.xlane.f32.xlu0 %v13018_v46  ;;  %v6504_v63 = vpop.xlane.xlu0 %6503  ;;  %9474 = vmatprep.subr.bf16.mxu1 %v10524_v17 }
0x1089   : > { %v13022_v43 = vpop.eup %10823  ;;  %10833 = vpow2.f32 %v6547_v3  ;;  %v6549_v21 = vmul.f32 1.442695, %v6521_v32  ;;  %v6522_v57 = vsub.f32 %v12987_v61, %v6504_v63  ;;  %v10527_v63 = vld [vmem:[#allocation8 + $0x180] ss:$12 sps:$4 sm:$0xff]  }
0x108a   : > { %6569 = vadd.xlane.f32.xlu1 %v13022_v43  ;;  %v6506_v24 = vpop.xlane.xlu1 %6505 }
0x108b   : > { %v13026_v9 = vpop.eup %10825  ;;  %10835 = vpow2.f32 %v6549_v21  ;;  %v6551_v35 = vmul.f32 1.442695, %v6522_v57  ;;  %v6523_v18 = vsub.f32 %v12991_v29, %v6506_v24  ;;  %9475 = vmatpush3.bf16.msra.mxu1 %v10524_v17 }
0x108c   : > { %6571 = vadd.xlane.f32.xlu0 %v13026_v9  ;;  %v6508_v38 = vpop.xlane.xlu0 %6507  ;;  %9476 = vmatprep.subr.bf16.mxu1 %v10525_v6 }
0x108d   : > { %v13030_v49 = vpop.eup %10827  ;;  %10837 = vpow2.f32 %v6551_v35  ;;  %v6553_v45 = vmul.f32 1.442695, %v6523_v18  ;;  %v6524_v22 = vsub.f32 %v12995_v44, %v6508_v38 }
0x108e   : > { %6573 = vadd.xlane.f32.xlu1 %v13030_v49 }
0x108f   : > { %v13034_v61 = vpop.eup %10829  ;;  %10839 = vpow2.f32 %v6553_v45  ;;  %v6555_v14 = vmul.f32 1.442695, %v6524_v22  ;;  %9477 = vmatpush3.bf16.msra.mxu1 %v10525_v6  ;;  %v10535_v22 = vld [vmem:[#allocation8 + $0x1b4] ss:$12 sps:$4 sm:$0xff]  }
0x1090   : > { %6575 = vadd.xlane.f32.xlu0 %v13034_v61  ;;  %9478 = vmatprep.subr.bf16.mxu1 %v10526_v20 }
0x1091   : > { %v13037_v13 = vpop.eup %10831  ;;  %10841 = vpow2.f32 %v6555_v14 }
0x1092   : > { %6577 = vadd.xlane.f32.xlu1 %v13037_v13 }
0x1093   : > { %v13040_v29 = vpop.eup %10833  ;;  %9479 = vmatpush3.bf16.msra.mxu1 %v10526_v20 }
0x1094   : > { %6579 = vadd.xlane.f32.xlu0 %v13040_v29 }
0x1095   : > { %v13043_v4 = vpop.eup %10835 }
0x1096   : > { %6581 = vadd.xlane.f32.xlu1 %v13043_v4 }
0x1097   : > { %v13046_v44 = vpop.eup %10837 }
0x1098   : > { %6583 = vadd.xlane.f32.xlu0 %v13046_v44 }
0x1099   : > { %v13049_v26 = vpop.eup %10839 }
0x109a   : > { %6585 = vadd.xlane.f32.xlu1 %v13049_v26 }
0x109b   : > { %v13052_v37 = vpop.eup %10841 }
0x109c   : > { %6587 = vadd.xlane.f32.xlu0 %v13052_v37 }
0x10ab   : > { %7128 = vrot.lane.b32.xlu1 %v13709_v28, %s11170_s26  ;;  %v10529_v28 = vld [vmem:[#allocation8 + $0x184] ss:$12 sps:$4 sm:$0xff]  }
0x10ac   : > { %6838 = vmatprep.subr.bf16.mxu0 %v10529_v28 }
0x10af   : > { %7132 = vrot.lane.b32.xlu1 %v13724_v25, %s11170_s26 }
0x10b2   : > { %7130 = vrot.lane.b32.xlu0 %v13721_v52, %s11170_s26 }
0x10b3   : > { %7134 = vrot.lane.b32.xlu1 %v13727_v54, %s11170_s26 }
0x10b6   : > { %7136 = vrot.lane.b32.xlu0 %v13730_v62, %s11170_s26 }
0x10b7   : > { %7138 = vrot.lane.b32.xlu1 %v13731_v39, %s11170_s26 }
0x10ba   : > { %7140 = vrot.lane.b32.xlu0 %v13732_v23, %s11170_s26 }
0x10bb   : > { %7142 = vrot.lane.b32.xlu1 %v13733_v36, %s11170_s26 }
0x10be   : > { %7104 = vrot.lane.b32.xlu0 %v13734_v31, %s11170_s26 }
0x10bf   : > { %7106 = vrot.lane.b32.xlu1 %v13735_v53, %s11170_s26 }
0x10c2   : > { %7108 = vrot.lane.b32.xlu0 %v13736_v40, %s11170_s26 }
0x10c3   : > { %7110 = vrot.lane.b32.xlu1 %v13737_v30, %s11170_s26 }
0x10c6   : > { %7112 = vrot.lane.b32.xlu0 %v13738_v0, %s11170_s26 }
0x10c7   : > { %7114 = vrot.lane.b32.xlu1 %v13739_v27, %s11170_s26 }
0x10ca   : > { %7116 = vrot.lane.b32.xlu0 %v13740_v51, %s11170_s26 }
0x10cb   : > { %7118 = vrot.lane.b32.xlu1 %v13741_v10, %s11170_s26 }
0x10cf   : > { %7449 = vrot.lane.b32.xlu1 %v13719_v41, %s11170_s26 }
0x10d3   : > { %7451 = vrot.lane.b32.xlu1 %v13720_v58, %s11170_s26 }
0x110b   : > { %v6558_v52 = vpop.xlane.xlu1 %6557 }
0x110c   : > { %10843 = vrcp.f32 %v6558_v52  ;;  %v10538_v52 = vld [vmem:[#allocation8 + $0x1cc] ss:$12 sps:$4 sm:$0xff]  }
0x110d   : > { %v6560_v25 = vpop.xlane.xlu0 %6559 }
0x110e   : > { %10845 = vrcp.f32 %v6560_v25 }
0x110f   : > { %v6562_v54 = vpop.xlane.xlu1 %6561 }
0x1110   : > { %10847 = vrcp.f32 %v6562_v54 }
0x1111   : > { %v6564_v62 = vpop.xlane.xlu0 %6563 }
0x1112   : > { %10849 = vrcp.f32 %v6564_v62 }
0x1113   : > { %v6566_v39 = vpop.xlane.xlu1 %6565 }
0x1114   : > { %10851 = vrcp.f32 %v6566_v39 }
0x1115   : > { %v6568_v23 = vpop.xlane.xlu0 %6567 }
0x1116   : > { %v10844_v36 = vpop.eup %10843  ;;  %10853 = vrcp.f32 %v6568_v23 }
0x1117   : > { %v6570_v31 = vpop.xlane.xlu1 %6569  ;;  %v6605_v40 = vmul.f32 %v10844_v36, %v12999_v59  ;;  %v10532_v59 = vld [vmem:[#allocation8 + $0x19c] ss:$12 sps:$4 sm:$0xff]  }
0x1118   : > { %v10846_v53 = vpop.eup %10845  ;;  %10855 = vrcp.f32 %v6570_v31 }
0x1119   : > { %v6572_v41 = vpop.xlane.xlu0 %6571  ;;  %v6606_v58 = vmul.f32 %v10846_v53, %v13002_v15 }
0x111a   : > { %v10848_v30 = vpop.eup %10847  ;;  %10857 = vrcp.f32 %v6572_v41 }
0x111b   : > { %v6574_v0 = vpop.xlane.xlu1 %6573  ;;  %v6621_v27 = vpack.c.bf16 %v6606_v58, %v6605_v40  ;;  %v6607_v10 = vmul.f32 %v10848_v30, %v13006_v60  ;;  %v10530_v60 = vld [vmem:[#allocation8 + $0x198] ss:$12 sps:$4 sm:$0xff]  }
0x111c   : > { %v10850_v51 = vpop.eup %10849  ;;  %10859 = vrcp.f32 %v6574_v0 }
0x111d   : > { %v6608_v12 = vmul.f32 %v10850_v51, %v13010_v55  ;;  %v6576_v3 = vpop.xlane.xlu0 %6575  ;;  %9456 = vmatprep.mubr.bf16.mxu0 %v6621_v27 }
0x111e   : > { %v10852_v32 = vpop.eup %10851  ;;  %10861 = vrcp.f32 %v6576_v3 }
0x111f   : > { %v6578_v21 = vpop.xlane.xlu1 %6577  ;;  %v6622_v57 = vpack.c.bf16 %v6608_v12, %v6607_v10  ;;  %v6609_v35 = vmul.f32 %v10852_v32, %v13014_v48  ;;  %v10533_v48 = vld [vmem:[#allocation8 + $0x1b0] ss:$12 sps:$4 sm:$0xff]  }
0x1120   : > { %v10854_v24 = vpop.eup %10853  ;;  %10863 = vrcp.f32 %v6578_v21 }
0x1121   : > { %v6580_v15 = vpop.xlane.xlu0 %6579  ;;  %9457 = vmatmul.mubr.bf16.vlgmr.msra.gmra.mrb[160].mxu0 %v6622_v57  ;;  %v6610_v18 = vmul.f32 %v10854_v24, %v13018_v46 }
0x1122   : > { %v10856_v38 = vpop.eup %10855  ;;  %10865 = vrcp.f32 %v6580_v15  ;;  %6839 = vmatpush1.bf16.msra.mxu0 %v10527_v63 }
0x1123   : > { %v6582_v55 = vpop.xlane.xlu1 %6581  ;;  %v6623_v45 = vpack.c.bf16 %v6610_v18, %v6609_v35  ;;  %6840 = vmatprep.subr.bf16.mxu0 %v10532_v59  ;;  %v6611_v17 = vmul.f32 %v10856_v38, %v13022_v43  ;;  %v10536_v43 = vld [vmem:[#allocation8 + $0x1c8] ss:$12 sps:$4 sm:$0xff]  }
0x1124   : > { %v10858_v14 = vpop.eup %10857  ;;  %10867 = vrcp.f32 %v6582_v55 }
0x1125   : > { %v6584_v33 = vpop.xlane.xlu0 %6583  ;;  %9460 = vmatprep.mubr.bf16.mxu0 %v6623_v45  ;;  %v6612_v6 = vmul.f32 %v10858_v14, %v13026_v9 }
0x1126   : > { %v10860_v20 = vpop.eup %10859  ;;  %10869 = vrcp.f32 %v6584_v33  ;;  %6841 = vmatpush1.bf16.msra.mxu0 %v10530_v60 }
0x1127   : > { %v6586_v46 = vpop.xlane.xlu1 %6585  ;;  %v6624_v28 = vpack.c.bf16 %v6612_v6, %v6611_v17  ;;  %6842 = vmatprep.subr.bf16.mxu0 %v10535_v22  ;;  %v6613_v62 = vmul.f32 %v10860_v20, %v13030_v49 }
0x1128   : > { %v10862_v25 = vpop.eup %10861  ;;  %10871 = vrcp.f32 %v6586_v46 }
0x1129   : > { %v6588_v54 = vpop.xlane.xlu0 %6587  ;;  %9461 = vmatmul.mubr.bf16.gmra.mrb[164].mxu0 %v6624_v28  ;;  %v6614_v39 = vmul.f32 %v10862_v25, %v13034_v61 }
0x112a   : > { %v10864_v23 = vpop.eup %10863  ;;  %10873 = vrcp.f32 %v6588_v54  ;;  %6843 = vmatpush1.bf16.msra.mxu0 %v10533_v48 }
0x112b   : > { %v7129_v9 = vpop.permute.xlu1 %7128  ;;  %v6625_v36 = vpack.c.bf16 %v6614_v39, %v6613_v62  ;;  %6844 = vmatprep.subr.bf16.mxu0 %v10538_v52  ;;  %v6615_v53 = vmul.f32 %v10864_v23, %v13037_v13 }
0x112c   : > { %v10866_v31 = vpop.eup %10865  ;;  %9992 = vmatprep.subr.msk.bf16.mxu1 %vm3211_vm0, %v7129_v9  ;;  %v7169_v38 = vsel %vm3211_vm0, %v7129_v9, 0 }
0x112d   : > { %9464 = vmatprep.mubr.bf16.mxu0 %v6625_v36  ;;  %v6616_v41 = vmul.f32 %v10866_v31, %v13040_v29  ;;  %v7131_v55 = vpop.permute.xlu0 %7130 }
0x112e   : > { %v10868_v40 = vpop.eup %10867  ;;  %6845 = vmatpush1.bf16.msra.mxu0 %v10536_v43  ;;  %v7172_v20 = vsel %vm3211_vm0, %v7131_v55, 0 }
0x112f   : > { %v13104_v49 = vpop.permute.xlu1 %7132  ;;  %v6626_v61 = vpack.c.bf16 %v6616_v41, %v6615_v53  ;;  %v6617_v30 = vmul.f32 %v10868_v40, %v13043_v4 }
0x1130   : > { %v10870_v58 = vpop.eup %10869  ;;  %v7175_v39 = vsel %vm3211_vm0, %v13104_v49, 0 }
0x1131   : > { %9465 = vmatmul.mubr.bf16.gmra.mrb[168].mxu0 %v6626_v61  ;;  %v6618_v0 = vmul.f32 %v10870_v58, %v13046_v44  ;;  %v7137_v52 = vpop.permute.xlu0 %7136 }
0x1132   : > { %v10872_v27 = vpop.eup %10871  ;;  %v7181_v61 = vsel %vm3211_vm0, %v7137_v52, 0 }
0x1133   : > { %v13108_v51 = vpop.permute.xlu1 %7134  ;;  %v6627_v10 = vpack.c.bf16 %v6618_v0, %v6617_v30  ;;  %v6619_v13 = vmul.f32 %v10872_v27, %v13049_v26 }
0x1134   : > { %v10874_v12 = vpop.eup %10873  ;;  %v7178_v40 = vsel %vm3211_vm0, %v13108_v51, 0 }
0x1135   : > { %9468 = vmatprep.mubr.bf16.mxu0 %v6627_v10  ;;  %v6620_v29 = vmul.f32 %v10874_v12, %v13052_v37  ;;  %v7141_v43 = vpop.permute.xlu0 %7140 }
0x1136   : > { %v7187_v30 = vsel %vm3211_vm0, %v7141_v43, 0 }
0x1137   : > { %v13112_v3 = vpop.permute.xlu1 %7138  ;;  %v6628_v32 = vpack.c.bf16 %v6620_v29, %v6619_v13 }
0x1138   : > { %v7184_v58 = vsel %vm3211_vm0, %v13112_v3, 0 }
0x1139   : > { %9469 = vmatmul.mubr.bf16.gmra.mrb[172].mxu0 %v6628_v32 }
0x113a   : > { %6870 = vmatprep.mubr.bf16.mxu0 %v13677_v2 }
0x113b   : > { %v13115_v63 = vpop.permute.xlu1 %7142 }
0x113c   : > { %v7190_v0 = vsel %vm3211_vm0, %v13115_v63, 0 }
0x113f   : > { %v13117_v4 = vpop.permute.xlu1 %7106 }
0x1143   : > { %v13119_v44 = vpop.permute.xlu1 %7110 }
0x1147   : > { %v13121_v21 = vpop.permute.xlu1 %7114 }
0x114b   : > { %v13123_v57 = vpop.permute.xlu1 %7118 }
0x114f   : > { %v7450_v59 = vpop.permute.xlu1 %7449 }
0x1150   : > { %9528 = vmatprep.subr.bf16.mxu0 %v7450_v59 }
0x1153   : > { %v7452_v60 = vpop.permute.xlu1 %7451 }
0x11f4   : > { %v9458_v26 = vpop.f32.mrb[160].mxu0 }
0x11f5   : > { %v6663_v37 = vpop.f32.mrb[161].mxu0 }
0x11f6   : > { %v9459_v24 = vpop.f32.mrb[162].mxu0 }
0x11f7   : > { %v6727_v15 = vpack.c.bf16 %v9459_v24, %v9458_v26  ;;  %v6666_v35 = vpop.f32.mrb[163].mxu0 }
0x11f8   : > { %v6726_v18 = vpack.c.bf16 %v6666_v35, %v6663_v37 }
0x11fa   : > { %8625 = vmatmul.mubr.msk.bf16.vlgmr.msra.gmra.mrb[96].mxu0 %vm3211_vm0, %v6726_v18  ;;  %9480 = vmatprep.mubr.msk.bf16.mxu1 %vm3211_vm0, %v6726_v18 }
0x11fb   : > { %9529 = vmatpush3.bf16.msra.mxu0 %v7450_v59  ;;  %9481 = vmatmul.mubr.msk.bf16.vlgmr.msra.gmra.mrb[144].mxu1 %vm3211_vm0, %v6727_v15 }
0x11fc   : > { %9497 = vmatpush3.bf16.xpose.msra.mxu1 %v7169_v38  ;;  %9530 = vmatprep.subr.bf16.mxu0 %v7452_v60  ;;  %v9462_v45 = vpop.f32.mrb[164].mxu0 }
0x11fd   : > { %9993 = vmatprep.subr.msk.bf16.mxu1 %vm3211_vm0, %v7131_v55  ;;  %v6679_v22 = vpop.f32.mrb[165].mxu0  ;;  %6880 = vmatprep.mubr.bf16.mxu0 %v13677_v2 }
0x11fe   : > { %v9463_v14 = vpop.f32.mrb[166].mxu0 }
0x11ff   : > { %v6729_v33 = vpack.c.bf16 %v9463_v14, %v9462_v45  ;;  %9531 = vmatpush3.bf16.msra.mxu0 %v7452_v60  ;;  %v6682_v17 = vpop.f32.mrb[167].mxu0  ;;  %v13743_v45 = vld [vmem:[#allocation71_spill] sm:$0xff]  ;;  %v13746_v14 = vld [vmem:[#allocation74_spill] sm:$0xff] }
0x1200   : > { %v6728_v6 = vpack.c.bf16 %v6682_v17, %v6679_v22  ;;  %v13744_v22 = vld [vmem:[#allocation72_spill] sm:$0xff]  ;;  %v13747_v17 = vld [vmem:[#allocation75_spill] sm:$0xff] }
0x1202   : > { %8626 = vmatmul.mubr.msk.bf16.gmra.mrb[100].mxu0 %vm3211_vm0, %v6727_v15  ;;  %9484 = vmatprep.mubr.msk.bf16.mxu1 %vm3211_vm0, %v6728_v6 }
0x1203   : > { %9485 = vmatmul.mubr.msk.bf16.gmra.mrb[148].mxu1 %vm3211_vm0, %v6729_v33  ;;  %6890 = vmatprep.mubr.bf16.mxu0 %v13677_v2 }
0x1204   : > { %9499 = vmatpush3.bf16.xpose.msra.mxu1 %v7172_v20  ;;  %v9466_v48 = vpop.f32.mrb[168].mxu0  ;;  %v13748_v20 = vld [vmem:[#allocation62_spill] sm:$0xff] }
0x1205   : > { %9994 = vmatprep.subr.msk.bf16.mxu1 %vm3211_vm0, %v13104_v49  ;;  %v6695_v46 = vpop.f32.mrb[169].mxu0  ;;  %v7105_v49 = vpop.permute.xlu0 %7104 }
0x1206   : > { %v9467_v28 = vpop.f32.mrb[170].mxu0 }
0x1207   : > { %v6731_v25 = vpack.c.bf16 %v9467_v28, %v9466_v48  ;;  %v6698_v54 = vpop.f32.mrb[171].mxu0 }
0x1208   : > { %v6730_v62 = vpack.c.bf16 %v6698_v54, %v6695_v46 }
0x1209   : > { %v7109_v27 = vpop.permute.xlu0 %7108 }
0x120a   : > { %8627 = vmatmul.mubr.msk.bf16.gmra.mrb[104].mxu0 %vm3211_vm0, %v6728_v6  ;;  %9488 = vmatprep.mubr.msk.bf16.mxu1 %vm3211_vm0, %v6730_v62 }
0x120b   : > { %9489 = vmatmul.mubr.msk.bf16.gmra.mrb[152].mxu1 %vm3211_vm0, %v6731_v25  ;;  %6900 = vmatprep.mubr.bf16.mxu0 %v13677_v2 }
0x120c   : > { %9501 = vmatpush3.bf16.xpose.msra.mxu1 %v7175_v39  ;;  %v9470_v23 = vpop.f32.mrb[172].mxu0 }
0x120d   : > { %9995 = vmatprep.subr.msk.bf16.mxu1 %vm3211_vm0, %v13108_v51  ;;  %v6711_v9 = vpop.f32.mrb[173].mxu0  ;;  %v7113_v51 = vpop.permute.xlu0 %7112 }
0x120e   : > { %v9471_v36 = vpop.f32.mrb[174].mxu0 }
0x120f   : > { %v6733_v31 = vpack.c.bf16 %v9471_v36, %v9470_v23  ;;  %v6714_v53 = vpop.f32.mrb[175].mxu0 }
0x1210   : > { %v6732_v41 = vpack.c.bf16 %v6714_v53, %v6711_v9 }
0x1211   : > { %v7117_v10 = vpop.permute.xlu0 %7116 }
0x1212   : > { %8628 = vmatmul.mubr.msk.bf16.gmra.mrb[108].mxu0 %vm3211_vm0, %v6729_v33  ;;  %9492 = vmatprep.mubr.msk.bf16.mxu1 %vm3211_vm0, %v6732_v41 }
0x1213   : > { %9493 = vmatmul.mubr.msk.bf16.gmra.mrb[156].mxu1 %vm3211_vm0, %v6733_v31  ;;  %6910 = vmatprep.mubr.bf16.mxu0 %v13677_v2 }
0x1214   : > { %9503 = vmatpush3.bf16.xpose.msra.mxu1 %v7178_v40  ;;  %9512 = vmatprep.mubr.msk.bf16.mxu1 %vm3211_vm0, %v7105_v49 }
0x1215   : > { %9996 = vmatprep.subr.msk.bf16.mxu1 %vm3211_vm0, %v7137_v52 }
0x121a   : > { %8629 = vmatmul.mubr.msk.bf16.gmra.mrb[112].mxu0 %vm3211_vm0, %v6730_v62 }
0x121b   : > { %6920 = vmatprep.mubr.bf16.mxu0 %v13677_v2 }
0x121c   : > { %9505 = vmatpush3.bf16.xpose.msra.mxu1 %v7181_v61 }
0x121d   : > { %9997 = vmatprep.subr.msk.bf16.mxu1 %vm3211_vm0, %v13112_v3 }
0x1222   : > { %8630 = vmatmul.mubr.msk.bf16.gmra.mrb[116].mxu0 %vm3211_vm0, %v6731_v25 }
0x1223   : > { %6930 = vmatprep.mubr.bf16.mxu0 %v13677_v2 }
0x1224   : > { %9507 = vmatpush3.bf16.xpose.msra.mxu1 %v7184_v58 }
0x1225   : > { %9998 = vmatprep.subr.msk.bf16.mxu1 %vm3211_vm0, %v7141_v43 }
0x122a   : > { %8631 = vmatmul.mubr.msk.bf16.gmra.mrb[120].mxu0 %vm3211_vm0, %v6732_v41 }
0x122b   : > { %6940 = vmatprep.mubr.bf16.mxu0 %v13677_v2 }
0x122c   : > { %9509 = vmatpush3.bf16.xpose.msra.mxu1 %v7187_v30 }
0x122d   : > { %9999 = vmatprep.subr.msk.bf16.mxu1 %vm3211_vm0, %v13115_v63 }
0x1232   : > { %8632 = vmatmul.mubr.msk.bf16.gmra.mrb[124].mxu0 %vm3211_vm0, %v6733_v31 }
0x1234   : > { %9511 = vmatpush3.bf16.xpose.msra.mxu1 %v7190_v0 }
0x123b   : > { %9513 = vmatmul.mubr.msk.bf16.vlgmr.msra.gmra.mrb[208].mxu1 %vm3211_vm0, %v13117_v4 }
0x123c   : > { %9516 = vmatprep.mubr.msk.bf16.mxu1 %vm3211_vm0, %v7109_v27 }
0x1243   : > { %9517 = vmatmul.mubr.msk.bf16.gmra.mrb[212].mxu1 %vm3211_vm0, %v13119_v44 }
0x1244   : > { %9520 = vmatprep.mubr.msk.bf16.mxu1 %vm3211_vm0, %v7113_v51 }
0x124b   : > { %9521 = vmatmul.mubr.msk.bf16.gmra.mrb[216].mxu1 %vm3211_vm0, %v13121_v21 }
0x124c   : > { %9524 = vmatprep.mubr.msk.bf16.mxu1 %vm3211_vm0, %v7117_v10 }
0x1253   : > { %9525 = vmatmul.mubr.msk.bf16.gmra.mrb[220].mxu1 %vm3211_vm0, %v13123_v57 }
0x130e   : > { %v9514_v12 = vpop.f32.mrb[208].mxu1 }
0x130f   : > { %v7235_v13 = vadd.f32 %v9514_v12, %v11994_v16  ;;  %v7226_v29 = vpop.f32.mrb[209].mxu1 }
0x1310   : > { %v9515_v3 = vpop.f32.mrb[210].mxu1  ;;  %v7227_v4 = vadd.f32 %v7226_v29, %v11997_v8 }
0x1311   : > { %7293 = vmax.xlane.f32.xlu0 %v7235_v13  ;;  %v7229_v32 = vpop.f32.mrb[211].mxu1  ;;  %v7238_v21 = vadd.f32 %v9515_v3, %v12010_v7 }
0x1312   : > { %v13185_v63 = vadd.f32 %v7229_v32, %v12014_v5 }
0x1314   : > { %7291 = vmax.xlane.f32.xlu1 %v13185_v63 }
0x1315   : > { %7289 = vmax.xlane.f32.xlu0 %v7227_v4 }
0x1316   : > { %v9518_v44 = vpop.f32.mrb[212].mxu1 }
0x1317   : > { %v7251_v57 = vadd.f32 %v9518_v44, %v12028_v1  ;;  %v7242_v59 = vpop.f32.mrb[213].mxu1 }
0x1318   : > { %v9519_v26 = vpop.f32.mrb[214].mxu1  ;;  %v7243_v37 = vadd.f32 %v7242_v59, %v12043_v42  ;;  %v13749_v59 = vld [vmem:[#allocation66_spill] sm:$0xff] }
0x1319   : > { %v7245_v16 = vpop.f32.mrb[215].mxu1  ;;  %7301 = vmax.xlane.f32.xlu1 %v7251_v57  ;;  %7295 = vmax.xlane.f32.xlu0 %v7238_v21  ;;  %v7254_v5 = vadd.f32 %v9519_v26, %v12035_v34  ;;  %v13750_v26 = vld [vmem:[#allocation68_spill] sm:$0xff] }
0x131a   : > { %v7246_v24 = vadd.f32 %v7245_v16, %v12050_v19  ;;  %v13742_v19 = vld [vmem:[#allocation70_spill] sm:$0xff]  ;;  %v13751_v16 = vld [vmem:[#allocation64_spill] sm:$0xff] }
0x131d   : > { %7297 = vmax.xlane.f32.xlu1 %v7243_v37  ;;  %7303 = vmax.xlane.f32.xlu0 %v7254_v5 }
0x131e   : > { %v9522_v8 = vpop.f32.mrb[216].mxu1 }
0x131f   : > { %v7258_v15 = vpop.f32.mrb[217].mxu1  ;;  %v13199_v42 = vadd.f32 %v9522_v8, %v12061_v50  ;;  %v13745_v50 = vld [vmem:[#allocation73_spill] sm:$0xff] }
0x1320   : > { %v9523_v35 = vpop.f32.mrb[218].mxu1  ;;  %v13203_v34 = vadd.f32 %v7258_v15, %v12078_v47 }
0x1321   : > { %v7261_v18 = vpop.f32.mrb[219].mxu1  ;;  %7299 = vmax.xlane.f32.xlu0 %v7246_v24  ;;  %v13206_v55 = vadd.f32 %v9523_v35, %v13742_v19 }
0x1326   : > { %v9526_v7 = vpop.f32.mrb[220].mxu1 }
0x1327   : > { %v7274_v1 = vpop.f32.mrb[221].mxu1 }
0x1328   : > { %v9527_v38 = vpop.f32.mrb[222].mxu1  ;;  %v13219_v47 = vadd.f32 %v7274_v1, %v13745_v50 }
0x1329   : > { %v7277_v60 = vpop.f32.mrb[223].mxu1  ;;  %v13222_v33 = vadd.f32 %v9527_v38, %v13746_v14 }
0x132a   : > { %v13227_v6 = vadd.f32 %v7277_v60, %v13747_v17 }
0x132e   : > { %7455 = vrot.lane.b32.xlu1 %v13723_v11, %s11170_s26  ;;  %v13211_v11 = vadd.f32 %v7261_v18, %v13743_v45 }
0x1337   : > { %7453 = vrot.lane.b32.xlu0 %v13722_v56, %s11170_s26  ;;  %v13214_v56 = vadd.f32 %v9526_v7, %v13744_v22 }
0x1352   : > { %7309 = vmax.xlane.f32.xlu1 %v13199_v42 }
0x1356   : > { %7305 = vmax.xlane.f32.xlu1 %v13203_v34  ;;  %7311 = vmax.xlane.f32.xlu0 %v13206_v55 }
0x135a   : > { %7317 = vmax.xlane.f32.xlu1 %v13214_v56  ;;  %7307 = vmax.xlane.f32.xlu0 %v13211_v11 }
0x135e   : > { %7313 = vmax.xlane.f32.xlu1 %v13219_v47  ;;  %7319 = vmax.xlane.f32.xlu0 %v13222_v33 }
0x1362   : > { %7315 = vmax.xlane.f32.xlu0 %v13227_v6 }
0x136f   : > { %7457 = vrot.lane.b32.xlu1 %v13748_v20, %s11170_s26 }
0x139e   : > { %v7294_v48 = vpop.xlane.xlu0 %7293 }
0x139f   : > { %v7323_v46 = vsub.f32 %v7235_v13, %v7294_v48 }
0x13a1   : > { %v7341_v28 = vmul.f32 1.442695, %v7323_v46  ;;  %v7292_v52 = vpop.xlane.xlu1 %7291 }
0x13a2   : > { %v7290_v25 = vpop.xlane.xlu0 %7289  ;;  %v7322_v36 = vsub.f32 %v13185_v63, %v7292_v52 }
0x13a3   : > { %10875 = vpow2.f32 %v7341_v28  ;;  %v7321_v54 = vsub.f32 %v7227_v4, %v7290_v25 }
0x13a4   : > { %v7339_v58 = vmul.f32 1.442695, %v7322_v36 }
0x13a5   : > { %v7337_v62 = vmul.f32 1.442695, %v7321_v54 }
0x13a6   : > { %v7302_v39 = vpop.xlane.xlu1 %7301  ;;  %v7296_v23 = vpop.xlane.xlu0 %7295 }
0x13a7   : > { %10877 = vpow2.f32 %v7337_v62  ;;  %v7327_v43 = vsub.f32 %v7251_v57, %v7302_v39  ;;  %v7324_v9 = vsub.f32 %v7238_v21, %v7296_v23  ;;  %v10542_v39 = vld [vmem:[#allocation8 + $0x1e8] ss:$12 sps:$4 sm:$0xff]   ;;  %v10546_v23 = vld [vmem:[#allocation8 + $0x200] ss:$12 sps:$4 sm:$0xff]  }
0x13a8   : > { %9560 = vmatprep.subr.bf16.mxu1 %v10542_v39 }
0x13a9   : > { %v7349_v31 = vmul.f32 1.442695, %v7327_v43  ;;  %v7343_v53 = vmul.f32 1.442695, %v7324_v9  ;;  %9561 = vmatpush3.bf16.msra.mxu1 %v10542_v39  ;;  %v10550_v43 = vld [vmem:[#allocation8 + $0x218] ss:$12 sps:$4 sm:$0xff]  }
0x13aa   : > { %v7298_v41 = vpop.xlane.xlu1 %7297  ;;  %v7304_v40 = vpop.xlane.xlu0 %7303  ;;  %9562 = vmatprep.subr.bf16.mxu1 %v10546_v23 }
0x13ab   : > { %10879 = vpow2.f32 %v7349_v31  ;;  %v7325_v49 = vsub.f32 %v7243_v37, %v7298_v41  ;;  %v7328_v61 = vsub.f32 %v7254_v5, %v7304_v40 }
0x13ac   : > { %10881 = vpow2.f32 %v7343_v53 }
0x13ad   : > { %v13233_v30 = vpop.eup %10875  ;;  %v7345_v0 = vmul.f32 1.442695, %v7325_v49  ;;  %v7351_v27 = vmul.f32 1.442695, %v7328_v61  ;;  %9563 = vmatpush3.bf16.msra.mxu1 %v10546_v23 }
0x13ae   : > { %7373 = vadd.xlane.f32.xlu0 %v13233_v30  ;;  %v7300_v51 = vpop.xlane.xlu0 %7299  ;;  %v7456_v3 = vpop.permute.xlu1 %7455  ;;  %9564 = vmatprep.subr.bf16.mxu1 %v10550_v43 }
0x13af   : > { %10883 = vpow2.f32 %v7345_v0  ;;  %v7326_v10 = vsub.f32 %v7246_v24, %v7300_v51 }
0x13b0   : > { %10885 = vpow2.f32 %v7339_v58 }
0x13b1   : > { %v13236_v12 = vpop.eup %10877  ;;  %v7347_v13 = vmul.f32 1.442695, %v7326_v10  ;;  %10887 = vpow2.f32 %v7351_v27  ;;  %9565 = vmatpush3.bf16.msra.mxu1 %v10550_v43 }
0x13b2   : > { %7369 = vadd.xlane.f32.xlu0 %v13236_v12  ;;  %v7454_v29 = vpop.permute.xlu0 %7453 }
0x13b3   : > { %10889 = vpow2.f32 %v7347_v13  ;;  %9532 = vmatprep.subr.bf16.mxu0 %v7454_v29 }
0x13b4   : > { %9533 = vmatpush3.bf16.msra.mxu0 %v7454_v29 }
0x13b5   : > { %v13239_v32 = vpop.eup %10879  ;;  %9534 = vmatprep.subr.bf16.mxu0 %v7456_v3 }
0x13b6   : > { %v13241_v63 = vpop.eup %10881  ;;  %7381 = vadd.xlane.f32.xlu1 %v13239_v32 }
0x13b7   : > { %7375 = vadd.xlane.f32.xlu0 %v13241_v63 }
0x13b8   : > { %9535 = vmatpush3.bf16.msra.mxu0 %v7456_v3 }
0x13b9   : > { %v13245_v4 = vpop.eup %10883 }
0x13ba   : > { %v13247_v44 = vpop.eup %10885  ;;  %7377 = vadd.xlane.f32.xlu1 %v13245_v4 }
0x13bb   : > { %7371 = vadd.xlane.f32.xlu0 %v13247_v44  ;;  %v13251_v21 = vpop.eup %10887 }
0x13bd   : > { %v13253_v57 = vpop.eup %10889 }
0x13be   : > { %7383 = vadd.xlane.f32.xlu1 %v13251_v21 }
0x13bf   : > { %7379 = vadd.xlane.f32.xlu0 %v13253_v57 }
0x13cf   : > { %7461 = vrot.lane.b32.xlu1 %v13749_v59, %s11170_s26 }
0x13d3   : > { %7463 = vrot.lane.b32.xlu1 %v13750_v26, %s11170_s26 }
0x13d5   : > { %7459 = vrot.lane.b32.xlu0 %v13751_v16, %s11170_s26 }
0x13df   : > { %v7310_v37 = vpop.xlane.xlu1 %7309 }
0x13e0   : > { %v7331_v24 = vsub.f32 %v13199_v42, %v7310_v37 }
0x13e2   : > { %v7357_v1 = vmul.f32 1.442695, %v7331_v24 }
0x13e3   : > { %v7306_v5 = vpop.xlane.xlu1 %7305  ;;  %v7312_v8 = vpop.xlane.xlu0 %7311 }
0x13e4   : > { %v7329_v15 = vsub.f32 %v13203_v34, %v7306_v5  ;;  %v7332_v60 = vsub.f32 %v13206_v55, %v7312_v8  ;;  %v10541_v8 = vld [vmem:[#allocation8 + $0x1e4] ss:$12 sps:$4 sm:$0xff]  }
0x13e6   : > { %v7353_v35 = vmul.f32 1.442695, %v7329_v15  ;;  %v7359_v14 = vmul.f32 1.442695, %v7332_v60 }
0x13e7   : > { %v7318_v18 = vpop.xlane.xlu1 %7317  ;;  %v7308_v7 = vpop.xlane.xlu0 %7307 }
0x13e8   : > { %10891 = vpow2.f32 %v7353_v35  ;;  %v7330_v38 = vsub.f32 %v13211_v11, %v7308_v7  ;;  %v7335_v42 = vsub.f32 %v13214_v56, %v7318_v18  ;;  %v10539_v35 = vld [vmem:[#allocation8 + $0x1e0] ss:$12 sps:$4 sm:$0xff]   ;;  %v10545_v18 = vld [vmem:[#allocation8 + $0x1fc] ss:$12 sps:$4 sm:$0xff]  }
0x13e9   : > { %10893 = vpow2.f32 %v7357_v1 }
0x13ea   : > { %v7355_v19 = vmul.f32 1.442695, %v7330_v38  ;;  %v7365_v11 = vmul.f32 1.442695, %v7335_v42 }
0x13eb   : > { %v7314_v45 = vpop.xlane.xlu1 %7313  ;;  %v7320_v22 = vpop.xlane.xlu0 %7319 }
0x13ec   : > { %v7333_v50 = vsub.f32 %v13219_v47, %v7314_v45  ;;  %10895 = vpow2.f32 %v7355_v19  ;;  %v7336_v55 = vsub.f32 %v13222_v33, %v7320_v22  ;;  %v10547_v19 = vld [vmem:[#allocation8 + $0x210] ss:$12 sps:$4 sm:$0xff]  }
0x13ee   : > { %v7361_v34 = vmul.f32 1.442695, %v7333_v50  ;;  %v7367_v56 = vmul.f32 1.442695, %v7336_v55 }
0x13ef   : > { %v7458_v17 = vpop.permute.xlu1 %7457  ;;  %v7316_v20 = vpop.xlane.xlu0 %7315 }
0x13f0   : > { %10897 = vpow2.f32 %v7361_v34  ;;  %v7334_v48 = vsub.f32 %v13227_v6, %v7316_v20  ;;  %9536 = vmatprep.subr.bf16.mxu0 %v7458_v17 }
0x13f1   : > { %10899 = vpow2.f32 %v7359_v14  ;;  %9537 = vmatpush3.bf16.msra.mxu0 %v7458_v17 }
0x13f2   : > { %v13271_v46 = vpop.eup %10891  ;;  %v7363_v28 = vmul.f32 1.442695, %v7334_v48 }
0x13f3   : > { %v13274_v47 = vpop.eup %10893 }
0x13f4   : > { %10901 = vpow2.f32 %v7363_v28  ;;  %7385 = vadd.xlane.f32.xlu0 %v13271_v46 }
0x13f5   : > { %10903 = vpow2.f32 %v7365_v11 }
0x13f6   : > { %v13276_v52 = vpop.eup %10895  ;;  %10905 = vpow2.f32 %v7367_v56 }
0x13f7   : > { %7387 = vadd.xlane.f32.xlu1 %v13276_v52 }
0x13f8   : > { %7389 = vadd.xlane.f32.xlu0 %v13274_v47 }
0x13fa   : > { %v13280_v6 = vpop.eup %10897 }
0x13fb   : > { %v13282_v33 = vpop.eup %10899  ;;  %7393 = vadd.xlane.f32.xlu1 %v13280_v6 }
0x13fc   : > { %7391 = vadd.xlane.f32.xlu0 %v13282_v33 }
0x13fe   : > { %v13286_v25 = vpop.eup %10901 }
0x13ff   : > { %v13288_v54 = vpop.eup %10903 }
0x1400   : > { %7397 = vadd.xlane.f32.xlu1 %v13288_v54  ;;  %7395 = vadd.xlane.f32.xlu0 %v13286_v25  ;;  %v13292_v62 = vpop.eup %10905 }
0x1404   : > { %7399 = vadd.xlane.f32.xlu0 %v13292_v62 }
0x143b   : > { %v7374_v9 = vpop.xlane.xlu0 %7373 }
0x143f   : > { %v7370_v36 = vpop.xlane.xlu0 %7369 }
0x1440   : > { %10907 = vrcp.f32 %v7370_v36 }
0x1443   : > { %v7382_v31 = vpop.xlane.xlu1 %7381 }
0x1444   : > { %v7376_v53 = vpop.xlane.xlu0 %7375 }
0x1447   : > { %v7378_v41 = vpop.xlane.xlu1 %7377 }
0x1448   : > { %v7372_v40 = vpop.xlane.xlu0 %7371 }
0x1449   : > { %10909 = vrcp.f32 %v7372_v40 }
0x144a   : > { %10911 = vrcp.f32 %v7376_v53  ;;  %v10908_v27 = vpop.eup %10907 }
0x144b   : > { %10913 = vrcp.f32 %v7374_v9  ;;  %v7384_v49 = vpop.xlane.xlu1 %7383  ;;  %v7417_v13 = vmul.f32 %v10908_v27, %v13236_v12 }
0x144c   : > { %10915 = vrcp.f32 %v7378_v41  ;;  %v7380_v61 = vpop.xlane.xlu0 %7379 }
0x144d   : > { %10917 = vrcp.f32 %v7380_v61 }
0x144e   : > { %10919 = vrcp.f32 %v7384_v49 }
0x144f   : > { %v7462_v58 = vpop.permute.xlu1 %7461  ;;  %10921 = vrcp.f32 %v7382_v31 }
0x1450   : > { %v7460_v0 = vpop.permute.xlu0 %7459 }
0x1451   : > { %9538 = vmatprep.subr.bf16.mxu0 %v7460_v0 }
0x1452   : > { %9539 = vmatpush3.bf16.msra.mxu0 %v7460_v0 }
0x1453   : > { %v10910_v51 = vpop.eup %10909  ;;  %9540 = vmatprep.subr.bf16.mxu0 %v7462_v58  ;;  %v7464_v26 = vpop.permute.xlu1 %7463 }
0x1454   : > { %v10912_v10 = vpop.eup %10911  ;;  %v7418_v29 = vmul.f32 %v10910_v51, %v13247_v44 }
0x1455   : > { %v10914_v3 = vpop.eup %10913  ;;  %v7420_v5 = vmul.f32 %v10912_v10, %v13241_v63  ;;  %v10543_v63 = vld [vmem:[#allocation8 + $0x1f8] ss:$12 sps:$4 sm:$0xff]  }
0x1456   : > { %v10916_v59 = vpop.eup %10915  ;;  %9541 = vmatpush3.bf16.msra.mxu0 %v7462_v58  ;;  %v7433_v16 = vpack.c.bf16 %v7418_v29, %v7417_v13  ;;  %v7419_v15 = vmul.f32 %v10914_v3, %v13233_v30  ;;  %v10554_v58 = vld [vmem:[#allocation8 + $0x230] ss:$12 sps:$4 sm:$0xff]  }
0x1457   : > { %v10918_v37 = vpop.eup %10917  ;;  %9542 = vmatprep.subr.bf16.mxu0 %v7464_v26  ;;  %v7421_v12 = vmul.f32 %v10916_v59, %v13245_v4  ;;  %9566 = vmatprep.subr.bf16.mxu1 %v10554_v58 }
0x1458   : > { %9544 = vmatprep.mubr.bf16.mxu0 %v7433_v16  ;;  %v7422_v24 = vmul.f32 %v10918_v37, %v13253_v57  ;;  %v7434_v44 = vpack.c.bf16 %v7420_v5, %v7419_v15  ;;  %v10920_v7 = vpop.eup %10919  ;;  %v10549_v57 = vld [vmem:[#allocation8 + $0x214] ss:$12 sps:$4 sm:$0xff]   ;;  %9567 = vmatpush3.bf16.msra.mxu1 %v10554_v58 }
0x1459   : > { %v10922_v38 = vpop.eup %10921  ;;  %v7424_v60 = vmul.f32 %v10920_v7, %v13251_v21 }
0x145a   : > { %9543 = vmatpush3.bf16.msra.mxu0 %v7464_v26  ;;  %v7435_v1 = vpack.c.bf16 %v7422_v24, %v7421_v12  ;;  %v7423_v30 = vmul.f32 %v10922_v38, %v13239_v32 }
0x145b   : > { %7682 = vmatprep.subr.bf16.mxu0 %v10541_v8 }
0x145c   : > { %v7436_v4 = vpack.c.bf16 %v7424_v60, %v7423_v30 }
0x145d   : > { %9545 = vmatmul.mubr.bf16.vlgmr.msra.gmra.mrb[176].mxu0 %v7434_v44 }
0x145e   : > { %9548 = vmatprep.mubr.bf16.mxu0 %v7435_v1  ;;  %7683 = vmatpush1.bf16.msra.mxu0 %v10539_v35  ;;  %v13752_v1 = vld [vmem:[#allocation69_spill] sm:$0xff] }
0x145f   : > { %7684 = vmatprep.subr.bf16.mxu0 %v10545_v18  ;;  %v7944_v38 = vsub.s32 0, %v13752_v1  ;;  %v7948_v60 = vsub.s32 1, %v13752_v1 }
0x1462   : > { %7685 = vmatpush1.bf16.msra.mxu0 %v10543_v63  ;;  %v7940_v63 = vld [vmem:[%s13506_s4] sm:$0x7] }
0x1463   : > { %7686 = vmatprep.subr.bf16.mxu0 %v10549_v57  ;;  %v7952_v57 = vsub.s32 2, %v13752_v1  ;;  %v13342_v30 = vrot.slane %v7940_v63, %v7944_v38 }
0x1465   : > { %9549 = vmatmul.mubr.bf16.gmra.mrb[180].mxu0 %v7436_v4  ;;  %v13346_v4 = vrot.slane %v7940_v63, %v7952_v57 }
0x1466   : > { %7687 = vmatpush1.bf16.msra.mxu0 %v10547_v19  ;;  %v13344_v19 = vrot.slane %v7940_v63, %v7948_v60 }
0x1481   : > { %v7386_v45 = vpop.xlane.xlu0 %7385 }
0x1482   : > { %10923 = vrcp.f32 %v7386_v45 }
0x1484   : > { %v7388_v22 = vpop.xlane.xlu1 %7387 }
0x1485   : > { %v7390_v50 = vpop.xlane.xlu0 %7389  ;;  %10925 = vrcp.f32 %v7388_v22 }
0x1486   : > { %10927 = vrcp.f32 %v7390_v50 }
0x1488   : > { %v7394_v14 = vpop.xlane.xlu1 %7393 }
0x1489   : > { %v7392_v42 = vpop.xlane.xlu0 %7391 }
0x148a   : > { %10929 = vrcp.f32 %v7392_v42 }
0x148b   : > { %10931 = vrcp.f32 %v7394_v14 }
0x148c   : > { %v10924_v17 = vpop.eup %10923 }
0x148d   : > { %v7398_v21 = vpop.xlane.xlu1 %7397  ;;  %v7396_v34 = vpop.xlane.xlu0 %7395  ;;  %v7425_v48 = vmul.f32 %v10924_v17, %v13271_v46 }
0x148e   : > { %10933 = vrcp.f32 %v7396_v34 }
0x148f   : > { %v10926_v32 = vpop.eup %10925  ;;  %10935 = vrcp.f32 %v7398_v21 }
0x1490   : > { %v7426_v11 = vmul.f32 %v10926_v32, %v13276_v52  ;;  %v10928_v55 = vpop.eup %10927 }
0x1491   : > { %v7400_v20 = vpop.xlane.xlu0 %7399  ;;  %v7427_v39 = vmul.f32 %v10928_v55, %v13274_v47  ;;  %v10553_v47 = vld [vmem:[#allocation8 + $0x22c] ss:$12 sps:$4 sm:$0xff]  }
0x1492   : > { %10937 = vrcp.f32 %v7400_v20  ;;  %v7437_v28 = vpack.c.bf16 %v7426_v11, %v7425_v48  ;;  %7688 = vmatprep.subr.bf16.mxu0 %v10553_v47 }
0x1494   : > { %v10930_v56 = vpop.eup %10929  ;;  %9552 = vmatprep.mubr.bf16.mxu0 %v7437_v28 }
0x1495   : > { %v7428_v23 = vmul.f32 %v10930_v56, %v13282_v33  ;;  %v10932_v43 = vpop.eup %10931  ;;  %v10551_v33 = vld [vmem:[#allocation8 + $0x228] ss:$12 sps:$4 sm:$0xff]  }
0x1496   : > { %v7429_v53 = vmul.f32 %v10932_v43, %v13280_v6  ;;  %7689 = vmatpush1.bf16.msra.mxu0 %v10551_v33 }
0x1497   : > { %v7438_v9 = vpack.c.bf16 %v7428_v23, %v7427_v39 }
0x1498   : > { %v10934_v36 = vpop.eup %10933 }
0x1499   : > { %v10936_v31 = vpop.eup %10935  ;;  %9553 = vmatmul.mubr.bf16.gmra.mrb[184].mxu0 %v7438_v9  ;;  %v7430_v46 = vmul.f32 %v10934_v36, %v13286_v25 }
0x149a   : > { %v7431_v40 = vmul.f32 %v10936_v31, %v13288_v54 }
0x149b   : > { %v7439_v52 = vpack.c.bf16 %v7430_v46, %v7429_v53 }
0x149c   : > { %v10938_v41 = vpop.eup %10937 }
0x149d   : > { %v7432_v49 = vmul.f32 %v10938_v41, %v13292_v62  ;;  %9556 = vmatprep.mubr.bf16.mxu0 %v7439_v52 }
0x149f   : > { %v7440_v61 = vpack.c.bf16 %v7432_v49, %v7431_v40 }
0x14a1   : > { %9557 = vmatmul.mubr.bf16.gmra.mrb[188].mxu0 %v7440_v61 }
0x14a2   : > { %7714 = vmatprep.mubr.bf16.mxu0 %v13677_v2 }
0x1530   : > { %v9546_v6 = vpop.f32.mrb[176].mxu0 }
0x1531   : > { %v7507_v25 = vpop.f32.mrb[177].mxu0 }
0x1532   : > { %v9547_v0 = vpop.f32.mrb[178].mxu0 }
0x1533   : > { %v7571_v27 = vpack.c.bf16 %v9547_v0, %v9546_v6  ;;  %v7510_v51 = vpop.f32.mrb[179].mxu0 }
0x1534   : > { %v7570_v54 = vpack.c.bf16 %v7510_v51, %v7507_v25 }
0x1536   : > { %8661 = vmatmul.mubr.msk.bf16.vlgmr.msra.gmra.mrb[96].mxu0 %vm3211_vm0, %v7570_v54  ;;  %9568 = vmatprep.mubr.msk.bf16.mxu1 %vm3211_vm0, %v7570_v54 }
0x1537   : > { %9569 = vmatmul.mubr.msk.bf16.vlgmr.msra.gmra.mrb[144].mxu1 %vm3211_vm0, %v7571_v27  ;;  %7724 = vmatprep.mubr.bf16.mxu0 %v13677_v2 }
0x1538   : > { %v9550_v62 = vpop.f32.mrb[180].mxu0 }
0x1539   : > { %v7523_v10 = vpop.f32.mrb[181].mxu0 }
0x153a   : > { %v9551_v13 = vpop.f32.mrb[182].mxu0 }
0x153b   : > { %v7573_v29 = vpack.c.bf16 %v9551_v13, %v9550_v62  ;;  %v7526_v3 = vpop.f32.mrb[183].mxu0 }
0x153c   : > { %v7572_v59 = vpack.c.bf16 %v7526_v3, %v7523_v10 }
0x153e   : > { %8662 = vmatmul.mubr.msk.bf16.gmra.mrb[100].mxu0 %vm3211_vm0, %v7571_v27  ;;  %9572 = vmatprep.mubr.msk.bf16.mxu1 %vm3211_vm0, %v7572_v59 }
0x153f   : > { %9573 = vmatmul.mubr.msk.bf16.gmra.mrb[148].mxu1 %vm3211_vm0, %v7573_v29  ;;  %7734 = vmatprep.mubr.bf16.mxu0 %v13677_v2 }
0x1546   : > { %8663 = vmatmul.mubr.msk.bf16.gmra.mrb[104].mxu0 %vm3211_vm0, %v7572_v59 }
0x1547   : > { %7744 = vmatprep.mubr.bf16.mxu0 %v13677_v2 }
0x154e   : > { %8664 = vmatmul.mubr.msk.bf16.gmra.mrb[108].mxu0 %vm3211_vm0, %v7573_v29 }
0x154f   : > { %7754 = vmatprep.mubr.bf16.mxu0 %v13677_v2 }
0x156c   : > { %v9554_v26 = vpop.f32.mrb[184].mxu0 }
0x156d   : > { %v7539_v16 = vpop.f32.mrb[185].mxu0 }
0x156e   : > { %v9555_v37 = vpop.f32.mrb[186].mxu0 }
0x156f   : > { %v7575_v5 = vpack.c.bf16 %v9555_v37, %v9554_v26  ;;  %v7542_v8 = vpop.f32.mrb[187].mxu0 }
0x1570   : > { %v7574_v24 = vpack.c.bf16 %v7542_v8, %v7539_v16 }
0x1572   : > { %8665 = vmatmul.mubr.msk.bf16.gmra.mrb[112].mxu0 %vm3211_vm0, %v7574_v24  ;;  %9576 = vmatprep.mubr.msk.bf16.mxu1 %vm3211_vm0, %v7574_v24 }
0x1573   : > { %9577 = vmatmul.mubr.msk.bf16.gmra.mrb[152].mxu1 %vm3211_vm0, %v7575_v5  ;;  %7764 = vmatprep.mubr.bf16.mxu0 %v13677_v2 }
0x1574   : > { %v9558_v15 = vpop.f32.mrb[188].mxu0 }
0x1575   : > { %v7555_v12 = vpop.f32.mrb[189].mxu0 }
0x1576   : > { %v9559_v35 = vpop.f32.mrb[190].mxu0 }
0x1577   : > { %v7577_v44 = vpack.c.bf16 %v9559_v35, %v9558_v15  ;;  %v7558_v18 = vpop.f32.mrb[191].mxu0 }
0x1578   : > { %v7576_v7 = vpack.c.bf16 %v7558_v18, %v7555_v12 }
0x157a   : > { %8666 = vmatmul.mubr.msk.bf16.gmra.mrb[116].mxu0 %vm3211_vm0, %v7575_v5  ;;  %9580 = vmatprep.mubr.msk.bf16.mxu1 %vm3211_vm0, %v7576_v7 }
0x157b   : > { %9581 = vmatmul.mubr.msk.bf16.gmra.mrb[156].mxu1 %vm3211_vm0, %v7577_v44  ;;  %7774 = vmatprep.mubr.bf16.mxu0 %v13677_v2 }
0x1582   : > { %8667 = vmatmul.mubr.msk.bf16.gmra.mrb[120].mxu0 %vm3211_vm0, %v7576_v7 }
0x1583   : > { %7784 = vmatprep.mubr.bf16.mxu0 %v13677_v2 }
0x158a   : > { %8668 = vmatmul.mubr.msk.bf16.gmra.mrb[124].mxu0 %vm3211_vm0, %v7577_v44 }
0x1609   : > { %v7716_v2 = vpop.f32.mrb[96].mxu0 }
0x160a   : > { %v7957_v45 = vadd.f32 %v13342_v30, %v7716_v2  ;;  %v7718_v22 = vpop.f32.mrb[97].mxu0  ;;  %v9570_v50 = vpop.f32.mrb[144].mxu1 }
0x160b   : > { %v7958_v14 = vadd.f32 %v13344_v19, %v7718_v22  ;;  %v7965_v42 = vadd.f32 %v9570_v50, %v13346_v4  ;;  %v7720_v21 = vpop.f32.mrb[98].mxu0  ;;  %v7829_v34 = vpop.f32.mrb[145].mxu1 }
0x160c   : > { %8005 = vst [vmem:[%s13351_s11] sm:$0xff] %v7957_v45  ;;  %v7960_v17 = vadd.f32 %v13342_v30, %v7720_v21  ;;  %v7959_v32 = vadd.f32 %v13346_v4, %v7829_v34  ;;  %v7722_v20 = vpop.f32.mrb[99].mxu0  ;;  %v9571_v48 = vpop.f32.mrb[146].mxu1 }
0x160d   : > { %8006 = vst [vmem:[%s13351_s11 + $0x8] sm:$0xff] %v7958_v14  ;;  %8013 = vst [vmem:[%s13351_s11 + $0x40] sm:$0xff] %v7965_v42  ;;  %v7961_v11 = vadd.f32 %v13344_v19, %v7722_v20  ;;  %v7968_v55 = vadd.f32 %v9571_v48, %v13346_v4  ;;  %v7832_v28 = vpop.f32.mrb[147].mxu1 }
0x160e   : > { %8008 = vst [vmem:[%s13351_s11 + $0x18] sm:$0xff] %v7960_v17  ;;  %8007 = vst [vmem:[%s13351_s11 + $0x10] sm:$0xff] %v7959_v32  ;;  %v7962_v56 = vadd.f32 %v13346_v4, %v7832_v28 }
0x160f   : > { %8009 = vst [vmem:[%s13351_s11 + $0x20] sm:$0xff] %v7961_v11  ;;  %8016 = vst [vmem:[%s13351_s11 + $0x58] sm:$0xff] %v7968_v55 }
0x1610   : > { %8010 = vst [vmem:[%s13351_s11 + $0x28] sm:$0xff] %v7962_v56 }
0x1611   : > { %v7726_v39 = vpop.f32.mrb[100].mxu0 }
0x1612   : > { %v7963_v23 = vadd.f32 %v13342_v30, %v7726_v39  ;;  %v7728_v43 = vpop.f32.mrb[101].mxu0  ;;  %v9574_v9 = vpop.f32.mrb[148].mxu1 }
0x1613   : > { %v7964_v36 = vadd.f32 %v13344_v19, %v7728_v43  ;;  %v7977_v31 = vadd.f32 %v9574_v9, %v13346_v4  ;;  %v7730_v53 = vpop.f32.mrb[102].mxu0  ;;  %v7845_v46 = vpop.f32.mrb[149].mxu1 }
0x1614   : > { %8011 = vst [vmem:[%s13351_s11 + $0x30] sm:$0xff] %v7963_v23  ;;  %v7966_v41 = vadd.f32 %v13342_v30, %v7730_v53  ;;  %v7971_v52 = vadd.f32 %v13346_v4, %v7845_v46  ;;  %v7732_v40 = vpop.f32.mrb[103].mxu0  ;;  %v9575_v49 = vpop.f32.mrb[150].mxu1 }
0x1615   : > { %8012 = vst [vmem:[%s13351_s11 + $0x38] sm:$0xff] %v7964_v36  ;;  %8025 = vst [vmem:[%s13351_s11 + $0xa0] sm:$0xff] %v7977_v31  ;;  %v7967_v61 = vadd.f32 %v13344_v19, %v7732_v40  ;;  %v7980_v47 = vadd.f32 %v9575_v49, %v13346_v4  ;;  %v7848_v33 = vpop.f32.mrb[151].mxu1 }
0x1616   : > { %8014 = vst [vmem:[%s13351_s11 + $0x48] sm:$0xff] %v7966_v41  ;;  %8019 = vst [vmem:[%s13351_s11 + $0x70] sm:$0xff] %v7971_v52  ;;  %v7974_v58 = vadd.f32 %v13346_v4, %v7848_v33 }
0x1617   : > { %8015 = vst [vmem:[%s13351_s11 + $0x50] sm:$0xff] %v7967_v61  ;;  %8028 = vst [vmem:[%s13351_s11 + $0xb8] sm:$0xff] %v7980_v47 }
0x1618   : > { %8022 = vst [vmem:[%s13351_s11 + $0x88] sm:$0xff] %v7974_v58 }
0x1619   : > { %v7736_v6 = vpop.f32.mrb[104].mxu0 }
0x161a   : > { %v7969_v25 = vadd.f32 %v13342_v30, %v7736_v6  ;;  %v7738_v0 = vpop.f32.mrb[105].mxu0 }
0x161b   : > { %v7970_v27 = vadd.f32 %v13344_v19, %v7738_v0  ;;  %v7740_v51 = vpop.f32.mrb[106].mxu0 }
0x161c   : > { %8017 = vst [vmem:[%s13351_s11 + $0x60] sm:$0xff] %v7969_v25  ;;  %v7972_v54 = vadd.f32 %v13342_v30, %v7740_v51  ;;  %v7742_v62 = vpop.f32.mrb[107].mxu0 }
0x161d   : > { %8018 = vst [vmem:[%s13351_s11 + $0x68] sm:$0xff] %v7970_v27  ;;  %v7973_v10 = vadd.f32 %v13344_v19, %v7742_v62 }
0x161e   : > { %8020 = vst [vmem:[%s13351_s11 + $0x78] sm:$0xff] %v7972_v54 }
0x161f   : > { %8021 = vst [vmem:[%s13351_s11 + $0x80] sm:$0xff] %v7973_v10 }
0x1621   : > { %v7746_v13 = vpop.f32.mrb[108].mxu0 }
0x1622   : > { %v7975_v29 = vadd.f32 %v13342_v30, %v7746_v13  ;;  %v7748_v3 = vpop.f32.mrb[109].mxu0 }
0x1623   : > { %v7976_v59 = vadd.f32 %v13344_v19, %v7748_v3  ;;  %v7750_v26 = vpop.f32.mrb[110].mxu0 }
0x1624   : > { %8023 = vst [vmem:[%s13351_s11 + $0x90] sm:$0xff] %v7975_v29  ;;  %v7978_v16 = vadd.f32 %v13342_v30, %v7750_v26  ;;  %v7752_v37 = vpop.f32.mrb[111].mxu0 }
0x1625   : > { %8024 = vst [vmem:[%s13351_s11 + $0x98] sm:$0xff] %v7976_v59  ;;  %v7979_v5 = vadd.f32 %v13344_v19, %v7752_v37 }
0x1626   : > { %8026 = vst [vmem:[%s13351_s11 + $0xa8] sm:$0xff] %v7978_v16 }
0x1627   : > { %8027 = vst [vmem:[%s13351_s11 + $0xb0] sm:$0xff] %v7979_v5 }
0x1645   : > { %v7756_v8 = vpop.f32.mrb[112].mxu0 }
0x1646   : > { %v7981_v24 = vadd.f32 %v13342_v30, %v7756_v8  ;;  %v7758_v15 = vpop.f32.mrb[113].mxu0  ;;  %v9578_v12 = vpop.f32.mrb[152].mxu1 }
0x1647   : > { %v7982_v35 = vadd.f32 %v13344_v19, %v7758_v15  ;;  %v7989_v44 = vadd.f32 %v9578_v12, %v13346_v4  ;;  %v7760_v18 = vpop.f32.mrb[114].mxu0  ;;  %v7861_v7 = vpop.f32.mrb[153].mxu1 }
0x1648   : > { %8029 = vst [vmem:[%s13351_s11 + $0xc0] sm:$0xff] %v7981_v24  ;;  %v7984_v1 = vadd.f32 %v13342_v30, %v7760_v18  ;;  %v7983_v38 = vadd.f32 %v13346_v4, %v7861_v7  ;;  %v7762_v63 = vpop.f32.mrb[115].mxu0  ;;  %v9579_v60 = vpop.f32.mrb[154].mxu1 }
0x1649   : > { %8030 = vst [vmem:[%s13351_s11 + $0xc8] sm:$0xff] %v7982_v35  ;;  %8037 = vst [vmem:[%s13351_s11 + $0x100] sm:$0xff] %v7989_v44  ;;  %v7985_v57 = vadd.f32 %v13344_v19, %v7762_v63  ;;  %v7992_v2 = vadd.f32 %v9579_v60, %v13346_v4  ;;  %v7864_v45 = vpop.f32.mrb[155].mxu1 }
0x164a   : > { %8032 = vst [vmem:[%s13351_s11 + $0xd8] sm:$0xff] %v7984_v1  ;;  %8031 = vst [vmem:[%s13351_s11 + $0xd0] sm:$0xff] %v7983_v38  ;;  %v7986_v22 = vadd.f32 %v13346_v4, %v7864_v45 }
0x164b   : > { %8033 = vst [vmem:[%s13351_s11 + $0xe0] sm:$0xff] %v7985_v57  ;;  %8040 = vst [vmem:[%s13351_s11 + $0x118] sm:$0xff] %v7992_v2 }
0x164c   : > { %8034 = vst [vmem:[%s13351_s11 + $0xe8] sm:$0xff] %v7986_v22 }
0x164d   : > { %v7766_v50 = vpop.f32.mrb[116].mxu0 }
0x164e   : > { %v7987_v14 = vadd.f32 %v13342_v30, %v7766_v50  ;;  %v7768_v42 = vpop.f32.mrb[117].mxu0  ;;  %v9582_v21 = vpop.f32.mrb[156].mxu1 }
0x164f   : > { %v7988_v34 = vadd.f32 %v13344_v19, %v7768_v42  ;;  %v8001_v17 = vadd.f32 %v9582_v21, %v13346_v4  ;;  %v7770_v32 = vpop.f32.mrb[118].mxu0  ;;  %v7877_v20 = vpop.f32.mrb[157].mxu1 }
0x1650   : > { %8035 = vst [vmem:[%s13351_s11 + $0xf0] sm:$0xff] %v7987_v14  ;;  %v7990_v48 = vadd.f32 %v13342_v30, %v7770_v32  ;;  %v7995_v11 = vadd.f32 %v13346_v4, %v7877_v20  ;;  %v7772_v55 = vpop.f32.mrb[119].mxu0  ;;  %v9583_v28 = vpop.f32.mrb[158].mxu1 }
0x1651   : > { %8036 = vst [vmem:[%s13351_s11 + $0xf8] sm:$0xff] %v7988_v34  ;;  %8049 = vst [vmem:[%s13351_s11 + $0x160] sm:$0xff] %v8001_v17  ;;  %v7991_v56 = vadd.f32 %v13344_v19, %v7772_v55  ;;  %v8004_v39 = vadd.f32 %v9583_v28, %v13346_v4  ;;  %v7880_v23 = vpop.f32.mrb[159].mxu1 }
0x1652   : > { %8038 = vst [vmem:[%s13351_s11 + $0x108] sm:$0xff] %v7990_v48  ;;  %8043 = vst [vmem:[%s13351_s11 + $0x130] sm:$0xff] %v7995_v11  ;;  %v7998_v43 = vadd.f32 %v13346_v4, %v7880_v23 }
0x1653   : > { %8039 = vst [vmem:[%s13351_s11 + $0x110] sm:$0xff] %v7991_v56  ;;  %8052 = vst [vmem:[%s13351_s11 + $0x178] sm:$0xff] %v8004_v39 }
0x1654   : > { %8046 = vst [vmem:[%s13351_s11 + $0x148] sm:$0xff] %v7998_v43 }
0x1655   : > { %v7776_v9 = vpop.f32.mrb[120].mxu0 }
0x1656   : > { %v7993_v36 = vadd.f32 %v13342_v30, %v7776_v9  ;;  %v7778_v31 = vpop.f32.mrb[121].mxu0 }
0x1657   : > { %v7994_v53 = vadd.f32 %v13344_v19, %v7778_v31  ;;  %v7780_v46 = vpop.f32.mrb[122].mxu0 }
0x1658   : > { %8041 = vst [vmem:[%s13351_s11 + $0x120] sm:$0xff] %v7993_v36  ;;  %v7996_v41 = vadd.f32 %v13342_v30, %v7780_v46  ;;  %v7782_v52 = vpop.f32.mrb[123].mxu0 }
0x1659   : > { %8042 = vst [vmem:[%s13351_s11 + $0x128] sm:$0xff] %v7994_v53  ;;  %v7997_v4 = vadd.f32 %v13344_v19, %v7782_v52 }
0x165a   : > { %8044 = vst [vmem:[%s13351_s11 + $0x138] sm:$0xff] %v7996_v41 }
0x165b   : > { %8045 = vst [vmem:[%s13351_s11 + $0x140] sm:$0xff] %v7997_v4 }
0x165d   : > { %v7786_v40 = vpop.f32.mrb[124].mxu0 }
0x165e   : > { %v7999_v49 = vadd.f32 %v13342_v30, %v7786_v40  ;;  %v7788_v61 = vpop.f32.mrb[125].mxu0 }
0x165f   : > { %v8000_v47 = vadd.f32 %v13344_v19, %v7788_v61  ;;  %v7790_v33 = vpop.f32.mrb[126].mxu0 }
0x1660   : > { %8047 = vst [vmem:[%s13351_s11 + $0x150] sm:$0xff] %v7999_v49  ;;  %v8002_v58 = vadd.f32 %v13342_v30, %v7790_v33  ;;  %v7792_v6 = vpop.f32.mrb[127].mxu0 }
0x1661   : > { %8048 = vst [vmem:[%s13351_s11 + $0x158] sm:$0xff] %v8000_v47  ;;  %v8003_v25 = vadd.f32 %v13344_v19, %v7792_v6 }
0x1662   : > { %8050 = vst [vmem:[%s13351_s11 + $0x168] sm:$0xff] %v8002_v58 }
0x1663   : > { %8051 = vst [vmem:[%s13351_s11 + $0x170] sm:$0xff] %v8003_v25 }
0x1664   : > { %11082 = shalt.err (!%p11079_p0)
}
0x1665   : > { %s11083_s24 = scalar_lea.hbm %s13447_s13, 6144  ;;  %s11087_s28 = scalar_lea.hbm %s13507_s5, 12288 }
0x1666   : > { %p11084_p4 = scmp.ne.s32.totalorder %s13447_s13, %s11083_s24  ;;  %p11088_p12 = scmp.lt.u32.totalorder %s13447_s13, %s13507_s5 }
0x1667   : > { %p11089_p1 = scmp.lt.u32.totalorder %s11087_s28, %s11083_s24  ;;  %p11091_p13 = scmp.lt.u32.totalorder %s11083_s24, %s13447_s13 }
0x1668   : > { %p11085_p2 = pnand %p11084_p4, %p11361_p3 }
0x1669   : > { %p11090_p11 = por %p11089_p1, %p11088_p12 }
0x166a   : > { %p11086_p8 = pneg %p11085_p2 }
0x166b   : > { %p11092_p6 = por %p11091_p13, %p11090_p11 }
0x166d   : > { %p11093_p10 = pnand %p11092_p6, %p11086_p8 }
0x166f   : > { %11096 = shalt.err (!%p11093_p10)
}
0x1670   : > { %s11173_s11 = smov 384   ;;  %s11174_s25 = smov 24  }
0x1671   : > { %10019 = dma.vmem_to_hbm [thread:$0]  (%p11361_p3), %s13449_s7, 6144, %s13447_s13, %s8054_s21, %s11173_s11, %s11173_s11, %s11174_s25  }
0x1672 PF: > { %s13753_s1 = sld [smem:[#allocation15_spill]]  ;;  %s8085_s9 = sand.u32 1, %s11139_s18  }
0x1673   : > { %p13755_p7 = scmp.ge.s32.totalorder %s11159_s23, 2  ;;  %s8086_s27 = scalar_lea.sflag [#allocation4], %s8085_s9 }
0x1678   : > { %p13754_p5 = scmp.ne.s32.totalorder %s13753_s1, 0 }
0x167a   : > { %p10036_p9 = pnand %p13755_p7, %p13754_p5 }
0x167c   : > { %11134 = dma.done.wait (!%p10036_p9), %s8086_s27, 6144  }
0x167d   : > { %11136 = vsyncadd (!%p10036_p9), %s8086_s27, 4294961152  ;;  %s23_s23 = sadd.s32 1, %s11159_s23   ;;  %s13756_s18 = smov %s11143_s19 }
0x167e   : > { %p20_p0 = scmp.ge.s32.totalorder %s23_s23, 4   ;;  %s13757_s19 = smov %s11147_s20 }
0x167f   : > { %s13758_s20 = smov %s11370_s15  ;;  %s13759_s21 = smov %s11155_s22 }
0x1680   : > { %s13760_s22 = smov %s13762_s16  ;;  %22 = sbr.rel (!%p20_p0) target bundleno = 10 (0xa), region = 98 }
0x1687   :  { %8091 = vsyncpa [#allocation3], 1 }
0x1688   :  { %8093 = vsyncpa [#allocation3 + $0x1], 1 }
0x1689   :  { %8094 = vsyncpa [#allocation6], 1 }
0x168a   :  { %8095 = vsyncpa [#allocation9], 1 }
0x168b   :  { %8096 = vsyncpa [#allocation4], 1 }
0x168c   :  { %8098 = vsyncpa [#allocation4 + $0x1], 1 }

</bundles_post_ra>
